<compile_context>
chip_gen: v7x
topology: tpu7x:2x2x1
jax: 0.10.0
libtpu: 0.0.40
codegen_flags: <defaults>
</compile_context>

<pallas_src>
import functools
import math

import jax
import jax.numpy as jnp
from jax import lax
from jax.experimental import pallas as pl
from jax.experimental.pallas import tpu as pltpu


def _gelu_exact(x):
    # F.gelu default (exact, erf-based), computed in f32.
    return 0.5 * x * (1.0 + lax.erf(x * jnp.float32(1.0 / math.sqrt(2.0))))


def _layernorm(x, gamma, beta, eps=1e-5):
    mu = jnp.mean(x, axis=-1, keepdims=True)
    var = jnp.mean((x - mu) ** 2, axis=-1, keepdims=True)
    return (x - mu) * lax.rsqrt(var + eps) * gamma + beta


def encoder_layer_kernel(q_ref, k_ref, v_ref,
                         wq_ref, wk_ref, wv_ref,
                         bq_ref, bk_ref, bv_ref,
                         wo_ref, bo_ref,
                         w1_ref, b1_ref, w2_ref, b2_ref,
                         g1_ref, be1_ref, g2_ref, be2_ref,
                         out_ref, *scratch, nhead, mxu_dtype, fuse_heads):
    B, L, E = q_ref.shape
    R = B * L
    hd = E // nhead

    # ---- flatten this block's sequences into one (R, E) row slab ----
    q_rows = q_ref[...].reshape(R, E)        # mxu_dtype (scale folded into wq/bq)
    k_rows = k_ref[...].reshape(R, E)        # mxu_dtype
    src_rows = v_ref[...].reshape(R, E)      # f32: residual / LayerNorm stream

    def mm(x, w_ref, b_ref, out_dtype=jnp.float32):
        # MXU-dtype operands, f32 accumulation, f32 bias add.
        y = jnp.dot(x.astype(mxu_dtype), w_ref[...],
                    preferred_element_type=jnp.float32) + b_ref[...]
        return y.astype(out_dtype)

    # ---- QKV in-projections over the full row slab (outputs stay mxu_dtype) ----
    q3 = mm(q_rows, wq_ref, bq_ref, mxu_dtype).reshape(B, L, E)
    k3 = mm(k_rows, wk_ref, bk_ref, mxu_dtype).reshape(B, L, E)
    v3 = mm(src_rows, wv_ref, bv_ref, mxu_dtype).reshape(B, L, E)

    # ---- attention: static loop over heads, batched over the B sequences ----
    head_outs = []
    for h in range(nhead):                   # static unroll over heads
        lo = h * hd
        qh = q3[:, :, lo:lo + hd]            # (B, L, hd) mxu_dtype, pre-scaled
        kh = k3[:, :, lo:lo + hd]
        vh = v3[:, :, lo:lo + hd]
        s = jnp.einsum('bld,bmd->blm', qh, kh,
                       preferred_element_type=jnp.float32)      # (B, L, L) f32
        s = s - jnp.max(s, axis=-1, keepdims=True)
        pr = jnp.exp(s)
        pr = pr / jnp.sum(pr, axis=-1, keepdims=True)           # exact softmax
        o = jnp.einsum('blm,bmd->bld', pr.astype(mxu_dtype), vh,
                       preferred_element_type=jnp.float32)      # (B, L, hd)
        o = o.reshape(R, hd).astype(mxu_dtype)
        if fuse_heads:
            head_outs.append(o)
        else:
            # Fallback path: write heads into a VMEM scratch slab.
            scratch[0][:, lo:lo + hd] = o.astype(scratch[0].dtype)

    if fuse_heads:
        # Lane-concatenate heads into one (R, E) value feeding the out-projection
        # directly: no scratch store/reload, no masked partial-lane stores.
        attn_rows = head_outs[0] if nhead == 1 else jnp.concatenate(head_outs, axis=-1)
    else:
        attn_rows = scratch[0][...]

    # ---- out-projection + residual + LayerNorm1 (f32) ----
    x = _layernorm(src_rows + mm(attn_rows, wo_ref, bo_ref),
                   g1_ref[...], be1_ref[...])

    # ---- feed-forward (GELU in f32, h1 kept in mxu_dtype) + residual + LN2 ----
    h1 = _gelu_exact(mm(x, w1_ref, b1_ref)).astype(mxu_dtype)
    x = _layernorm(x + mm(h1, w2_ref, b2_ref), g2_ref[...], be2_ref[...])

    out_ref[...] = x.reshape(B, L, E).astype(out_ref.dtype)


_WEIGHT_KEYS = ('wq', 'wk', 'wv', 'wo', 'w1', 'w2')
_FAST_PATH = {'ok': None}    # None = untested, True = confirmed, False = disabled


def _vmem_limit_bytes():
    """Generation-aware scoped-VMEM cap: ~96 MiB on v5e/v6e (128 MiB physical),
    ~48 MiB on v7x (64 MiB physical), leaving headroom for internal scratch."""
    cap = 128 * 1024 * 1024
    try:
        cap = int(pltpu.get_tpu_info().vmem_capacity_bytes)
    except Exception:
        pass
    return max(32 * 1024 * 1024, min(cap * 3 // 4, 100 * 1024 * 1024))


def _pick_batch_tile(n_batch, seq_len, d_model, d_ff, vmem_limit, mxu_bytes):
    """Largest batch tile whose row slab fits the VMEM budget.  The leading batch
    dim is NOT subject to the (8,128) tiling constraint, so any divisor of N is a
    legal tile; the grid is kept >= 2 so both v7x TensorCores get work (one extra
    grid step is negligible on 1-TC chips)."""
    E, F, L = d_model, d_ff, seq_len
    # Single-buffered weight residency + small f32 params.
    weight_bytes = (4 * E * E + 2 * E * F) * mxu_bytes + (10 * E + 2 * F) * 4
    # Approximate per-row footprint: pipelined q/k (mxu) + src/out (f32) buffers,
    # live projections / attention output (mxu), f32 residual/LN stream, FFN
    # intermediate, one head's score/prob rows.
    per_row = ((2 * (2 * mxu_bytes + 4) + 2 * 4) * E
               + (4 * mxu_bytes + 3 * 4) * E
               + (mxu_bytes + 4) * F
               + (4 + mxu_bytes) * L)
    budget = int(vmem_limit * 0.85) - weight_bytes
    max_rows = max(L, budget // max(per_row, 1))
    cands = [d for d in range(1, n_batch + 1)
             if n_batch % d == 0 and d * L <= max_rows]
    if n_batch >= 2:
        cands = [d for d in cands if d < n_batch] or [1]
    return max(cands)


def transformer_encoder_layer_qkv(query, key, src, params, *, nhead,
                                  mxu_dtype=jnp.bfloat16):
    """query/key/src: (L, N, E) float32 (PyTorch seq-first convention)."""
    L, N, E = query.shape
    assert E % nhead == 0, "d_model must be divisible by nhead"
    F_ff = params['w1'].shape[1]
    hd = E // nhead

    vmem_limit = _vmem_limit_bytes()
    mxu_bytes = jnp.dtype(mxu_dtype).itemsize
    B_tile = _pick_batch_tile(N, L, E, F_ff, vmem_limit, mxu_bytes)
    R = B_tile * L

    # Fold the 1/sqrt(hd) attention scale into the query projection once
    # (constant transform on weights; removes the per-step VPU multiply).
    scale = 1.0 / math.sqrt(hd)
    p = dict(params)
    p['wq'] = params['wq'] * scale
    p['bq'] = params['bq'] * scale
    # Matmul weights in the MXU dtype (halves weight DMA/VMEM for bf16); biases
    # and LayerNorm params stay f32.
    p = {k: (v.astype(mxu_dtype) if k in _WEIGHT_KEYS else v.astype(jnp.float32))
         for k, v in p.items()}

    # Batch-major layout (L on the sublane axis, as attention needs); query/key
    # are cast to the MXU dtype fused with the transpose; src stays f32 because
    # it carries the residual / LayerNorm stream.
    q_b = jnp.transpose(query, (1, 0, 2)).astype(mxu_dtype)
    k_b = jnp.transpose(key, (1, 0, 2)).astype(mxu_dtype)
    v_b = jnp.transpose(src, (1, 0, 2)).astype(jnp.float32)

    weight_args = (p['wq'], p['wk'], p['wv'],
                   p['bq'], p['bk'], p['bv'],
                   p['wo'], p['bo'],
                   p['w1'], p['b1'], p['w2'], p['b2'],
                   p['g1'], p['be1'], p['g2'], p['be2'])

    # Advisory cost estimate so XLA schedules the surrounding transposes/casts
    # around this long fused custom call.
    flops = int(N * L * (8 * E * E + 4 * E * F_ff + 4 * L * E))
    transcendentals = int(N * L * (nhead * L + F_ff))
    bytes_accessed = int(N * L * E * (2 * mxu_bytes + 4 + 4)
                         + (4 * E * E + 2 * E * F_ff) * mxu_bytes)
    cost = pl.CostEstimate(flops=flops, transcendentals=transcendentals,
                           bytes_accessed=bytes_accessed)

    act_spec = pl.BlockSpec((B_tile, L, E), lambda b: (b, 0, 0))

    def build(fuse_heads, single_buffer_weights):
        def const_spec(shape):
            idx = lambda b, _n=len(shape): (0,) * _n
            if single_buffer_weights:
                # Constant index map -> fetched once; Buffered(1) keeps a single
                # VMEM copy instead of the default double buffer.
                return pl.BlockSpec(shape, idx, pipeline_mode=pl.Buffered(1))
            return pl.BlockSpec(shape, idx)

        in_specs = ([act_spec, act_spec, act_spec]
                    + [const_spec(w.shape) for w in weight_args])
        scratch_shapes = [] if fuse_heads else [pltpu.VMEM((R, E), jnp.float32)]
        return pl.pallas_call(
            functools.partial(encoder_layer_kernel, nhead=nhead,
                              mxu_dtype=mxu_dtype, fuse_heads=fuse_heads),
            out_shape=jax.ShapeDtypeStruct((N, L, E), jnp.float32),
            grid_spec=pltpu.PrefetchScalarGridSpec(
                num_scalar_prefetch=0,
                grid=(N // B_tile,),
                in_specs=in_specs,
                out_specs=act_spec,
                scratch_shapes=scratch_shapes),
            compiler_params=pltpu.CompilerParams(
                dimension_semantics=("parallel",),
                vmem_limit_bytes=vmem_limit),
            cost_estimate=cost,
        )

    args = (q_b, k_b, v_b) + weight_args
    # Optimised config first (fused heads + single-buffered weights); fall back
    # to the previously-validated config if this jax/Mosaic version rejects it.
    if _FAST_PATH['ok'] is not False:
        try:
            out = build(True, True)(*args)
            if _FAST_PATH['ok'] is None:
                out = jax.block_until_ready(out)   # surface lowering/exec errors once
                _FAST_PATH['ok'] = True
            return jnp.transpose(out, (1, 0, 2))
        except Exception:
            _FAST_PATH['ok'] = False
    out = build(False, False)(*args)
    return jnp.transpose(out, (1, 0, 2))           # back to (L, N, E)


def _reference(query, key, src, params, *, nhead):
    """Pure-JAX f32 mirror of the PyTorch forward (eval mode), for validation."""
    L, N, E = query.shape
    hd = E // nhead
    scale = 1.0 / math.sqrt(hd)
    qb = jnp.transpose(query, (1, 0, 2))
    kb = jnp.transpose(key, (1, 0, 2))
    vb = jnp.transpose(src, (1, 0, 2))

    q = qb @ params['wq'] + params['bq']
    k = kb @ params['wk'] + params['bk']
    v = vb @ params['wv'] + params['bv']

    def split(x):
        return x.reshape(N, L, nhead, hd).transpose(0, 2, 1, 3)   # (N, H, L, hd)

    qh, kh, vh = split(q) * scale, split(k), split(v)
    s = jnp.einsum('nhld,nhmd->nhlm', qh, kh)
    pr = jax.nn.softmax(s, axis=-1)
    o = jnp.einsum('nhlm,nhmd->nhld', pr, vh)
    o = o.transpose(0, 2, 1, 3).reshape(N, L, E)
    src2 = o @ params['wo'] + params['bo']

    x = vb + src2
    x = _layernorm(x, params['g1'], params['be1'])
    h1 = _gelu_exact(x @ params['w1'] + params['b1'])
    src2 = h1 @ params['w2'] + params['b2']
    x = x + src2
    x = _layernorm(x, params['g2'], params['be2'])
    return jnp.transpose(x, (1, 0, 2))


def make_params(d_model, nhead, dim_feedforward, seed=0):
    """Deterministic synthetic parameters.  Mapping from PyTorch: split
    in_proj_weight row-wise into Wq/Wk/Wv and transpose every Linear weight so
    the kernel computes x @ W + b (W here = W_torch.T)."""
    ks = jax.random.split(jax.random.PRNGKey(seed), 12)
    n = lambda k, shape, s=0.05: (s * jax.random.normal(k, shape)).astype(jnp.float32)
    E, F_ff = d_model, dim_feedforward
    return dict(
        wq=n(ks[0], (E, E)), wk=n(ks[1], (E, E)), wv=n(ks[2], (E, E)),
        bq=n(ks[3], (1, E)), bk=n(ks[4], (1, E)), bv=n(ks[5], (1, E)),
        wo=n(ks[6], (E, E)), bo=n(ks[7], (1, E)),
        w1=n(ks[8], (E, F_ff)), b1=n(ks[9], (1, F_ff)),
        w2=n(ks[10], (F_ff, E)), b2=n(ks[11], (1, E)),
        g1=jnp.ones((1, E), jnp.float32), be1=jnp.zeros((1, E), jnp.float32),
        g2=jnp.ones((1, E), jnp.float32), be2=jnp.zeros((1, E), jnp.float32),
    )


if __name__ == "__main__":
    L, N, E = 8, 2, 32           # seq, batch, d_model
    NHEAD, FF = 4, 64

    params = make_params(E, NHEAD, FF, seed=0)

    kq, kk, kv = jax.random.split(jax.random.PRNGKey(0), 3)
    query = jax.random.normal(kq, (L, N, E), jnp.float32)
    key = jax.random.normal(kk, (L, N, E), jnp.float32)
    src = jax.random.normal(kv, (L, N, E), jnp.float32)

    ref = _reference(query, key, src, params, nhead=NHEAD)

    # f32-MXU path: tight check against the pure-JAX f32 reference.
    out_f32 = transformer_encoder_layer_qkv(query, key, src, params,
                                            nhead=NHEAD, mxu_dtype=jnp.float32)
    out_f32 = jax.block_until_ready(out_f32)
    assert out_f32.shape == (L, N, E)
    assert jnp.allclose(out_f32, ref, atol=5e-3, rtol=5e-3), \
        "f32 kernel mismatch vs JAX reference"

    # bf16-MXU path (default fast path): looser tolerance vs the f32 reference.
    out_bf16 = transformer_encoder_layer_qkv(query, key, src, params, nhead=NHEAD)
    out_bf16 = jax.block_until_ready(out_bf16)
    assert out_bf16.shape == (L, N, E)
    assert jnp.allclose(out_bf16, ref, atol=5e-2, rtol=5e-2), \
        "bf16 kernel mismatch vs JAX reference"

    print("KERNEL_OK")
</pallas_src>

<mosaic_0001>
module attributes {stable_mosaic.version = 11 : i64} {
  func.func @encoder_layer_kernel(%arg0: i32, %arg1: memref<1x8x32xf32, #tpu.memory_space<vmem>>, %arg2: memref<1x8x32xf32, #tpu.memory_space<vmem>>, %arg3: memref<1x8x32xf32, #tpu.memory_space<vmem>>, %arg4: memref<32x32xf32, #tpu.memory_space<vmem>>, %arg5: memref<32x32xf32, #tpu.memory_space<vmem>>, %arg6: memref<32x32xf32, #tpu.memory_space<vmem>>, %arg7: memref<1x32xf32, #tpu.memory_space<vmem>>, %arg8: memref<1x32xf32, #tpu.memory_space<vmem>>, %arg9: memref<1x32xf32, #tpu.memory_space<vmem>>, %arg10: memref<32x32xf32, #tpu.memory_space<vmem>>, %arg11: memref<1x32xf32, #tpu.memory_space<vmem>>, %arg12: memref<32x64xf32, #tpu.memory_space<vmem>>, %arg13: memref<1x64xf32, #tpu.memory_space<vmem>>, %arg14: memref<64x32xf32, #tpu.memory_space<vmem>>, %arg15: memref<1x32xf32, #tpu.memory_space<vmem>>, %arg16: memref<1x32xf32, #tpu.memory_space<vmem>>, %arg17: memref<1x32xf32, #tpu.memory_space<vmem>>, %arg18: memref<1x32xf32, #tpu.memory_space<vmem>>, %arg19: memref<1x32xf32, #tpu.memory_space<vmem>>, %arg20: memref<1x8x32xf32, #tpu.memory_space<vmem>>) attributes {dimension_semantics = [#tpu.dimension_semantics<parallel>], iteration_bounds = array<i64: 2>, scalar_prefetch = 0 : i64, scratch_operands = 0 : i64, tpu.core_type = #tpu.core_type<tc>, window_params = [{transform_indices = @transform_0, window_bounds = array<i64: 1, 8, 32>}, {transform_indices = @transform_1, window_bounds = array<i64: 1, 8, 32>}, {transform_indices = @transform_2, window_bounds = array<i64: 1, 8, 32>}, {pipeline_mode = #tpu.pipeline_mode<synchronous>, transform_indices = @transform_3, window_bounds = array<i64: 32, 32>}, {pipeline_mode = #tpu.pipeline_mode<synchronous>, transform_indices = @transform_4, window_bounds = array<i64: 32, 32>}, {pipeline_mode = #tpu.pipeline_mode<synchronous>, transform_indices = @transform_5, window_bounds = array<i64: 32, 32>}, {pipeline_mode = #tpu.pipeline_mode<synchronous>, transform_indices = @transform_6, window_bounds = array<i64: 1, 32>}, {pipeline_mode = #tpu.pipeline_mode<synchronous>, transform_indices = @transform_7, window_bounds = array<i64: 1, 32>}, {pipeline_mode = #tpu.pipeline_mode<synchronous>, transform_indices = @transform_8, window_bounds = array<i64: 1, 32>}, {pipeline_mode = #tpu.pipeline_mode<synchronous>, transform_indices = @transform_9, window_bounds = array<i64: 32, 32>}, {pipeline_mode = #tpu.pipeline_mode<synchronous>, transform_indices = @transform_10, window_bounds = array<i64: 1, 32>}, {pipeline_mode = #tpu.pipeline_mode<synchronous>, transform_indices = @transform_11, window_bounds = array<i64: 32, 64>}, {pipeline_mode = #tpu.pipeline_mode<synchronous>, transform_indices = @transform_12, window_bounds = array<i64: 1, 64>}, {pipeline_mode = #tpu.pipeline_mode<synchronous>, transform_indices = @transform_13, window_bounds = array<i64: 64, 32>}, {pipeline_mode = #tpu.pipeline_mode<synchronous>, transform_indices = @transform_14, window_bounds = array<i64: 1, 32>}, {pipeline_mode = #tpu.pipeline_mode<synchronous>, transform_indices = @transform_15, window_bounds = array<i64: 1, 32>}, {pipeline_mode = #tpu.pipeline_mode<synchronous>, transform_indices = @transform_16, window_bounds = array<i64: 1, 32>}, {pipeline_mode = #tpu.pipeline_mode<synchronous>, transform_indices = @transform_17, window_bounds = array<i64: 1, 32>}, {pipeline_mode = #tpu.pipeline_mode<synchronous>, transform_indices = @transform_18, window_bounds = array<i64: 1, 32>}, {transform_indices = @transform_19, window_bounds = array<i64: 1, 8, 32>}]} {
    %c0 = arith.constant 0 : index
    %c0_0 = arith.constant 0 : index
    %c0_1 = arith.constant 0 : index
    %0 = vector.load %arg1[%c0, %c0_0, %c0_1] : memref<1x8x32xf32, #tpu.memory_space<vmem>>, vector<1x8x32xf32>
    %1 = vector.shape_cast %0 : vector<1x8x32xf32> to vector<8x32xf32>
    %c0_2 = arith.constant 0 : index
    %c0_3 = arith.constant 0 : index
    %c0_4 = arith.constant 0 : index
    %2 = vector.load %arg2[%c0_2, %c0_3, %c0_4] : memref<1x8x32xf32, #tpu.memory_space<vmem>>, vector<1x8x32xf32>
    %3 = vector.shape_cast %2 : vector<1x8x32xf32> to vector<8x32xf32>
    %c0_5 = arith.constant 0 : index
    %c0_6 = arith.constant 0 : index
    %c0_7 = arith.constant 0 : index
    %4 = vector.load %arg3[%c0_5, %c0_6, %c0_7] : memref<1x8x32xf32, #tpu.memory_space<vmem>>, vector<1x8x32xf32>
    %5 = vector.shape_cast %4 : vector<1x8x32xf32> to vector<8x32xf32>
    %c0_8 = arith.constant 0 : index
    %c0_9 = arith.constant 0 : index
    %6 = vector.load %arg4[%c0_8, %c0_9] : memref<32x32xf32, #tpu.memory_space<vmem>>, vector<32x32xf32>
    %cst = arith.constant dense<0.000000e+00> : vector<8x32xf32>
    %7 = tpu.matmul %1, %6, %cst {dimension_numbers = #tpu.dot_dimension_numbers<[1], [0], [0], [1], [0, 0, 1, 1], [], []>} : vector<8x32xf32>, vector<32x32xf32>, vector<8x32xf32> -> vector<8x32xf32>
    %c0_10 = arith.constant 0 : index
    %c0_11 = arith.constant 0 : index
    %8 = vector.load %arg7[%c0_10, %c0_11] : memref<1x32xf32, #tpu.memory_space<vmem>>, vector<1x32xf32>
    %9 = vector.broadcast %8 : vector<1x32xf32> to vector<8x32xf32>
    %10 = arith.addf %7, %9 : vector<8x32xf32>
    %11 = vector.shape_cast %10 : vector<8x32xf32> to vector<1x8x32xf32>
    %c0_12 = arith.constant 0 : index
    %c0_13 = arith.constant 0 : index
    %12 = vector.load %arg5[%c0_12, %c0_13] : memref<32x32xf32, #tpu.memory_space<vmem>>, vector<32x32xf32>
    %cst_14 = arith.constant dense<0.000000e+00> : vector<8x32xf32>
    %13 = tpu.matmul %3, %12, %cst_14 {dimension_numbers = #tpu.dot_dimension_numbers<[1], [0], [0], [1], [0, 0, 1, 1], [], []>} : vector<8x32xf32>, vector<32x32xf32>, vector<8x32xf32> -> vector<8x32xf32>
    %c0_15 = arith.constant 0 : index
    %c0_16 = arith.constant 0 : index
    %14 = vector.load %arg8[%c0_15, %c0_16] : memref<1x32xf32, #tpu.memory_space<vmem>>, vector<1x32xf32>
    %15 = vector.broadcast %14 : vector<1x32xf32> to vector<8x32xf32>
    %16 = arith.addf %13, %15 : vector<8x32xf32>
    %17 = vector.shape_cast %16 : vector<8x32xf32> to vector<1x8x32xf32>
    %c0_17 = arith.constant 0 : index
    %c0_18 = arith.constant 0 : index
    %18 = vector.load %arg6[%c0_17, %c0_18] : memref<32x32xf32, #tpu.memory_space<vmem>>, vector<32x32xf32>
    %cst_19 = arith.constant dense<0.000000e+00> : vector<8x32xf32>
    %19 = tpu.matmul %5, %18, %cst_19 {dimension_numbers = #tpu.dot_dimension_numbers<[1], [0], [0], [1], [0, 0, 1, 1], [], []>} : vector<8x32xf32>, vector<32x32xf32>, vector<8x32xf32> -> vector<8x32xf32>
    %c0_20 = arith.constant 0 : index
    %c0_21 = arith.constant 0 : index
    %20 = vector.load %arg9[%c0_20, %c0_21] : memref<1x32xf32, #tpu.memory_space<vmem>>, vector<1x32xf32>
    %21 = vector.broadcast %20 : vector<1x32xf32> to vector<8x32xf32>
    %22 = arith.addf %19, %21 : vector<8x32xf32>
    %23 = vector.shape_cast %22 : vector<8x32xf32> to vector<1x8x32xf32>
    %24 = vector.extract_strided_slice %11 {offsets = [0, 0, 0], sizes = [1, 8, 8], strides = [1, 1, 1]} : vector<1x8x32xf32> to vector<1x8x8xf32>
    %25 = vector.extract_strided_slice %17 {offsets = [0, 0, 0], sizes = [1, 8, 8], strides = [1, 1, 1]} : vector<1x8x32xf32> to vector<1x8x8xf32>
    %26 = vector.extract_strided_slice %23 {offsets = [0, 0, 0], sizes = [1, 8, 8], strides = [1, 1, 1]} : vector<1x8x32xf32> to vector<1x8x8xf32>
    "tpu.trace_start"() <{level = 10 : i32, message = "bld,bmd->blm"}> : () -> ()
    %cst_22 = arith.constant dense<0.000000e+00> : vector<1x8x8xf32>
    %27 = tpu.matmul %24, %25, %cst_22 {dimension_numbers = #tpu.dot_dimension_numbers<[2], [2], [1], [1], [0, 0, 0, 1, 1, 1], [0], [0]>} : vector<1x8x8xf32>, vector<1x8x8xf32>, vector<1x8x8xf32> -> vector<1x8x8xf32>
    "tpu.trace_stop"() : () -> ()
    %cst_23 = arith.constant dense<0xFF800000> : vector<1x8xf32>
    %28 = vector.multi_reduction <maximumf>, %27, %cst_23 [2] : vector<1x8x8xf32> to vector<1x8xf32>
    %29 = vector.shape_cast %28 : vector<1x8xf32> to vector<1x8x1xf32>
    %30 = vector.broadcast %29 : vector<1x8x1xf32> to vector<1x8x8xf32>
    %31 = arith.subf %27, %30 : vector<1x8x8xf32>
    %32 = math.exp %31 : vector<1x8x8xf32>
    %cst_24 = arith.constant dense<0.000000e+00> : vector<1x8xf32>
    %33 = vector.multi_reduction <add>, %32, %cst_24 [2] : vector<1x8x8xf32> to vector<1x8xf32>
    %34 = vector.shape_cast %33 : vector<1x8xf32> to vector<1x8x1xf32>
    %35 = vector.broadcast %34 : vector<1x8x1xf32> to vector<1x8x8xf32>
    %36 = arith.divf %32, %35 : vector<1x8x8xf32>
    "tpu.trace_start"() <{level = 10 : i32, message = "blm,bmd->bld"}> : () -> ()
    %cst_25 = arith.constant dense<0.000000e+00> : vector<1x8x8xf32>
    %37 = tpu.matmul %36, %26, %cst_25 {dimension_numbers = #tpu.dot_dimension_numbers<[2], [1], [1], [2], [0, 0, 0, 1, 1, 2], [0], [0]>} : vector<1x8x8xf32>, vector<1x8x8xf32>, vector<1x8x8xf32> -> vector<1x8x8xf32>
    "tpu.trace_stop"() : () -> ()
    %38 = vector.shape_cast %37 : vector<1x8x8xf32> to vector<8x8xf32>
    %39 = vector.extract_strided_slice %11 {offsets = [0, 0, 8], sizes = [1, 8, 8], strides = [1, 1, 1]} : vector<1x8x32xf32> to vector<1x8x8xf32>
    %40 = vector.extract_strided_slice %17 {offsets = [0, 0, 8], sizes = [1, 8, 8], strides = [1, 1, 1]} : vector<1x8x32xf32> to vector<1x8x8xf32>
    %41 = vector.extract_strided_slice %23 {offsets = [0, 0, 8], sizes = [1, 8, 8], strides = [1, 1, 1]} : vector<1x8x32xf32> to vector<1x8x8xf32>
    "tpu.trace_start"() <{level = 10 : i32, message = "bld,bmd->blm"}> : () -> ()
    %cst_26 = arith.constant dense<0.000000e+00> : vector<1x8x8xf32>
    %42 = tpu.matmul %39, %40, %cst_26 {dimension_numbers = #tpu.dot_dimension_numbers<[2], [2], [1], [1], [0, 0, 0, 1, 1, 1], [0], [0]>} : vector<1x8x8xf32>, vector<1x8x8xf32>, vector<1x8x8xf32> -> vector<1x8x8xf32>
    "tpu.trace_stop"() : () -> ()
    %cst_27 = arith.constant dense<0xFF800000> : vector<1x8xf32>
    %43 = vector.multi_reduction <maximumf>, %42, %cst_27 [2] : vector<1x8x8xf32> to vector<1x8xf32>
    %44 = vector.shape_cast %43 : vector<1x8xf32> to vector<1x8x1xf32>
    %45 = vector.broadcast %44 : vector<1x8x1xf32> to vector<1x8x8xf32>
    %46 = arith.subf %42, %45 : vector<1x8x8xf32>
    %47 = math.exp %46 : vector<1x8x8xf32>
    %cst_28 = arith.constant dense<0.000000e+00> : vector<1x8xf32>
    %48 = vector.multi_reduction <add>, %47, %cst_28 [2] : vector<1x8x8xf32> to vector<1x8xf32>
    %49 = vector.shape_cast %48 : vector<1x8xf32> to vector<1x8x1xf32>
    %50 = vector.broadcast %49 : vector<1x8x1xf32> to vector<1x8x8xf32>
    %51 = arith.divf %47, %50 : vector<1x8x8xf32>
    "tpu.trace_start"() <{level = 10 : i32, message = "blm,bmd->bld"}> : () -> ()
    %cst_29 = arith.constant dense<0.000000e+00> : vector<1x8x8xf32>
    %52 = tpu.matmul %51, %41, %cst_29 {dimension_numbers = #tpu.dot_dimension_numbers<[2], [1], [1], [2], [0, 0, 0, 1, 1, 2], [0], [0]>} : vector<1x8x8xf32>, vector<1x8x8xf32>, vector<1x8x8xf32> -> vector<1x8x8xf32>
    "tpu.trace_stop"() : () -> ()
    %53 = vector.shape_cast %52 : vector<1x8x8xf32> to vector<8x8xf32>
    %54 = vector.extract_strided_slice %11 {offsets = [0, 0, 16], sizes = [1, 8, 8], strides = [1, 1, 1]} : vector<1x8x32xf32> to vector<1x8x8xf32>
    %55 = vector.extract_strided_slice %17 {offsets = [0, 0, 16], sizes = [1, 8, 8], strides = [1, 1, 1]} : vector<1x8x32xf32> to vector<1x8x8xf32>
    %56 = vector.extract_strided_slice %23 {offsets = [0, 0, 16], sizes = [1, 8, 8], strides = [1, 1, 1]} : vector<1x8x32xf32> to vector<1x8x8xf32>
    "tpu.trace_start"() <{level = 10 : i32, message = "bld,bmd->blm"}> : () -> ()
    %cst_30 = arith.constant dense<0.000000e+00> : vector<1x8x8xf32>
    %57 = tpu.matmul %54, %55, %cst_30 {dimension_numbers = #tpu.dot_dimension_numbers<[2], [2], [1], [1], [0, 0, 0, 1, 1, 1], [0], [0]>} : vector<1x8x8xf32>, vector<1x8x8xf32>, vector<1x8x8xf32> -> vector<1x8x8xf32>
    "tpu.trace_stop"() : () -> ()
    %cst_31 = arith.constant dense<0xFF800000> : vector<1x8xf32>
    %58 = vector.multi_reduction <maximumf>, %57, %cst_31 [2] : vector<1x8x8xf32> to vector<1x8xf32>
    %59 = vector.shape_cast %58 : vector<1x8xf32> to vector<1x8x1xf32>
    %60 = vector.broadcast %59 : vector<1x8x1xf32> to vector<1x8x8xf32>
    %61 = arith.subf %57, %60 : vector<1x8x8xf32>
    %62 = math.exp %61 : vector<1x8x8xf32>
    %cst_32 = arith.constant dense<0.000000e+00> : vector<1x8xf32>
    %63 = vector.multi_reduction <add>, %62, %cst_32 [2] : vector<1x8x8xf32> to vector<1x8xf32>
    %64 = vector.shape_cast %63 : vector<1x8xf32> to vector<1x8x1xf32>
    %65 = vector.broadcast %64 : vector<1x8x1xf32> to vector<1x8x8xf32>
    %66 = arith.divf %62, %65 : vector<1x8x8xf32>
    "tpu.trace_start"() <{level = 10 : i32, message = "blm,bmd->bld"}> : () -> ()
    %cst_33 = arith.constant dense<0.000000e+00> : vector<1x8x8xf32>
    %67 = tpu.matmul %66, %56, %cst_33 {dimension_numbers = #tpu.dot_dimension_numbers<[2], [1], [1], [2], [0, 0, 0, 1, 1, 2], [0], [0]>} : vector<1x8x8xf32>, vector<1x8x8xf32>, vector<1x8x8xf32> -> vector<1x8x8xf32>
    "tpu.trace_stop"() : () -> ()
    %68 = vector.shape_cast %67 : vector<1x8x8xf32> to vector<8x8xf32>
    %69 = vector.extract_strided_slice %11 {offsets = [0, 0, 24], sizes = [1, 8, 8], strides = [1, 1, 1]} : vector<1x8x32xf32> to vector<1x8x8xf32>
    %70 = vector.extract_strided_slice %17 {offsets = [0, 0, 24], sizes = [1, 8, 8], strides = [1, 1, 1]} : vector<1x8x32xf32> to vector<1x8x8xf32>
    %71 = vector.extract_strided_slice %23 {offsets = [0, 0, 24], sizes = [1, 8, 8], strides = [1, 1, 1]} : vector<1x8x32xf32> to vector<1x8x8xf32>
    "tpu.trace_start"() <{level = 10 : i32, message = "bld,bmd->blm"}> : () -> ()
    %cst_34 = arith.constant dense<0.000000e+00> : vector<1x8x8xf32>
    %72 = tpu.matmul %69, %70, %cst_34 {dimension_numbers = #tpu.dot_dimension_numbers<[2], [2], [1], [1], [0, 0, 0, 1, 1, 1], [0], [0]>} : vector<1x8x8xf32>, vector<1x8x8xf32>, vector<1x8x8xf32> -> vector<1x8x8xf32>
    "tpu.trace_stop"() : () -> ()
    %cst_35 = arith.constant dense<0xFF800000> : vector<1x8xf32>
    %73 = vector.multi_reduction <maximumf>, %72, %cst_35 [2] : vector<1x8x8xf32> to vector<1x8xf32>
    %74 = vector.shape_cast %73 : vector<1x8xf32> to vector<1x8x1xf32>
    %75 = vector.broadcast %74 : vector<1x8x1xf32> to vector<1x8x8xf32>
    %76 = arith.subf %72, %75 : vector<1x8x8xf32>
    %77 = math.exp %76 : vector<1x8x8xf32>
    %cst_36 = arith.constant dense<0.000000e+00> : vector<1x8xf32>
    %78 = vector.multi_reduction <add>, %77, %cst_36 [2] : vector<1x8x8xf32> to vector<1x8xf32>
    %79 = vector.shape_cast %78 : vector<1x8xf32> to vector<1x8x1xf32>
    %80 = vector.broadcast %79 : vector<1x8x1xf32> to vector<1x8x8xf32>
    %81 = arith.divf %77, %80 : vector<1x8x8xf32>
    "tpu.trace_start"() <{level = 10 : i32, message = "blm,bmd->bld"}> : () -> ()
    %cst_37 = arith.constant dense<0.000000e+00> : vector<1x8x8xf32>
    %82 = tpu.matmul %81, %71, %cst_37 {dimension_numbers = #tpu.dot_dimension_numbers<[2], [1], [1], [2], [0, 0, 0, 1, 1, 2], [0], [0]>} : vector<1x8x8xf32>, vector<1x8x8xf32>, vector<1x8x8xf32> -> vector<1x8x8xf32>
    "tpu.trace_stop"() : () -> ()
    %83 = vector.shape_cast %82 : vector<1x8x8xf32> to vector<8x8xf32>
    %84 = tpu.concatenate %38, %53, %68, %83 in 1 : vector<8x8xf32>, vector<8x8xf32>, vector<8x8xf32>, vector<8x8xf32> -> vector<8x32xf32>
    %c0_38 = arith.constant 0 : index
    %c0_39 = arith.constant 0 : index
    %85 = vector.load %arg10[%c0_38, %c0_39] : memref<32x32xf32, #tpu.memory_space<vmem>>, vector<32x32xf32>
    %cst_40 = arith.constant dense<0.000000e+00> : vector<8x32xf32>
    %86 = tpu.matmul %84, %85, %cst_40 {dimension_numbers = #tpu.dot_dimension_numbers<[1], [0], [0], [1], [0, 0, 1, 1], [], []>} : vector<8x32xf32>, vector<32x32xf32>, vector<8x32xf32> -> vector<8x32xf32>
    %c0_41 = arith.constant 0 : index
    %c0_42 = arith.constant 0 : index
    %87 = vector.load %arg11[%c0_41, %c0_42] : memref<1x32xf32, #tpu.memory_space<vmem>>, vector<1x32xf32>
    %88 = vector.broadcast %87 : vector<1x32xf32> to vector<8x32xf32>
    %89 = arith.addf %86, %88 : vector<8x32xf32>
    %90 = arith.addf %5, %89 : vector<8x32xf32>
    %c0_43 = arith.constant 0 : index
    %c0_44 = arith.constant 0 : index
    %91 = vector.load %arg16[%c0_43, %c0_44] : memref<1x32xf32, #tpu.memory_space<vmem>>, vector<1x32xf32>
    %c0_45 = arith.constant 0 : index
    %c0_46 = arith.constant 0 : index
    %92 = vector.load %arg17[%c0_45, %c0_46] : memref<1x32xf32, #tpu.memory_space<vmem>>, vector<1x32xf32>
    %cst_47 = arith.constant dense<0.000000e+00> : vector<8xf32>
    %93 = vector.multi_reduction <add>, %90, %cst_47 [1] : vector<8x32xf32> to vector<8xf32>
    %94 = vector.shape_cast %93 : vector<8xf32> to vector<8x1xf32>
    %cst_48 = arith.constant 3.200000e+01 : f32
    %95 = vector.broadcast %cst_48 : f32 to vector<8x1xf32>
    %96 = arith.divf %94, %95 : vector<8x1xf32>
    %97 = vector.broadcast %96 : vector<8x1xf32> to vector<8x32xf32>
    %98 = arith.subf %90, %97 : vector<8x32xf32>
    %99 = arith.mulf %98, %98 : vector<8x32xf32>
    %cst_49 = arith.constant dense<0.000000e+00> : vector<8xf32>
    %100 = vector.multi_reduction <add>, %99, %cst_49 [1] : vector<8x32xf32> to vector<8xf32>
    %101 = vector.shape_cast %100 : vector<8xf32> to vector<8x1xf32>
    %cst_50 = arith.constant 3.200000e+01 : f32
    %102 = vector.broadcast %cst_50 : f32 to vector<8x1xf32>
    %103 = arith.divf %101, %102 : vector<8x1xf32>
    %104 = vector.broadcast %96 : vector<8x1xf32> to vector<8x32xf32>
    %105 = arith.subf %90, %104 : vector<8x32xf32>
    %cst_51 = arith.constant 9.99999974E-6 : f32
    %106 = vector.broadcast %cst_51 : f32 to vector<8x1xf32>
    %107 = arith.addf %103, %106 : vector<8x1xf32>
    %108 = math.rsqrt %107 : vector<8x1xf32>
    %109 = vector.broadcast %108 : vector<8x1xf32> to vector<8x32xf32>
    %110 = arith.mulf %105, %109 : vector<8x32xf32>
    %111 = vector.broadcast %91 : vector<1x32xf32> to vector<8x32xf32>
    %112 = arith.mulf %110, %111 : vector<8x32xf32>
    %113 = vector.broadcast %92 : vector<1x32xf32> to vector<8x32xf32>
    %114 = arith.addf %112, %113 : vector<8x32xf32>
    %c0_52 = arith.constant 0 : index
    %c0_53 = arith.constant 0 : index
    %115 = vector.load %arg12[%c0_52, %c0_53] : memref<32x64xf32, #tpu.memory_space<vmem>>, vector<32x64xf32>
    %cst_54 = arith.constant dense<0.000000e+00> : vector<8x64xf32>
    %116 = tpu.matmul %114, %115, %cst_54 {dimension_numbers = #tpu.dot_dimension_numbers<[1], [0], [0], [1], [0, 0, 1, 1], [], []>} : vector<8x32xf32>, vector<32x64xf32>, vector<8x64xf32> -> vector<8x64xf32>
    %c0_55 = arith.constant 0 : index
    %c0_56 = arith.constant 0 : index
    %117 = vector.load %arg13[%c0_55, %c0_56] : memref<1x64xf32, #tpu.memory_space<vmem>>, vector<1x64xf32>
    %118 = vector.broadcast %117 : vector<1x64xf32> to vector<8x64xf32>
    %119 = arith.addf %116, %118 : vector<8x64xf32>
    %cst_57 = arith.constant 5.000000e-01 : f32
    %120 = vector.broadcast %cst_57 : f32 to vector<8x64xf32>
    %121 = arith.mulf %120, %119 : vector<8x64xf32>
    %cst_58 = arith.constant 0.707106769 : f32
    %122 = vector.broadcast %cst_58 : f32 to vector<8x64xf32>
    %123 = arith.mulf %119, %122 : vector<8x64xf32>
    %124 = math.erf %123 : vector<8x64xf32>
    %cst_59 = arith.constant 1.000000e+00 : f32
    %125 = vector.broadcast %cst_59 : f32 to vector<8x64xf32>
    %126 = arith.addf %125, %124 : vector<8x64xf32>
    %127 = arith.mulf %121, %126 : vector<8x64xf32>
    %c0_60 = arith.constant 0 : index
    %c0_61 = arith.constant 0 : index
    %128 = vector.load %arg14[%c0_60, %c0_61] : memref<64x32xf32, #tpu.memory_space<vmem>>, vector<64x32xf32>
    %cst_62 = arith.constant dense<0.000000e+00> : vector<8x32xf32>
    %129 = tpu.matmul %127, %128, %cst_62 {dimension_numbers = #tpu.dot_dimension_numbers<[1], [0], [0], [1], [0, 0, 1, 1], [], []>} : vector<8x64xf32>, vector<64x32xf32>, vector<8x32xf32> -> vector<8x32xf32>
    %c0_63 = arith.constant 0 : index
    %c0_64 = arith.constant 0 : index
    %130 = vector.load %arg15[%c0_63, %c0_64] : memref<1x32xf32, #tpu.memory_space<vmem>>, vector<1x32xf32>
    %131 = vector.broadcast %130 : vector<1x32xf32> to vector<8x32xf32>
    %132 = arith.addf %129, %131 : vector<8x32xf32>
    %133 = arith.addf %114, %132 : vector<8x32xf32>
    %c0_65 = arith.constant 0 : index
    %c0_66 = arith.constant 0 : index
    %134 = vector.load %arg18[%c0_65, %c0_66] : memref<1x32xf32, #tpu.memory_space<vmem>>, vector<1x32xf32>
    %c0_67 = arith.constant 0 : index
    %c0_68 = arith.constant 0 : index
    %135 = vector.load %arg19[%c0_67, %c0_68] : memref<1x32xf32, #tpu.memory_space<vmem>>, vector<1x32xf32>
    %cst_69 = arith.constant dense<0.000000e+00> : vector<8xf32>
    %136 = vector.multi_reduction <add>, %133, %cst_69 [1] : vector<8x32xf32> to vector<8xf32>
    %137 = vector.shape_cast %136 : vector<8xf32> to vector<8x1xf32>
    %cst_70 = arith.constant 3.200000e+01 : f32
    %138 = vector.broadcast %cst_70 : f32 to vector<8x1xf32>
    %139 = arith.divf %137, %138 : vector<8x1xf32>
    %140 = vector.broadcast %139 : vector<8x1xf32> to vector<8x32xf32>
    %141 = arith.subf %133, %140 : vector<8x32xf32>
    %142 = arith.mulf %141, %141 : vector<8x32xf32>
    %cst_71 = arith.constant dense<0.000000e+00> : vector<8xf32>
    %143 = vector.multi_reduction <add>, %142, %cst_71 [1] : vector<8x32xf32> to vector<8xf32>
    %144 = vector.shape_cast %143 : vector<8xf32> to vector<8x1xf32>
    %cst_72 = arith.constant 3.200000e+01 : f32
    %145 = vector.broadcast %cst_72 : f32 to vector<8x1xf32>
    %146 = arith.divf %144, %145 : vector<8x1xf32>
    %147 = vector.broadcast %139 : vector<8x1xf32> to vector<8x32xf32>
    %148 = arith.subf %133, %147 : vector<8x32xf32>
    %cst_73 = arith.constant 9.99999974E-6 : f32
    %149 = vector.broadcast %cst_73 : f32 to vector<8x1xf32>
    %150 = arith.addf %146, %149 : vector<8x1xf32>
    %151 = math.rsqrt %150 : vector<8x1xf32>
    %152 = vector.broadcast %151 : vector<8x1xf32> to vector<8x32xf32>
    %153 = arith.mulf %148, %152 : vector<8x32xf32>
    %154 = vector.broadcast %134 : vector<1x32xf32> to vector<8x32xf32>
    %155 = arith.mulf %153, %154 : vector<8x32xf32>
    %156 = vector.broadcast %135 : vector<1x32xf32> to vector<8x32xf32>
    %157 = arith.addf %155, %156 : vector<8x32xf32>
    %158 = vector.shape_cast %157 : vector<8x32xf32> to vector<1x8x32xf32>
    %c0_74 = arith.constant 0 : index
    %c0_75 = arith.constant 0 : index
    %c0_76 = arith.constant 0 : index
    %159 = vector.load %arg20[%c0_74, %c0_75, %c0_76] : memref<1x8x32xf32, #tpu.memory_space<vmem>>, vector<1x8x32xf32>
    tpu.vector_store %arg20[%c0_74, %c0_75, %c0_76], %158 {strides = array<i32>} : memref<1x8x32xf32, #tpu.memory_space<vmem>>, vector<1x8x32xf32>,
    return
  }
  func.func @transform_0(%arg0: i32) -> (i32, i32, i32) {
    %c0_i32 = arith.constant 0 : i32
    %c0_i32_0 = arith.constant 0 : i32
    %c0_i32_1 = arith.constant 0 : i32
    return %arg0, %c0_i32, %c0_i32_0 : i32, i32, i32
  }
  func.func @transform_1(%arg0: i32) -> (i32, i32, i32) {
    %c0_i32 = arith.constant 0 : i32
    %c0_i32_0 = arith.constant 0 : i32
    %c0_i32_1 = arith.constant 0 : i32
    return %arg0, %c0_i32, %c0_i32_0 : i32, i32, i32
  }
  func.func @transform_2(%arg0: i32) -> (i32, i32, i32) {
    %c0_i32 = arith.constant 0 : i32
    %c0_i32_0 = arith.constant 0 : i32
    %c0_i32_1 = arith.constant 0 : i32
    return %arg0, %c0_i32, %c0_i32_0 : i32, i32, i32
  }
  func.func @transform_3(%arg0: i32) -> (i32, i32) {
    %c0_i32 = arith.constant 0 : i32
    %c0_i32_0 = arith.constant 0 : i32
    %c0_i32_1 = arith.constant 0 : i32
    return %c0_i32, %c0_i32_0 : i32, i32
  }
  func.func @transform_4(%arg0: i32) -> (i32, i32) {
    %c0_i32 = arith.constant 0 : i32
    %c0_i32_0 = arith.constant 0 : i32
    %c0_i32_1 = arith.constant 0 : i32
    return %c0_i32, %c0_i32_0 : i32, i32
  }
  func.func @transform_5(%arg0: i32) -> (i32, i32) {
    %c0_i32 = arith.constant 0 : i32
    %c0_i32_0 = arith.constant 0 : i32
    %c0_i32_1 = arith.constant 0 : i32
    return %c0_i32, %c0_i32_0 : i32, i32
  }
  func.func @transform_6(%arg0: i32) -> (i32, i32) {
    %c0_i32 = arith.constant 0 : i32
    %c0_i32_0 = arith.constant 0 : i32
    %c0_i32_1 = arith.constant 0 : i32
    return %c0_i32, %c0_i32_0 : i32, i32
  }
  func.func @transform_7(%arg0: i32) -> (i32, i32) {
    %c0_i32 = arith.constant 0 : i32
    %c0_i32_0 = arith.constant 0 : i32
    %c0_i32_1 = arith.constant 0 : i32
    return %c0_i32, %c0_i32_0 : i32, i32
  }
  func.func @transform_8(%arg0: i32) -> (i32, i32) {
    %c0_i32 = arith.constant 0 : i32
    %c0_i32_0 = arith.constant 0 : i32
    %c0_i32_1 = arith.constant 0 : i32
    return %c0_i32, %c0_i32_0 : i32, i32
  }
  func.func @transform_9(%arg0: i32) -> (i32, i32) {
    %c0_i32 = arith.constant 0 : i32
    %c0_i32_0 = arith.constant 0 : i32
    %c0_i32_1 = arith.constant 0 : i32
    return %c0_i32, %c0_i32_0 : i32, i32
  }
  func.func @transform_10(%arg0: i32) -> (i32, i32) {
    %c0_i32 = arith.constant 0 : i32
    %c0_i32_0 = arith.constant 0 : i32
    %c0_i32_1 = arith.constant 0 : i32
    return %c0_i32, %c0_i32_0 : i32, i32
  }
  func.func @transform_11(%arg0: i32) -> (i32, i32) {
    %c0_i32 = arith.constant 0 : i32
    %c0_i32_0 = arith.constant 0 : i32
    %c0_i32_1 = arith.constant 0 : i32
    return %c0_i32, %c0_i32_0 : i32, i32
  }
  func.func @transform_12(%arg0: i32) -> (i32, i32) {
    %c0_i32 = arith.constant 0 : i32
    %c0_i32_0 = arith.constant 0 : i32
    %c0_i32_1 = arith.constant 0 : i32
    return %c0_i32, %c0_i32_0 : i32, i32
  }
  func.func @transform_13(%arg0: i32) -> (i32, i32) {
    %c0_i32 = arith.constant 0 : i32
    %c0_i32_0 = arith.constant 0 : i32
    %c0_i32_1 = arith.constant 0 : i32
    return %c0_i32, %c0_i32_0 : i32, i32
  }
  func.func @transform_14(%arg0: i32) -> (i32, i32) {
    %c0_i32 = arith.constant 0 : i32
    %c0_i32_0 = arith.constant 0 : i32
    %c0_i32_1 = arith.constant 0 : i32
    return %c0_i32, %c0_i32_0 : i32, i32
  }
  func.func @transform_15(%arg0: i32) -> (i32, i32) {
    %c0_i32 = arith.constant 0 : i32
    %c0_i32_0 = arith.constant 0 : i32
    %c0_i32_1 = arith.constant 0 : i32
    return %c0_i32, %c0_i32_0 : i32, i32
  }
  func.func @transform_16(%arg0: i32) -> (i32, i32) {
    %c0_i32 = arith.constant 0 : i32
    %c0_i32_0 = arith.constant 0 : i32
    %c0_i32_1 = arith.constant 0 : i32
    return %c0_i32, %c0_i32_0 : i32, i32
  }
  func.func @transform_17(%arg0: i32) -> (i32, i32) {
    %c0_i32 = arith.constant 0 : i32
    %c0_i32_0 = arith.constant 0 : i32
    %c0_i32_1 = arith.constant 0 : i32
    return %c0_i32, %c0_i32_0 : i32, i32
  }
  func.func @transform_18(%arg0: i32) -> (i32, i32) {
    %c0_i32 = arith.constant 0 : i32
    %c0_i32_0 = arith.constant 0 : i32
    %c0_i32_1 = arith.constant 0 : i32
    return %c0_i32, %c0_i32_0 : i32, i32
  }
  func.func @transform_19(%arg0: i32) -> (i32, i32, i32) {
    %c0_i32 = arith.constant 0 : i32
    %c0_i32_0 = arith.constant 0 : i32
    %c0_i32_1 = arith.constant 0 : i32
    return %arg0, %c0_i32, %c0_i32_0 : i32, i32, i32
  }
}

module attributes {stable_mosaic.version = 11 : i64} {
  func.func @encoder_layer_kernel(%arg0: i32, %arg1: memref<1x8x32xf32, #tpu.memory_space<vmem>>, %arg2: memref<1x8x32xf32, #tpu.memory_space<vmem>>, %arg3: memref<1x8x32xf32, #tpu.memory_space<vmem>>, %arg4: memref<32x32xf32, #tpu.memory_space<vmem>>, %arg5: memref<32x32xf32, #tpu.memory_space<vmem>>, %arg6: memref<32x32xf32, #tpu.memory_space<vmem>>, %arg7: memref<1x32xf32, #tpu.memory_space<vmem>>, %arg8: memref<1x32xf32, #tpu.memory_space<vmem>>, %arg9: memref<1x32xf32, #tpu.memory_space<vmem>>, %arg10: memref<32x32xf32, #tpu.memory_space<vmem>>, %arg11: memref<1x32xf32, #tpu.memory_space<vmem>>, %arg12: memref<32x64xf32, #tpu.memory_space<vmem>>, %arg13: memref<1x64xf32, #tpu.memory_space<vmem>>, %arg14: memref<64x32xf32, #tpu.memory_space<vmem>>, %arg15: memref<1x32xf32, #tpu.memory_space<vmem>>, %arg16: memref<1x32xf32, #tpu.memory_space<vmem>>, %arg17: memref<1x32xf32, #tpu.memory_space<vmem>>, %arg18: memref<1x32xf32, #tpu.memory_space<vmem>>, %arg19: memref<1x32xf32, #tpu.memory_space<vmem>>, %arg20: memref<1x8x32xf32, #tpu.memory_space<vmem>>, %arg21: memref<8x32xf32, #tpu.memory_space<vmem>>) attributes {dimension_semantics = [#tpu.dimension_semantics<parallel>], iteration_bounds = array<i64: 2>, scalar_prefetch = 0 : i64, scratch_operands = 1 : i64, tpu.core_type = #tpu.core_type<tc>, window_params = [{transform_indices = @transform_0, window_bounds = array<i64: 1, 8, 32>}, {transform_indices = @transform_1, window_bounds = array<i64: 1, 8, 32>}, {transform_indices = @transform_2, window_bounds = array<i64: 1, 8, 32>}, {pipeline_mode = #tpu.pipeline_mode<synchronous>, transform_indices = @transform_3, window_bounds = array<i64: 32, 32>}, {pipeline_mode = #tpu.pipeline_mode<synchronous>, transform_indices = @transform_4, window_bounds = array<i64: 32, 32>}, {pipeline_mode = #tpu.pipeline_mode<synchronous>, transform_indices = @transform_5, window_bounds = array<i64: 32, 32>}, {pipeline_mode = #tpu.pipeline_mode<synchronous>, transform_indices = @transform_6, window_bounds = array<i64: 1, 32>}, {pipeline_mode = #tpu.pipeline_mode<synchronous>, transform_indices = @transform_7, window_bounds = array<i64: 1, 32>}, {pipeline_mode = #tpu.pipeline_mode<synchronous>, transform_indices = @transform_8, window_bounds = array<i64: 1, 32>}, {pipeline_mode = #tpu.pipeline_mode<synchronous>, transform_indices = @transform_9, window_bounds = array<i64: 32, 32>}, {pipeline_mode = #tpu.pipeline_mode<synchronous>, transform_indices = @transform_10, window_bounds = array<i64: 1, 32>}, {pipeline_mode = #tpu.pipeline_mode<synchronous>, transform_indices = @transform_11, window_bounds = array<i64: 32, 64>}, {pipeline_mode = #tpu.pipeline_mode<synchronous>, transform_indices = @transform_12, window_bounds = array<i64: 1, 64>}, {pipeline_mode = #tpu.pipeline_mode<synchronous>, transform_indices = @transform_13, window_bounds = array<i64: 64, 32>}, {pipeline_mode = #tpu.pipeline_mode<synchronous>, transform_indices = @transform_14, window_bounds = array<i64: 1, 32>}, {pipeline_mode = #tpu.pipeline_mode<synchronous>, transform_indices = @transform_15, window_bounds = array<i64: 1, 32>}, {pipeline_mode = #tpu.pipeline_mode<synchronous>, transform_indices = @transform_16, window_bounds = array<i64: 1, 32>}, {pipeline_mode = #tpu.pipeline_mode<synchronous>, transform_indices = @transform_17, window_bounds = array<i64: 1, 32>}, {pipeline_mode = #tpu.pipeline_mode<synchronous>, transform_indices = @transform_18, window_bounds = array<i64: 1, 32>}, {transform_indices = @transform_19, window_bounds = array<i64: 1, 8, 32>}]} {
    %c0 = arith.constant 0 : index
    %c0_0 = arith.constant 0 : index
    %c0_1 = arith.constant 0 : index
    %0 = vector.load %arg1[%c0, %c0_0, %c0_1] : memref<1x8x32xf32, #tpu.memory_space<vmem>>, vector<1x8x32xf32>
    %1 = vector.shape_cast %0 : vector<1x8x32xf32> to vector<8x32xf32>
    %c0_2 = arith.constant 0 : index
    %c0_3 = arith.constant 0 : index
    %c0_4 = arith.constant 0 : index
    %2 = vector.load %arg2[%c0_2, %c0_3, %c0_4] : memref<1x8x32xf32, #tpu.memory_space<vmem>>, vector<1x8x32xf32>
    %3 = vector.shape_cast %2 : vector<1x8x32xf32> to vector<8x32xf32>
    %c0_5 = arith.constant 0 : index
    %c0_6 = arith.constant 0 : index
    %c0_7 = arith.constant 0 : index
    %4 = vector.load %arg3[%c0_5, %c0_6, %c0_7] : memref<1x8x32xf32, #tpu.memory_space<vmem>>, vector<1x8x32xf32>
    %5 = vector.shape_cast %4 : vector<1x8x32xf32> to vector<8x32xf32>
    %c0_8 = arith.constant 0 : index
    %c0_9 = arith.constant 0 : index
    %6 = vector.load %arg4[%c0_8, %c0_9] : memref<32x32xf32, #tpu.memory_space<vmem>>, vector<32x32xf32>
    %cst = arith.constant dense<0.000000e+00> : vector<8x32xf32>
    %7 = tpu.matmul %1, %6, %cst {dimension_numbers = #tpu.dot_dimension_numbers<[1], [0], [0], [1], [0, 0, 1, 1], [], []>} : vector<8x32xf32>, vector<32x32xf32>, vector<8x32xf32> -> vector<8x32xf32>
    %c0_10 = arith.constant 0 : index
    %c0_11 = arith.constant 0 : index
    %8 = vector.load %arg7[%c0_10, %c0_11] : memref<1x32xf32, #tpu.memory_space<vmem>>, vector<1x32xf32>
    %9 = vector.broadcast %8 : vector<1x32xf32> to vector<8x32xf32>
    %10 = arith.addf %7, %9 : vector<8x32xf32>
    %11 = vector.shape_cast %10 : vector<8x32xf32> to vector<1x8x32xf32>
    %c0_12 = arith.constant 0 : index
    %c0_13 = arith.constant 0 : index
    %12 = vector.load %arg5[%c0_12, %c0_13] : memref<32x32xf32, #tpu.memory_space<vmem>>, vector<32x32xf32>
    %cst_14 = arith.constant dense<0.000000e+00> : vector<8x32xf32>
    %13 = tpu.matmul %3, %12, %cst_14 {dimension_numbers = #tpu.dot_dimension_numbers<[1], [0], [0], [1], [0, 0, 1, 1], [], []>} : vector<8x32xf32>, vector<32x32xf32>, vector<8x32xf32> -> vector<8x32xf32>
    %c0_15 = arith.constant 0 : index
    %c0_16 = arith.constant 0 : index
    %14 = vector.load %arg8[%c0_15, %c0_16] : memref<1x32xf32, #tpu.memory_space<vmem>>, vector<1x32xf32>
    %15 = vector.broadcast %14 : vector<1x32xf32> to vector<8x32xf32>
    %16 = arith.addf %13, %15 : vector<8x32xf32>
    %17 = vector.shape_cast %16 : vector<8x32xf32> to vector<1x8x32xf32>
    %c0_17 = arith.constant 0 : index
    %c0_18 = arith.constant 0 : index
    %18 = vector.load %arg6[%c0_17, %c0_18] : memref<32x32xf32, #tpu.memory_space<vmem>>, vector<32x32xf32>
    %cst_19 = arith.constant dense<0.000000e+00> : vector<8x32xf32>
    %19 = tpu.matmul %5, %18, %cst_19 {dimension_numbers = #tpu.dot_dimension_numbers<[1], [0], [0], [1], [0, 0, 1, 1], [], []>} : vector<8x32xf32>, vector<32x32xf32>, vector<8x32xf32> -> vector<8x32xf32>
    %c0_20 = arith.constant 0 : index
    %c0_21 = arith.constant 0 : index
    %20 = vector.load %arg9[%c0_20, %c0_21] : memref<1x32xf32, #tpu.memory_space<vmem>>, vector<1x32xf32>
    %21 = vector.broadcast %20 : vector<1x32xf32> to vector<8x32xf32>
    %22 = arith.addf %19, %21 : vector<8x32xf32>
    %23 = vector.shape_cast %22 : vector<8x32xf32> to vector<1x8x32xf32>
    %24 = vector.extract_strided_slice %11 {offsets = [0, 0, 0], sizes = [1, 8, 8], strides = [1, 1, 1]} : vector<1x8x32xf32> to vector<1x8x8xf32>
    %25 = vector.extract_strided_slice %17 {offsets = [0, 0, 0], sizes = [1, 8, 8], strides = [1, 1, 1]} : vector<1x8x32xf32> to vector<1x8x8xf32>
    %26 = vector.extract_strided_slice %23 {offsets = [0, 0, 0], sizes = [1, 8, 8], strides = [1, 1, 1]} : vector<1x8x32xf32> to vector<1x8x8xf32>
    "tpu.trace_start"() <{level = 10 : i32, message = "bld,bmd->blm"}> : () -> ()
    %cst_22 = arith.constant dense<0.000000e+00> : vector<1x8x8xf32>
    %27 = tpu.matmul %24, %25, %cst_22 {dimension_numbers = #tpu.dot_dimension_numbers<[2], [2], [1], [1], [0, 0, 0, 1, 1, 1], [0], [0]>} : vector<1x8x8xf32>, vector<1x8x8xf32>, vector<1x8x8xf32> -> vector<1x8x8xf32>
    "tpu.trace_stop"() : () -> ()
    %cst_23 = arith.constant dense<0xFF800000> : vector<1x8xf32>
    %28 = vector.multi_reduction <maximumf>, %27, %cst_23 [2] : vector<1x8x8xf32> to vector<1x8xf32>
    %29 = vector.shape_cast %28 : vector<1x8xf32> to vector<1x8x1xf32>
    %30 = vector.broadcast %29 : vector<1x8x1xf32> to vector<1x8x8xf32>
    %31 = arith.subf %27, %30 : vector<1x8x8xf32>
    %32 = math.exp %31 : vector<1x8x8xf32>
    %cst_24 = arith.constant dense<0.000000e+00> : vector<1x8xf32>
    %33 = vector.multi_reduction <add>, %32, %cst_24 [2] : vector<1x8x8xf32> to vector<1x8xf32>
    %34 = vector.shape_cast %33 : vector<1x8xf32> to vector<1x8x1xf32>
    %35 = vector.broadcast %34 : vector<1x8x1xf32> to vector<1x8x8xf32>
    %36 = arith.divf %32, %35 : vector<1x8x8xf32>
    "tpu.trace_start"() <{level = 10 : i32, message = "blm,bmd->bld"}> : () -> ()
    %cst_25 = arith.constant dense<0.000000e+00> : vector<1x8x8xf32>
    %37 = tpu.matmul %36, %26, %cst_25 {dimension_numbers = #tpu.dot_dimension_numbers<[2], [1], [1], [2], [0, 0, 0, 1, 1, 2], [0], [0]>} : vector<1x8x8xf32>, vector<1x8x8xf32>, vector<1x8x8xf32> -> vector<1x8x8xf32>
    "tpu.trace_stop"() : () -> ()
    %38 = vector.shape_cast %37 : vector<1x8x8xf32> to vector<8x8xf32>
    %c0_26 = arith.constant 0 : index
    %c0_27 = arith.constant 0 : index
    %39 = vector.load %arg21[%c0_26, %c0_27] : memref<8x32xf32, #tpu.memory_space<vmem>>, vector<8x8xf32>
    tpu.vector_store %arg21[%c0_26, %c0_27], %38 {strides = array<i32>} : memref<8x32xf32, #tpu.memory_space<vmem>>, vector<8x8xf32>,
    %40 = vector.extract_strided_slice %11 {offsets = [0, 0, 8], sizes = [1, 8, 8], strides = [1, 1, 1]} : vector<1x8x32xf32> to vector<1x8x8xf32>
    %41 = vector.extract_strided_slice %17 {offsets = [0, 0, 8], sizes = [1, 8, 8], strides = [1, 1, 1]} : vector<1x8x32xf32> to vector<1x8x8xf32>
    %42 = vector.extract_strided_slice %23 {offsets = [0, 0, 8], sizes = [1, 8, 8], strides = [1, 1, 1]} : vector<1x8x32xf32> to vector<1x8x8xf32>
    "tpu.trace_start"() <{level = 10 : i32, message = "bld,bmd->blm"}> : () -> ()
    %cst_28 = arith.constant dense<0.000000e+00> : vector<1x8x8xf32>
    %43 = tpu.matmul %40, %41, %cst_28 {dimension_numbers = #tpu.dot_dimension_numbers<[2], [2], [1], [1], [0, 0, 0, 1, 1, 1], [0], [0]>} : vector<1x8x8xf32>, vector<1x8x8xf32>, vector<1x8x8xf32> -> vector<1x8x8xf32>
    "tpu.trace_stop"() : () -> ()
    %cst_29 = arith.constant dense<0xFF800000> : vector<1x8xf32>
    %44 = vector.multi_reduction <maximumf>, %43, %cst_29 [2] : vector<1x8x8xf32> to vector<1x8xf32>
    %45 = vector.shape_cast %44 : vector<1x8xf32> to vector<1x8x1xf32>
    %46 = vector.broadcast %45 : vector<1x8x1xf32> to vector<1x8x8xf32>
    %47 = arith.subf %43, %46 : vector<1x8x8xf32>
    %48 = math.exp %47 : vector<1x8x8xf32>
    %cst_30 = arith.constant dense<0.000000e+00> : vector<1x8xf32>
    %49 = vector.multi_reduction <add>, %48, %cst_30 [2] : vector<1x8x8xf32> to vector<1x8xf32>
    %50 = vector.shape_cast %49 : vector<1x8xf32> to vector<1x8x1xf32>
    %51 = vector.broadcast %50 : vector<1x8x1xf32> to vector<1x8x8xf32>
    %52 = arith.divf %48, %51 : vector<1x8x8xf32>
    "tpu.trace_start"() <{level = 10 : i32, message = "blm,bmd->bld"}> : () -> ()
    %cst_31 = arith.constant dense<0.000000e+00> : vector<1x8x8xf32>
    %53 = tpu.matmul %52, %42, %cst_31 {dimension_numbers = #tpu.dot_dimension_numbers<[2], [1], [1], [2], [0, 0, 0, 1, 1, 2], [0], [0]>} : vector<1x8x8xf32>, vector<1x8x8xf32>, vector<1x8x8xf32> -> vector<1x8x8xf32>
    "tpu.trace_stop"() : () -> ()
    %54 = vector.shape_cast %53 : vector<1x8x8xf32> to vector<8x8xf32>
    %c0_32 = arith.constant 0 : index
    %c8 = arith.constant 8 : index
    %55 = vector.load %arg21[%c0_32, %c8] : memref<8x32xf32, #tpu.memory_space<vmem>>, vector<8x8xf32>
    tpu.vector_store %arg21[%c0_32, %c8], %54 {strides = array<i32>} : memref<8x32xf32, #tpu.memory_space<vmem>>, vector<8x8xf32>,
    %56 = vector.extract_strided_slice %11 {offsets = [0, 0, 16], sizes = [1, 8, 8], strides = [1, 1, 1]} : vector<1x8x32xf32> to vector<1x8x8xf32>
    %57 = vector.extract_strided_slice %17 {offsets = [0, 0, 16], sizes = [1, 8, 8], strides = [1, 1, 1]} : vector<1x8x32xf32> to vector<1x8x8xf32>
    %58 = vector.extract_strided_slice %23 {offsets = [0, 0, 16], sizes = [1, 8, 8], strides = [1, 1, 1]} : vector<1x8x32xf32> to vector<1x8x8xf32>
    "tpu.trace_start"() <{level = 10 : i32, message = "bld,bmd->blm"}> : () -> ()
    %cst_33 = arith.constant dense<0.000000e+00> : vector<1x8x8xf32>
    %59 = tpu.matmul %56, %57, %cst_33 {dimension_numbers = #tpu.dot_dimension_numbers<[2], [2], [1], [1], [0, 0, 0, 1, 1, 1], [0], [0]>} : vector<1x8x8xf32>, vector<1x8x8xf32>, vector<1x8x8xf32> -> vector<1x8x8xf32>
    "tpu.trace_stop"() : () -> ()
    %cst_34 = arith.constant dense<0xFF800000> : vector<1x8xf32>
    %60 = vector.multi_reduction <maximumf>, %59, %cst_34 [2] : vector<1x8x8xf32> to vector<1x8xf32>
    %61 = vector.shape_cast %60 : vector<1x8xf32> to vector<1x8x1xf32>
    %62 = vector.broadcast %61 : vector<1x8x1xf32> to vector<1x8x8xf32>
    %63 = arith.subf %59, %62 : vector<1x8x8xf32>
    %64 = math.exp %63 : vector<1x8x8xf32>
    %cst_35 = arith.constant dense<0.000000e+00> : vector<1x8xf32>
    %65 = vector.multi_reduction <add>, %64, %cst_35 [2] : vector<1x8x8xf32> to vector<1x8xf32>
    %66 = vector.shape_cast %65 : vector<1x8xf32> to vector<1x8x1xf32>
    %67 = vector.broadcast %66 : vector<1x8x1xf32> to vector<1x8x8xf32>
    %68 = arith.divf %64, %67 : vector<1x8x8xf32>
    "tpu.trace_start"() <{level = 10 : i32, message = "blm,bmd->bld"}> : () -> ()
    %cst_36 = arith.constant dense<0.000000e+00> : vector<1x8x8xf32>
    %69 = tpu.matmul %68, %58, %cst_36 {dimension_numbers = #tpu.dot_dimension_numbers<[2], [1], [1], [2], [0, 0, 0, 1, 1, 2], [0], [0]>} : vector<1x8x8xf32>, vector<1x8x8xf32>, vector<1x8x8xf32> -> vector<1x8x8xf32>
    "tpu.trace_stop"() : () -> ()
    %70 = vector.shape_cast %69 : vector<1x8x8xf32> to vector<8x8xf32>
    %c0_37 = arith.constant 0 : index
    %c16 = arith.constant 16 : index
    %71 = vector.load %arg21[%c0_37, %c16] : memref<8x32xf32, #tpu.memory_space<vmem>>, vector<8x8xf32>
    tpu.vector_store %arg21[%c0_37, %c16], %70 {strides = array<i32>} : memref<8x32xf32, #tpu.memory_space<vmem>>, vector<8x8xf32>,
    %72 = vector.extract_strided_slice %11 {offsets = [0, 0, 24], sizes = [1, 8, 8], strides = [1, 1, 1]} : vector<1x8x32xf32> to vector<1x8x8xf32>
    %73 = vector.extract_strided_slice %17 {offsets = [0, 0, 24], sizes = [1, 8, 8], strides = [1, 1, 1]} : vector<1x8x32xf32> to vector<1x8x8xf32>
    %74 = vector.extract_strided_slice %23 {offsets = [0, 0, 24], sizes = [1, 8, 8], strides = [1, 1, 1]} : vector<1x8x32xf32> to vector<1x8x8xf32>
    "tpu.trace_start"() <{level = 10 : i32, message = "bld,bmd->blm"}> : () -> ()
    %cst_38 = arith.constant dense<0.000000e+00> : vector<1x8x8xf32>
    %75 = tpu.matmul %72, %73, %cst_38 {dimension_numbers = #tpu.dot_dimension_numbers<[2], [2], [1], [1], [0, 0, 0, 1, 1, 1], [0], [0]>} : vector<1x8x8xf32>, vector<1x8x8xf32>, vector<1x8x8xf32> -> vector<1x8x8xf32>
    "tpu.trace_stop"() : () -> ()
    %cst_39 = arith.constant dense<0xFF800000> : vector<1x8xf32>
    %76 = vector.multi_reduction <maximumf>, %75, %cst_39 [2] : vector<1x8x8xf32> to vector<1x8xf32>
    %77 = vector.shape_cast %76 : vector<1x8xf32> to vector<1x8x1xf32>
    %78 = vector.broadcast %77 : vector<1x8x1xf32> to vector<1x8x8xf32>
    %79 = arith.subf %75, %78 : vector<1x8x8xf32>
    %80 = math.exp %79 : vector<1x8x8xf32>
    %cst_40 = arith.constant dense<0.000000e+00> : vector<1x8xf32>
    %81 = vector.multi_reduction <add>, %80, %cst_40 [2] : vector<1x8x8xf32> to vector<1x8xf32>
    %82 = vector.shape_cast %81 : vector<1x8xf32> to vector<1x8x1xf32>
    %83 = vector.broadcast %82 : vector<1x8x1xf32> to vector<1x8x8xf32>
    %84 = arith.divf %80, %83 : vector<1x8x8xf32>
    "tpu.trace_start"() <{level = 10 : i32, message = "blm,bmd->bld"}> : () -> ()
    %cst_41 = arith.constant dense<0.000000e+00> : vector<1x8x8xf32>
    %85 = tpu.matmul %84, %74, %cst_41 {dimension_numbers = #tpu.dot_dimension_numbers<[2], [1], [1], [2], [0, 0, 0, 1, 1, 2], [0], [0]>} : vector<1x8x8xf32>, vector<1x8x8xf32>, vector<1x8x8xf32> -> vector<1x8x8xf32>
    "tpu.trace_stop"() : () -> ()
    %86 = vector.shape_cast %85 : vector<1x8x8xf32> to vector<8x8xf32>
    %c0_42 = arith.constant 0 : index
    %c24 = arith.constant 24 : index
    %87 = vector.load %arg21[%c0_42, %c24] : memref<8x32xf32, #tpu.memory_space<vmem>>, vector<8x8xf32>
    tpu.vector_store %arg21[%c0_42, %c24], %86 {strides = array<i32>} : memref<8x32xf32, #tpu.memory_space<vmem>>, vector<8x8xf32>,
    %c0_43 = arith.constant 0 : index
    %c0_44 = arith.constant 0 : index
    %88 = vector.load %arg21[%c0_43, %c0_44] : memref<8x32xf32, #tpu.memory_space<vmem>>, vector<8x32xf32>
    %c0_45 = arith.constant 0 : index
    %c0_46 = arith.constant 0 : index
    %89 = vector.load %arg10[%c0_45, %c0_46] : memref<32x32xf32, #tpu.memory_space<vmem>>, vector<32x32xf32>
    %cst_47 = arith.constant dense<0.000000e+00> : vector<8x32xf32>
    %90 = tpu.matmul %88, %89, %cst_47 {dimension_numbers = #tpu.dot_dimension_numbers<[1], [0], [0], [1], [0, 0, 1, 1], [], []>} : vector<8x32xf32>, vector<32x32xf32>, vector<8x32xf32> -> vector<8x32xf32>
    %c0_48 = arith.constant 0 : index
    %c0_49 = arith.constant 0 : index
    %91 = vector.load %arg11[%c0_48, %c0_49] : memref<1x32xf32, #tpu.memory_space<vmem>>, vector<1x32xf32>
    %92 = vector.broadcast %91 : vector<1x32xf32> to vector<8x32xf32>
    %93 = arith.addf %90, %92 : vector<8x32xf32>
    %94 = arith.addf %5, %93 : vector<8x32xf32>
    %c0_50 = arith.constant 0 : index
    %c0_51 = arith.constant 0 : index
    %95 = vector.load %arg16[%c0_50, %c0_51] : memref<1x32xf32, #tpu.memory_space<vmem>>, vector<1x32xf32>
    %c0_52 = arith.constant 0 : index
    %c0_53 = arith.constant 0 : index
    %96 = vector.load %arg17[%c0_52, %c0_53] : memref<1x32xf32, #tpu.memory_space<vmem>>, vector<1x32xf32>
    %cst_54 = arith.constant dense<0.000000e+00> : vector<8xf32>
    %97 = vector.multi_reduction <add>, %94, %cst_54 [1] : vector<8x32xf32> to vector<8xf32>
    %98 = vector.shape_cast %97 : vector<8xf32> to vector<8x1xf32>
    %cst_55 = arith.constant 3.200000e+01 : f32
    %99 = vector.broadcast %cst_55 : f32 to vector<8x1xf32>
    %100 = arith.divf %98, %99 : vector<8x1xf32>
    %101 = vector.broadcast %100 : vector<8x1xf32> to vector<8x32xf32>
    %102 = arith.subf %94, %101 : vector<8x32xf32>
    %103 = arith.mulf %102, %102 : vector<8x32xf32>
    %cst_56 = arith.constant dense<0.000000e+00> : vector<8xf32>
    %104 = vector.multi_reduction <add>, %103, %cst_56 [1] : vector<8x32xf32> to vector<8xf32>
    %105 = vector.shape_cast %104 : vector<8xf32> to vector<8x1xf32>
    %cst_57 = arith.constant 3.200000e+01 : f32
    %106 = vector.broadcast %cst_57 : f32 to vector<8x1xf32>
    %107 = arith.divf %105, %106 : vector<8x1xf32>
    %108 = vector.broadcast %100 : vector<8x1xf32> to vector<8x32xf32>
    %109 = arith.subf %94, %108 : vector<8x32xf32>
    %cst_58 = arith.constant 9.99999974E-6 : f32
    %110 = vector.broadcast %cst_58 : f32 to vector<8x1xf32>
    %111 = arith.addf %107, %110 : vector<8x1xf32>
    %112 = math.rsqrt %111 : vector<8x1xf32>
    %113 = vector.broadcast %112 : vector<8x1xf32> to vector<8x32xf32>
    %114 = arith.mulf %109, %113 : vector<8x32xf32>
    %115 = vector.broadcast %95 : vector<1x32xf32> to vector<8x32xf32>
    %116 = arith.mulf %114, %115 : vector<8x32xf32>
    %117 = vector.broadcast %96 : vector<1x32xf32> to vector<8x32xf32>
    %118 = arith.addf %116, %117 : vector<8x32xf32>
    %c0_59 = arith.constant 0 : index
    %c0_60 = arith.constant 0 : index
    %119 = vector.load %arg12[%c0_59, %c0_60] : memref<32x64xf32, #tpu.memory_space<vmem>>, vector<32x64xf32>
    %cst_61 = arith.constant dense<0.000000e+00> : vector<8x64xf32>
    %120 = tpu.matmul %118, %119, %cst_61 {dimension_numbers = #tpu.dot_dimension_numbers<[1], [0], [0], [1], [0, 0, 1, 1], [], []>} : vector<8x32xf32>, vector<32x64xf32>, vector<8x64xf32> -> vector<8x64xf32>
    %c0_62 = arith.constant 0 : index
    %c0_63 = arith.constant 0 : index
    %121 = vector.load %arg13[%c0_62, %c0_63] : memref<1x64xf32, #tpu.memory_space<vmem>>, vector<1x64xf32>
    %122 = vector.broadcast %121 : vector<1x64xf32> to vector<8x64xf32>
    %123 = arith.addf %120, %122 : vector<8x64xf32>
    %cst_64 = arith.constant 5.000000e-01 : f32
    %124 = vector.broadcast %cst_64 : f32 to vector<8x64xf32>
    %125 = arith.mulf %124, %123 : vector<8x64xf32>
    %cst_65 = arith.constant 0.707106769 : f32
    %126 = vector.broadcast %cst_65 : f32 to vector<8x64xf32>
    %127 = arith.mulf %123, %126 : vector<8x64xf32>
    %128 = math.erf %127 : vector<8x64xf32>
    %cst_66 = arith.constant 1.000000e+00 : f32
    %129 = vector.broadcast %cst_66 : f32 to vector<8x64xf32>
    %130 = arith.addf %129, %128 : vector<8x64xf32>
    %131 = arith.mulf %125, %130 : vector<8x64xf32>
    %c0_67 = arith.constant 0 : index
    %c0_68 = arith.constant 0 : index
    %132 = vector.load %arg14[%c0_67, %c0_68] : memref<64x32xf32, #tpu.memory_space<vmem>>, vector<64x32xf32>
    %cst_69 = arith.constant dense<0.000000e+00> : vector<8x32xf32>
    %133 = tpu.matmul %131, %132, %cst_69 {dimension_numbers = #tpu.dot_dimension_numbers<[1], [0], [0], [1], [0, 0, 1, 1], [], []>} : vector<8x64xf32>, vector<64x32xf32>, vector<8x32xf32> -> vector<8x32xf32>
    %c0_70 = arith.constant 0 : index
    %c0_71 = arith.constant 0 : index
    %134 = vector.load %arg15[%c0_70, %c0_71] : memref<1x32xf32, #tpu.memory_space<vmem>>, vector<1x32xf32>
    %135 = vector.broadcast %134 : vector<1x32xf32> to vector<8x32xf32>
    %136 = arith.addf %133, %135 : vector<8x32xf32>
    %137 = arith.addf %118, %136 : vector<8x32xf32>
    %c0_72 = arith.constant 0 : index
    %c0_73 = arith.constant 0 : index
    %138 = vector.load %arg18[%c0_72, %c0_73] : memref<1x32xf32, #tpu.memory_space<vmem>>, vector<1x32xf32>
    %c0_74 = arith.constant 0 : index
    %c0_75 = arith.constant 0 : index
    %139 = vector.load %arg19[%c0_74, %c0_75] : memref<1x32xf32, #tpu.memory_space<vmem>>, vector<1x32xf32>
    %cst_76 = arith.constant dense<0.000000e+00> : vector<8xf32>
    %140 = vector.multi_reduction <add>, %137, %cst_76 [1] : vector<8x32xf32> to vector<8xf32>
    %141 = vector.shape_cast %140 : vector<8xf32> to vector<8x1xf32>
    %cst_77 = arith.constant 3.200000e+01 : f32
    %142 = vector.broadcast %cst_77 : f32 to vector<8x1xf32>
    %143 = arith.divf %141, %142 : vector<8x1xf32>
    %144 = vector.broadcast %143 : vector<8x1xf32> to vector<8x32xf32>
    %145 = arith.subf %137, %144 : vector<8x32xf32>
    %146 = arith.mulf %145, %145 : vector<8x32xf32>
    %cst_78 = arith.constant dense<0.000000e+00> : vector<8xf32>
    %147 = vector.multi_reduction <add>, %146, %cst_78 [1] : vector<8x32xf32> to vector<8xf32>
    %148 = vector.shape_cast %147 : vector<8xf32> to vector<8x1xf32>
    %cst_79 = arith.constant 3.200000e+01 : f32
    %149 = vector.broadcast %cst_79 : f32 to vector<8x1xf32>
    %150 = arith.divf %148, %149 : vector<8x1xf32>
    %151 = vector.broadcast %143 : vector<8x1xf32> to vector<8x32xf32>
    %152 = arith.subf %137, %151 : vector<8x32xf32>
    %cst_80 = arith.constant 9.99999974E-6 : f32
    %153 = vector.broadcast %cst_80 : f32 to vector<8x1xf32>
    %154 = arith.addf %150, %153 : vector<8x1xf32>
    %155 = math.rsqrt %154 : vector<8x1xf32>
    %156 = vector.broadcast %155 : vector<8x1xf32> to vector<8x32xf32>
    %157 = arith.mulf %152, %156 : vector<8x32xf32>
    %158 = vector.broadcast %138 : vector<1x32xf32> to vector<8x32xf32>
    %159 = arith.mulf %157, %158 : vector<8x32xf32>
    %160 = vector.broadcast %139 : vector<1x32xf32> to vector<8x32xf32>
    %161 = arith.addf %159, %160 : vector<8x32xf32>
    %162 = vector.shape_cast %161 : vector<8x32xf32> to vector<1x8x32xf32>
    %c0_81 = arith.constant 0 : index
    %c0_82 = arith.constant 0 : index
    %c0_83 = arith.constant 0 : index
    %163 = vector.load %arg20[%c0_81, %c0_82, %c0_83] : memref<1x8x32xf32, #tpu.memory_space<vmem>>, vector<1x8x32xf32>
    tpu.vector_store %arg20[%c0_81, %c0_82, %c0_83], %162 {strides = array<i32>} : memref<1x8x32xf32, #tpu.memory_space<vmem>>, vector<1x8x32xf32>,
    return
  }
  func.func @transform_0(%arg0: i32) -> (i32, i32, i32) {
    %c0_i32 = arith.constant 0 : i32
    %c0_i32_0 = arith.constant 0 : i32
    %c0_i32_1 = arith.constant 0 : i32
    return %arg0, %c0_i32, %c0_i32_0 : i32, i32, i32
  }
  func.func @transform_1(%arg0: i32) -> (i32, i32, i32) {
    %c0_i32 = arith.constant 0 : i32
    %c0_i32_0 = arith.constant 0 : i32
    %c0_i32_1 = arith.constant 0 : i32
    return %arg0, %c0_i32, %c0_i32_0 : i32, i32, i32
  }
  func.func @transform_2(%arg0: i32) -> (i32, i32, i32) {
    %c0_i32 = arith.constant 0 : i32
    %c0_i32_0 = arith.constant 0 : i32
    %c0_i32_1 = arith.constant 0 : i32
    return %arg0, %c0_i32, %c0_i32_0 : i32, i32, i32
  }
  func.func @transform_3(%arg0: i32) -> (i32, i32) {
    %c0_i32 = arith.constant 0 : i32
    %c0_i32_0 = arith.constant 0 : i32
    %c0_i32_1 = arith.constant 0 : i32
    return %c0_i32, %c0_i32_0 : i32, i32
  }
  func.func @transform_4(%arg0: i32) -> (i32, i32) {
    %c0_i32 = arith.constant 0 : i32
    %c0_i32_0 = arith.constant 0 : i32
    %c0_i32_1 = arith.constant 0 : i32
    return %c0_i32, %c0_i32_0 : i32, i32
  }
  func.func @transform_5(%arg0: i32) -> (i32, i32) {
    %c0_i32 = arith.constant 0 : i32
    %c0_i32_0 = arith.constant 0 : i32
    %c0_i32_1 = arith.constant 0 : i32
    return %c0_i32, %c0_i32_0 : i32, i32
  }
  func.func @transform_6(%arg0: i32) -> (i32, i32) {
    %c0_i32 = arith.constant 0 : i32
    %c0_i32_0 = arith.constant 0 : i32
    %c0_i32_1 = arith.constant 0 : i32
    return %c0_i32, %c0_i32_0 : i32, i32
  }
  func.func @transform_7(%arg0: i32) -> (i32, i32) {
    %c0_i32 = arith.constant 0 : i32
    %c0_i32_0 = arith.constant 0 : i32
    %c0_i32_1 = arith.constant 0 : i32
    return %c0_i32, %c0_i32_0 : i32, i32
  }
  func.func @transform_8(%arg0: i32) -> (i32, i32) {
    %c0_i32 = arith.constant 0 : i32
    %c0_i32_0 = arith.constant 0 : i32
    %c0_i32_1 = arith.constant 0 : i32
    return %c0_i32, %c0_i32_0 : i32, i32
  }
  func.func @transform_9(%arg0: i32) -> (i32, i32) {
    %c0_i32 = arith.constant 0 : i32
    %c0_i32_0 = arith.constant 0 : i32
    %c0_i32_1 = arith.constant 0 : i32
    return %c0_i32, %c0_i32_0 : i32, i32
  }
  func.func @transform_10(%arg0: i32) -> (i32, i32) {
    %c0_i32 = arith.constant 0 : i32
    %c0_i32_0 = arith.constant 0 : i32
    %c0_i32_1 = arith.constant 0 : i32
    return %c0_i32, %c0_i32_0 : i32, i32
  }
  func.func @transform_11(%arg0: i32) -> (i32, i32) {
    %c0_i32 = arith.constant 0 : i32
    %c0_i32_0 = arith.constant 0 : i32
    %c0_i32_1 = arith.constant 0 : i32
    return %c0_i32, %c0_i32_0 : i32, i32
  }
  func.func @transform_12(%arg0: i32) -> (i32, i32) {
    %c0_i32 = arith.constant 0 : i32
    %c0_i32_0 = arith.constant 0 : i32
    %c0_i32_1 = arith.constant 0 : i32
    return %c0_i32, %c0_i32_0 : i32, i32
  }
  func.func @transform_13(%arg0: i32) -> (i32, i32) {
    %c0_i32 = arith.constant 0 : i32
    %c0_i32_0 = arith.constant 0 : i32
    %c0_i32_1 = arith.constant 0 : i32
    return %c0_i32, %c0_i32_0 : i32, i32
  }
  func.func @transform_14(%arg0: i32) -> (i32, i32) {
    %c0_i32 = arith.constant 0 : i32
    %c0_i32_0 = arith.constant 0 : i32
    %c0_i32_1 = arith.constant 0 : i32
    return %c0_i32, %c0_i32_0 : i32, i32
  }
  func.func @transform_15(%arg0: i32) -> (i32, i32) {
    %c0_i32 = arith.constant 0 : i32
    %c0_i32_0 = arith.constant 0 : i32
    %c0_i32_1 = arith.constant 0 : i32
    return %c0_i32, %c0_i32_0 : i32, i32
  }
  func.func @transform_16(%arg0: i32) -> (i32, i32) {
    %c0_i32 = arith.constant 0 : i32
    %c0_i32_0 = arith.constant 0 : i32
    %c0_i32_1 = arith.constant 0 : i32
    return %c0_i32, %c0_i32_0 : i32, i32
  }
  func.func @transform_17(%arg0: i32) -> (i32, i32) {
    %c0_i32 = arith.constant 0 : i32
    %c0_i32_0 = arith.constant 0 : i32
    %c0_i32_1 = arith.constant 0 : i32
    return %c0_i32, %c0_i32_0 : i32, i32
  }
  func.func @transform_18(%arg0: i32) -> (i32, i32) {
    %c0_i32 = arith.constant 0 : i32
    %c0_i32_0 = arith.constant 0 : i32
    %c0_i32_1 = arith.constant 0 : i32
    return %c0_i32, %c0_i32_0 : i32, i32
  }
  func.func @transform_19(%arg0: i32) -> (i32, i32, i32) {
    %c0_i32 = arith.constant 0 : i32
    %c0_i32_0 = arith.constant 0 : i32
    %c0_i32_1 = arith.constant 0 : i32
    return %arg0, %c0_i32, %c0_i32_0 : i32, i32, i32
  }
}

</mosaic_0001>

<bundles_post_ra>
// kernel: tpu_custom_call.1
= control target key start
LH: loop header
LB: loop body
LE: loop exit
PB: predicated region body
PF: predicated region fallthrough
CT: control target
= control target key end

     0   :  { %s4459_s0 = inlined_call_operand.hbm [shape: f32[2,8,32], index: 0, kind: input, shape index: {}]   ;;  %s4460_s1 = inlined_call_operand.hbm [shape: f32[2,8,32], index: 1, kind: input, shape index: {}]   ;;  %s4461_s2 = inlined_call_operand.hbm [shape: f32[2,8,32], index: 2, kind: input, shape index: {}]   ;;  %s4462_s3 = inlined_call_operand.hbm [shape: f32[32,32], index: 3, kind: input, shape index: {}]   ;;  %s4463_s4 = inlined_call_operand.hbm [shape: f32[32,32], index: 4, kind: input, shape index: {}]   ;;  %s4464_s5 = inlined_call_operand.hbm [shape: f32[32,32], index: 5, kind: input, shape index: {}]   ;;  %s4465_s6 = inlined_call_operand.hbm [shape: f32[1,32], index: 6, kind: input, shape index: {}]   ;;  %s4466_s7 = inlined_call_operand.hbm [shape: f32[1,32], index: 7, kind: input, shape index: {}]   ;;  %s4467_s8 = inlined_call_operand.hbm [shape: f32[1,32], index: 8, kind: input, shape index: {}]   ;;  %s4468_s9 = inlined_call_operand.hbm [shape: f32[32,32], index: 9, kind: input, shape index: {}]   ;;  %s4469_s10 = inlined_call_operand.hbm [shape: f32[1,32], index: 10, kind: input, shape index: {}]   ;;  %s4470_s11 = inlined_call_operand.hbm [shape: f32[32,64], index: 11, kind: input, shape index: {}]   ;;  %s4471_s12 = inlined_call_operand.hbm [shape: f32[1,64], index: 12, kind: input, shape index: {}]   ;;  %s4472_s13 = inlined_call_operand.hbm [shape: f32[64,32], index: 13, kind: input, shape index: {}]   ;;  %s4473_s14 = inlined_call_operand.hbm [shape: f32[1,32], index: 14, kind: input, shape index: {}]   ;;  %s4474_s15 = inlined_call_operand.hbm [shape: f32[1,32], index: 15, kind: input, shape index: {}]   ;;  %s4475_s16 = inlined_call_operand.hbm [shape: f32[1,32], index: 16, kind: input, shape index: {}]   ;;  %s4476_s17 = inlined_call_operand.hbm [shape: f32[1,32], index: 17, kind: input, shape index: {}]   ;;  %s4477_s18 = inlined_call_operand.hbm [shape: f32[1,32], index: 18, kind: input, shape index: {}]   ;;  %s4478_s19 = inlined_call_operand.hbm [shape: f32[2,8,32], index: 19, kind: output, shape index: {}]  }
   0x1   :  { %4513 = sst [smem:[#allocation48_spill]] %s4459_s0 }
   0x2   :  { %4514 = sst [smem:[#allocation49_spill]] %s4460_s1 }
   0x3   :  { %4515 = sst [smem:[#allocation50_spill]] %s4461_s2 }
   0x4   :  { %4516 = sst [smem:[#allocation51_spill]] %s4462_s3 }
   0x5   :  { %4517 = sst [smem:[#allocation52_spill]] %s4463_s4 }
   0x6   :  { %4518 = sst [smem:[#allocation53_spill]] %s4464_s5 }
   0x7   :  { %4519 = sst [smem:[#allocation54_spill]] %s4465_s6 }
   0x8   :  { %4520 = sst [smem:[#allocation55_spill]] %s4466_s7 }
   0x9   :  { %4521 = sst [smem:[#allocation56_spill]] %s4467_s8 }
   0xa   :  { %4522 = sst [smem:[#allocation57_spill]] %s4468_s9 }
   0xb   :  { %4523 = sst [smem:[#allocation58_spill]] %s4469_s10 }
   0xc   :  { %4524 = sst [smem:[#allocation59_spill]] %s4470_s11 }
   0xd   :  { %4525 = sst [smem:[#allocation60_spill]] %s4471_s12 }
   0xe   :  { %4526 = sst [smem:[#allocation61_spill]] %s4472_s13 }
   0xf   :  { %4527 = sst [smem:[#allocation62_spill]] %s4473_s14 }
  0x10   :  { %4528 = sst [smem:[#allocation63_spill]] %s4474_s15 }
  0x11   :  { %4529 = sst [smem:[#allocation64_spill]] %s4475_s16 }
  0x12   :  { %4530 = sst [smem:[#allocation65_spill]] %s4476_s17 }
  0x13   :  { %4531 = sst [smem:[#allocation66_spill]] %s4477_s18 }
  0x14   :  { %4532 = sst [smem:[#allocation67_spill]] %s4478_s19 }
  0x15   :  { %24 = vsyncpa [#allocation3], 0 }
  0x16   :  { %26 = vsyncpa [#allocation3 + $0x1], 0 }
  0x17   :  { %27 = vsyncpa [#allocation6], 0 }
  0x18   :  { %29 = vsyncpa [#allocation6 + $0x1], 0 }
  0x19   :  { %30 = vsyncpa [#allocation9], 0 }
  0x1a   :  { %31 = vsyncpa [#allocation12], 0 }
  0x1b   :  { %32 = vsyncpa [#allocation15], 0 }
  0x1c   :  { %33 = vsyncpa [#allocation18], 0 }
  0x1d   :  { %34 = vsyncpa [#allocation21], 0 }
  0x1e   :  { %35 = vsyncpa [#allocation24], 0 }
  0x1f   :  { %36 = vsyncpa [#allocation27], 0 }
  0x20   :  { %37 = vsyncpa [#allocation30], 0 }
  0x21   :  { %38 = vsyncpa [#allocation4], 0 }
  0x22   :  { %40 = vsyncpa [#allocation4 + $0x1], 0  ;;  %s3741_s0 = smov 0   ;;  %s3743_s30 = smov 0  }
  0x23   :  { %s3745_s20 = smov 0   ;;  %s3747_s21 = smov 0  }
  0x24 LB: > { %4533 = sst [smem:[#allocation44_spill]] %s3608_s21  ;;  %s3610_s1 = smov [#allocation8]   ;;  %s3608_s21 = sphi %s3747_s21, %s4597_s21   ;;  %s3604_s20 = sphi %s3745_s20, %s4601_s20   ;;  %s3600_s30 = sphi %s3743_s30, %s4600_s30   ;;  %s3596_s0 = sphi %s3741_s0, %s4599_s0  }
  0x25   : > { %s503_s22 = sshll.u32 %s3610_s1, 4  ;;  %s3762_s2 = sadd.s32 4294967295, %s3608_s21   ;;  %s3767_s22 = int_to_ptr.vmem [resolvable:$true] %s503_s22 }
  0x26   : > { %p2435_p0 = scmp.ge.s32.totalorder %s3608_s21, 1  ;;  %p4493_p1 = scmp.eq.s32.totalorder %s3762_s2, 0 }
  0x27   : > { %p491_p2 = scmp.lt.s32.totalorder %s3608_s21, 3  ;;  %s3611_s24 = smov [#allocation11]  }
  0x28   : > { %s529_s25 = sshll.u32 %s3611_s24, 4  ;;  %s3612_s26 = smov [#allocation14]   ;;  %s3782_s25 = int_to_ptr.vmem [resolvable:$true] %s529_s25 }
  0x29   : > { %p3769_p3 = pnand %p2435_p0, %p491_p2  ;;  %s554_s27 = sshll.u32 %s3612_s26, 4  ;;  %s3784_s27 = int_to_ptr.vmem [resolvable:$true] %s554_s27 }
  0x2a   : > { %s4537_s1 = sld [smem:[#allocation51_spill]] }
  0x2b   : > { %s4534_s23 = scalar_select %p3769_p3, 1, 0 }
  0x2c   : > { %p2790_p5 = pneg %p3769_p3 }
  0x2d   : > { %4535 = sst [smem:[#allocation45_spill]] %s4534_s23 }
  0x2e   : > { %p3778_p6 = pnand %p2790_p5, %p4493_p1 }
  0x30   : > { %s4536_s3 = scalar_select %p3778_p6, 1, 0 }
  0x31   : > { %s2968_s19 = scalar_lea.hbm %s4537_s1, 512  ;;  %p3794_p8 = pneg %p3778_p6 }
  0x32   : > { %p2969_p7 = scmp.ne.s32.totalorder %s4537_s1, %s2968_s19  ;;  %p2975_p11 = scmp.lt.u32.totalorder %s2968_s19, %s4537_s1 }
  0x33   : > { %s4538_s24 = scalar_select %p3794_p8, 1, 0 }
  0x34   : > { %p2971_p9 = pnand %p3794_p8, %p2969_p7 }
  0x36   : > { %p2972_p10 = pneg %p2971_p9 }
  0x38   : > { %p2977_p12 = pnand %p2975_p11, %p2972_p10 }
  0x3a   : > { %2980 = shalt.err (!%p2977_p12)
}
  0x3b   : > { %s2981_s18 = scalar_lea.vmem %s3767_s22, 512  ;;  %p2989_p5 = scmp.lt.s32.totalorder %s3767_s22, %s3767_s22 }
  0x3c   : > { %p2982_p13 = scmp.ne.s32.totalorder %s3767_s22, %s2981_s18  ;;  %p2990_p4 = scmp.lt.s32.totalorder %s2981_s18, %s2981_s18 }
  0x3e   : > { %p2984_p0 = pnand %p2982_p13, %p3794_p8  ;;  %p2991_p7 = por %p2990_p4, %p2989_p5 }
  0x40   : > { %p2985_p2 = pneg %p2984_p0 }
  0x42   : > { %p2992_p9 = pnand %p2991_p7, %p2985_p2 }
  0x44   : > { %2995 = shalt.err (!%p2992_p9)
}
  0x45   : > { %s4491_s23 = smov 128   ;;  %s4496_s16 = smov 8  }
  0x46   : > { %2793 = dma.hbm_to_vmem [thread:$0]  (!%p3778_p6), %s4537_s1, 512, %s3767_s22, [#allocation9], %s4491_s23, %s4491_s23, %s4496_s16  }
  0x47   : > { %s4539_s5 = sld [smem:[#allocation53_spill]] }
  0x4d   : > { %s2996_s18 = scalar_lea.hbm %s4539_s5, 512 }
  0x4e   : > { %p2997_p4 = scmp.ne.s32.totalorder %s4539_s5, %s2996_s18  ;;  %p3003_p12 = scmp.lt.u32.totalorder %s2996_s18, %s4539_s5 }
  0x50   : > { %p2999_p10 = pnand %p2997_p4, %p3794_p8 }
  0x52   : > { %p3000_p11 = pneg %p2999_p10 }
  0x54   : > { %p3005_p13 = pnand %p3003_p12, %p3000_p11 }
  0x56   : > { %3008 = shalt.err (!%p3005_p13)
}
  0x57   : > { %s3009_s22 = scalar_lea.vmem %s3782_s25, 512  ;;  %p3017_p7 = scmp.lt.s32.totalorder %s3782_s25, %s3782_s25 }
  0x58   : > { %p3010_p0 = scmp.ne.s32.totalorder %s3782_s25, %s3009_s22  ;;  %p3018_p9 = scmp.lt.s32.totalorder %s3009_s22, %s3009_s22 }
  0x5a   : > { %p3012_p2 = pnand %p3010_p0, %p3794_p8  ;;  %p3019_p4 = por %p3018_p9, %p3017_p7 }
  0x5c   : > { %p3013_p5 = pneg %p3012_p2 }
  0x5e   : > { %p3020_p10 = pnand %p3019_p4, %p3013_p5 }
  0x60   : > { %3023 = shalt.err (!%p3020_p10)
}
  0x61   : > { %2799 = dma.hbm_to_vmem [thread:$0]  (!%p3778_p6), %s4539_s5, 512, %s3782_s25, [#allocation12], %s4491_s23, %s4491_s23, %s4496_s16  }
  0x62   : > { %s4540_s7 = sld [smem:[#allocation55_spill]] }
  0x68   : > { %s3024_s19 = scalar_lea.hbm %s4540_s7, 16 }
  0x69   : > { %p3025_p11 = scmp.ne.s32.totalorder %s4540_s7, %s3024_s19  ;;  %p3031_p0 = scmp.lt.u32.totalorder %s3024_s19, %s4540_s7 }
  0x6b   : > { %p3027_p12 = pnand %p3025_p11, %p3794_p8 }
  0x6d   : > { %p3028_p13 = pneg %p3027_p12 }
  0x6f   : > { %p3033_p2 = pnand %p3031_p0, %p3028_p13 }
  0x71   : > { %3036 = shalt.err (!%p3033_p2)
}
  0x72   : > { %s3037_s25 = scalar_lea.vmem %s3784_s27, 16  ;;  %s3044_s22 = scalar_lea.vmem %s3784_s27, 32 }
  0x73   : > { %p3038_p5 = scmp.ne.s32.totalorder %s3784_s27, %s3037_s25  ;;  %p3045_p4 = scmp.lt.s32.totalorder %s3784_s27, %s3784_s27 }
  0x74   : > { %p3046_p10 = scmp.lt.s32.totalorder %s3044_s22, %s3037_s25 }
  0x75   : > { %p3040_p7 = pnand %p3038_p5, %p3794_p8 }
  0x76   : > { %p3047_p11 = por %p3046_p10, %p3045_p4 }
  0x77   : > { %p3041_p9 = pneg %p3040_p7 }
  0x79   : > { %p3048_p12 = pnand %p3047_p11, %p3041_p9 }
  0x7b   : > { %3051 = shalt.err (!%p3048_p12)
}
  0x7c   : > { %2805 = dma.hbm_to_vmem [thread:$0]  (!%p3778_p6), %s4540_s7, 16, %s3784_s27, [#allocation15]  }
  0x7d   : > { %s3615_s12 = smov [#allocation17]   ;;  %s3616_s19 = smov [#allocation20]  }
  0x7e   : > { %s575_s14 = sshll.u32 %s3615_s12, 4  ;;  %s599_s28 = sshll.u32 %s3616_s19, 4  ;;  %s576_s14 = int_to_ptr.vmem [resolvable:$true] %s575_s14  ;;  %s600_s28 = int_to_ptr.vmem [resolvable:$true] %s599_s28 }
  0x7f   : > { %s4541_s9 = sld [smem:[#allocation57_spill]] }
  0x85   : > { %s3052_s18 = scalar_lea.hbm %s4541_s9, 512 }
  0x86   : > { %p3053_p13 = scmp.ne.s32.totalorder %s4541_s9, %s3052_s18  ;;  %p3059_p5 = scmp.lt.u32.totalorder %s3052_s18, %s4541_s9 }
  0x88   : > { %p3055_p0 = pnand %p3053_p13, %p3794_p8 }
  0x8a   : > { %p3056_p2 = pneg %p3055_p0 }
  0x8c   : > { %p3061_p7 = pnand %p3059_p5, %p3056_p2 }
  0x8e   : > { %3064 = shalt.err (!%p3061_p7)
}
  0x8f   : > { %s3065_s27 = scalar_lea.vmem %s576_s14, 512  ;;  %p3073_p11 = scmp.lt.s32.totalorder %s576_s14, %s576_s14 }
  0x90   : > { %p3066_p9 = scmp.ne.s32.totalorder %s576_s14, %s3065_s27  ;;  %p3074_p12 = scmp.lt.s32.totalorder %s3065_s27, %s3065_s27 }
  0x92   : > { %p3068_p4 = pnand %p3066_p9, %p3794_p8  ;;  %p3075_p1 = por %p3074_p12, %p3073_p11 }
  0x94   : > { %p3069_p10 = pneg %p3068_p4 }
  0x96   : > { %p3076_p3 = pnand %p3075_p1, %p3069_p10 }
  0x98   : > { %3079 = shalt.err (!%p3076_p3)
}
  0x99   : > { %s4542_s10 = smov 128   ;;  %s4543_s11 = sld [smem:[#allocation59_spill]] }
  0x9a   : > { %2811 = dma.hbm_to_vmem [thread:$0]  (!%p3778_p6), %s4541_s9, 512, %s576_s14, [#allocation18], %s4542_s10, %s4542_s10, %s4496_s16  }
  0x9f   : > { %s3080_s26 = scalar_lea.hbm %s4543_s11, 512 }
  0xa0   : > { %p3081_p1 = scmp.ne.s32.totalorder %s4543_s11, %s3080_s26  ;;  %p3087_p0 = scmp.lt.u32.totalorder %s3080_s26, %s4543_s11 }
  0xa2   : > { %p3083_p3 = pnand %p3081_p1, %p3794_p8 }
  0xa4   : > { %p3084_p13 = pneg %p3083_p3 }
  0xa6   : > { %p3089_p2 = pnand %p3087_p0, %p3084_p13 }
  0xa8   : > { %3092 = shalt.err (!%p3089_p2)
}
  0xa9   : > { %s3093_s27 = scalar_lea.vmem %s600_s28, 512  ;;  %p3101_p4 = scmp.lt.s32.totalorder %s600_s28, %s600_s28 }
  0xaa   : > { %p3094_p5 = scmp.ne.s32.totalorder %s600_s28, %s3093_s27  ;;  %p3102_p10 = scmp.lt.s32.totalorder %s3093_s27, %s3093_s27 }
  0xac   : > { %p3096_p7 = pnand %p3094_p5, %p3794_p8  ;;  %p3103_p11 = por %p3102_p10, %p3101_p4 }
  0xae   : > { %p3097_p9 = pneg %p3096_p7 }
  0xb0   : > { %p3104_p12 = pnand %p3103_p11, %p3097_p9 }
  0xb2   : > { %3107 = shalt.err (!%p3104_p12)
}
  0xb3   : > { %2817 = dma.hbm_to_vmem [thread:$0]  (!%p3778_p6), %s4543_s11, 512, %s600_s28, [#allocation21], %s4542_s10, %s4542_s10, %s4496_s16  }
  0xb4   : > { %s3617_s12 = smov [#allocation23]   ;;  %s3618_s29 = smov [#allocation26]  }
  0xb5   : > { %s623_s19 = sshll.u32 %s3617_s12, 4  ;;  %s648_s26 = sshll.u32 %s3618_s29, 4  ;;  %s624_s19 = int_to_ptr.vmem [resolvable:$true] %s623_s19  ;;  %s649_s26 = int_to_ptr.vmem [resolvable:$true] %s648_s26 }
  0xb6   : > { %s4544_s13 = sld [smem:[#allocation61_spill]] }
  0xbc   : > { %s3108_s22 = scalar_lea.hbm %s4544_s13, 1024 }
  0xbd   : > { %p3109_p1 = scmp.ne.s32.totalorder %s4544_s13, %s3108_s22  ;;  %p3115_p0 = scmp.lt.u32.totalorder %s3108_s22, %s4544_s13 }
  0xbf   : > { %p3111_p3 = pnand %p3109_p1, %p3794_p8 }
  0xc1   : > { %p3112_p13 = pneg %p3111_p3 }
  0xc3   : > { %p3117_p2 = pnand %p3115_p0, %p3112_p13 }
  0xc5   : > { %3120 = shalt.err (!%p3117_p2)
}
  0xc6   : > { %s3121_s28 = scalar_lea.vmem %s624_s19, 1024  ;;  %p3129_p4 = scmp.lt.s32.totalorder %s624_s19, %s624_s19 }
  0xc7   : > { %p3122_p5 = scmp.ne.s32.totalorder %s624_s19, %s3121_s28  ;;  %p3130_p10 = scmp.lt.s32.totalorder %s3121_s28, %s3121_s28 }
  0xc9   : > { %p3124_p7 = pnand %p3122_p5, %p3794_p8  ;;  %p3131_p11 = por %p3130_p10, %p3129_p4 }
  0xcb   : > { %p3125_p9 = pneg %p3124_p7 }
  0xcd   : > { %p3132_p12 = pnand %p3131_p11, %p3125_p9 }
  0xcf   : > { %3135 = shalt.err (!%p3132_p12)
}
  0xd0   : > { %2823 = dma.hbm_to_vmem [thread:$0]  (!%p3778_p6), %s4544_s13, 1024, %s624_s19, [#allocation24], %s4542_s10, %s4542_s10, %s4496_s16  }
  0xd1   : > { %s4545_s15 = sld [smem:[#allocation63_spill]] }
  0xd7   : > { %s3136_s18 = scalar_lea.hbm %s4545_s15, 16 }
  0xd8   : > { %p3137_p1 = scmp.ne.s32.totalorder %s4545_s15, %s3136_s18  ;;  %p3143_p0 = scmp.lt.u32.totalorder %s3136_s18, %s4545_s15 }
  0xda   : > { %p3139_p3 = pnand %p3137_p1, %p3794_p8 }
  0xdc   : > { %p3140_p13 = pneg %p3139_p3 }
  0xde   : > { %p3145_p2 = pnand %p3143_p0, %p3140_p13 }
  0xe0   : > { %3148 = shalt.err (!%p3145_p2)
}
  0xe1   : > { %s3149_s14 = scalar_lea.vmem %s649_s26, 16  ;;  %s3156_s19 = scalar_lea.vmem %s649_s26, 32 }
  0xe2   : > { %p3150_p5 = scmp.ne.s32.totalorder %s649_s26, %s3149_s14  ;;  %p3157_p4 = scmp.lt.s32.totalorder %s649_s26, %s649_s26 }
  0xe3   : > { %p3158_p10 = scmp.lt.s32.totalorder %s3156_s19, %s3149_s14 }
  0xe4   : > { %p3152_p7 = pnand %p3150_p5, %p3794_p8 }
  0xe5   : > { %p3159_p11 = por %p3158_p10, %p3157_p4 }
  0xe6   : > { %p3153_p9 = pneg %p3152_p7 }
  0xe8   : > { %p3160_p12 = pnand %p3159_p11, %p3153_p9 }
  0xea   : > { %3163 = shalt.err (!%p3160_p12)
}
  0xeb   : > { %2829 = dma.hbm_to_vmem [thread:$0]  (!%p3778_p6), %s4545_s15, 16, %s649_s26, [#allocation27]  }
  0xec   : > { %s3619_s23 = smov [#allocation29]   ;;  %s4546_s17 = sld [smem:[#allocation65_spill]] }
  0xed   : > { %s670_s12 = sshll.u32 %s3619_s23, 4  ;;  %s671_s12 = int_to_ptr.vmem [resolvable:$true] %s670_s12 }
  0xf2   : > { %s3164_s25 = scalar_lea.hbm %s4546_s17, 16 }
  0xf3   : > { %p3165_p1 = scmp.ne.s32.totalorder %s4546_s17, %s3164_s25  ;;  %p3171_p0 = scmp.lt.u32.totalorder %s3164_s25, %s4546_s17 }
  0xf5   : > { %p3167_p3 = pnand %p3165_p1, %p3794_p8 }
  0xf7   : > { %p3168_p13 = pneg %p3167_p3 }
  0xf9   : > { %p3173_p2 = pnand %p3171_p0, %p3168_p13 }
  0xfb   : > { %3176 = shalt.err (!%p3173_p2)
}
  0xfc   : > { %s3177_s26 = scalar_lea.vmem %s671_s12, 16  ;;  %s3184_s19 = scalar_lea.vmem %s671_s12, 32 }
  0xfd   : > { %p3178_p5 = scmp.ne.s32.totalorder %s671_s12, %s3177_s26  ;;  %p3185_p4 = scmp.lt.s32.totalorder %s671_s12, %s671_s12 }
  0xfe   : > { %p3186_p10 = scmp.lt.s32.totalorder %s3184_s19, %s3177_s26 }
  0xff   : > { %p3180_p7 = pnand %p3178_p5, %p3794_p8 }
 0x100   : > { %p3187_p11 = por %p3186_p10, %p3185_p4 }
 0x101   : > { %p3181_p9 = pneg %p3180_p7 }
 0x103   : > { %p3188_p12 = pnand %p3187_p11, %p3181_p9 }
 0x105   : > { %3191 = shalt.err (!%p3188_p12)
}
 0x106   : > { %2835 = dma.hbm_to_vmem [thread:$0]  (!%p3778_p6), %s4546_s17, 16, %s671_s12, [#allocation30]  }
 0x107   : > { %s2434_s23 = sadd.s32 4294967294, %s3608_s21   ;;  %s3969_s29 = sadd.s32 1, %s3608_s21  }
 0x108   : > { %4547 = sst [smem:[#allocation46_spill]] %s3969_s29  ;;  %s50_s18 = ssub.s32 %s3608_s21, %s3969_s29 }
 0x109   : > { %s53_s25 = sadd.s32 1, %s3604_s20  ;;  %p51_p1 = scmp.eq.s32.totalorder %s50_s18, 0 }
 0x10a   : > { %p60_p3 = scmp.ne.s32.totalorder %s3604_s20, %s3600_s30  ;;  %p61_p13 = scmp.eq.s32.totalorder %s3608_s21, 0 }
 0x10b   : > { %p66_p0 = scmp.ne.s32.totalorder %s3600_s30, %s3596_s0  ;;  %p4549_p5 = scmp.eq.s32.totalorder %s3762_s2, 0 }
 0x10c   : > { %s3980_s22 = scalar_select %p51_p1, %s3604_s20, %s53_s25  }
 0x10d   : > { %p62_p2 = por %p61_p13, %p60_p3  ;;  %p3984_p7 = por %p4549_p5, %p66_p0 }
 0x10e   : > { %4548 = sst [smem:[#allocation47_spill]] %s3980_s22  ;;  %p478_p9 = scmp.eq.s32.totalorder %s3762_s2, 1 }
 0x10f   : > { %s4550_s8 = scalar_select %p3984_p7, 1, 0 }
 0x110   : > { %p484_p4 = scmp.eq.s32.totalorder %s2434_s23, 1  ;;  %p2869_p10 = scmp.lt.s32.totalorder %s3608_s21, 2 }
 0x111   : > { %s4497_s12 = sand.u32 1, %s3604_s20   ;;  %p3991_p11 = por %p478_p9, %p60_p3 }
 0x112   : > { %p3995_p12 = por %p484_p4, %p66_p0  ;;  %s4001_s26 = sshll.u32 %s4497_s12, 3 }
 0x113   : > { %s4551_s27 = scalar_select %p3991_p11, 1, 0 }
 0x114   : > { %s4552_s14 = scalar_select %p3995_p12, 1, 0 }
 0x115   : > { %s4004_s19 = sshll.u32 %s3608_s21, 7  ;;  %p4006_p1 = pnand %p2869_p10, %p62_p2 }
 0x116   : > { %s710_s1 = sand.u32 1, %s3608_s21   ;;  %s4554_s25 = sld [smem:[#allocation49_spill]] }
 0x117   : > { %s4553_s28 = scalar_select %p4006_p1, 1, 0 }
 0x118   : > { %s714_s12 = scalar_lea.vmem [#allocation5], %s4001_s26  ;;  %s3620_s7 = smov [#allocation10]  }
 0x119   : > { %s721_s5 = sshll.u32 %s714_s12, 4  ;;  %s4020_s9 = sshll.u32 %s3620_s7, 4  ;;  %s4018_s5 = int_to_ptr.vmem [resolvable:$true] %s721_s5  ;;  %s517_s9 = int_to_ptr.vmem [resolvable:$true] %s4020_s9 }
 0x11a   : > { %s4022_s11 = scalar_lea.sflag [#allocation6], %s710_s1  ;;  %p4028_p13 = pneg %p4006_p1 }
 0x11c   : > { %s4015_s16 = scalar_lea.hbm %s4554_s25, %s4004_s19  ;;  %s3197_s15 = scalar_lea.hbm %s4554_s25, 256 }
 0x11d   : > { %s3192_s13 = scalar_lea.hbm %s4015_s16, 128  ;;  %p3198_p5 = scmp.lt.u32.totalorder %s4015_s16, %s4554_s25 }
 0x11e   : > { %p3193_p3 = scmp.ne.s32.totalorder %s4015_s16, %s3192_s13  ;;  %p3199_p9 = scmp.lt.u32.totalorder %s3197_s15, %s3192_s13 }
 0x11f   : > { %s4555_s23 = scalar_select %p4028_p13, 1, 0 }
 0x120   : > { %p3195_p0 = pnand %p4028_p13, %p3193_p3  ;;  %p3200_p4 = por %p3199_p9, %p3198_p5 }
 0x121   : > { %p3201_p10 = scmp.lt.u32.totalorder %s3192_s13, %s4015_s16 }
 0x122   : > { %p3196_p2 = pneg %p3195_p0 }
 0x123   : > { %p3202_p12 = por %p3201_p10, %p3200_p4 }
 0x125   : > { %p3203_p11 = pnand %p3202_p12, %p3196_p2 }
 0x127   : > { %3206 = shalt.err (!%p3203_p11)
}
 0x128   : > { %s3207_s1 = scalar_lea.vmem %s4018_s5, 128  ;;  %s3621_s18 = smov [#allocation5]  }
 0x129   : > { %p3208_p3 = scmp.ne.s32.totalorder %s4018_s5, %s3207_s1  ;;  %s3212_s12 = sshll.u32 %s3621_s18, 4  ;;  %s3213_s12 = int_to_ptr.vmem [resolvable:$false] %s3212_s12 }
 0x12a   : > { %s3214_s17 = scalar_lea.vmem %s3213_s12, 256  ;;  %p3215_p6 = scmp.lt.s32.totalorder %s4018_s5, %s3213_s12 }
 0x12b   : > { %p3210_p0 = pnand %p3208_p3, %p4028_p13  ;;  %p3216_p8 = scmp.lt.s32.totalorder %s3214_s17, %s3207_s1 }
 0x12d   : > { %p3211_p7 = pneg %p3210_p0  ;;  %p3217_p5 = por %p3216_p8, %p3215_p6 }
 0x12f   : > { %p3218_p9 = pnand %p3217_p5, %p3211_p7 }
 0x131   : > { %3221 = shalt.err (!%p3218_p9)
}
 0x132   : > { %2845 = dma.hbm_to_vmem [thread:$0]  (!%p4006_p1), %s4015_s16, 128, %s4018_s5, %s4022_s11  }
 0x133   : > { %s4556_s4 = sld [smem:[#allocation52_spill]]  ;;  %p4557_p6 = scmp.ne.s32.totalorder %s4538_s24, 0 }
 0x139   : > { %s3222_s7 = scalar_lea.hbm %s4556_s4, 512 }
 0x13a   : > { %p3223_p11 = scmp.ne.s32.totalorder %s4556_s4, %s3222_s7  ;;  %p3229_p12 = scmp.lt.u32.totalorder %s3222_s7, %s4556_s4 }
 0x13c   : > { %p3225_p8 = pnand %p3223_p11, %p4557_p6 }
 0x13e   : > { %p3226_p7 = pneg %p3225_p8 }
 0x140   : > { %p3231_p2 = pnand %p3229_p12, %p3226_p7 }
 0x142   : > { %3234 = shalt.err (!%p3231_p2)
}
 0x143   : > { %s3235_s17 = scalar_lea.vmem %s517_s9, 512  ;;  %p3243_p0 = scmp.lt.s32.totalorder %s517_s9, %s517_s9 }
 0x144   : > { %p3236_p4 = scmp.ne.s32.totalorder %s517_s9, %s3235_s17  ;;  %p3244_p5 = scmp.lt.s32.totalorder %s3235_s17, %s3235_s17 }
 0x146   : > { %p3238_p10 = pnand %p3236_p4, %p4557_p6  ;;  %p3245_p9 = por %p3244_p5, %p3243_p0 }
 0x148   : > { %p3239_p3 = pneg %p3238_p10 }
 0x14a   : > { %p3246_p1 = pnand %p3245_p9, %p3239_p3 }
 0x14c   : > { %3249 = shalt.err (!%p3246_p1)
}
 0x14d   : > { %p4558_p11 = scmp.ne.s32.totalorder %s4536_s3, 0  ;;  %s4559_s5 = smov 8  }
 0x14e   : > { %s3622_s13 = smov [#allocation13]   ;;  %s3623_s7 = smov [#allocation16]  }
 0x14f   : > { %2796 = dma.hbm_to_vmem [thread:$0]  (!%p4558_p11), %s4556_s4, 512, %s517_s9, [#allocation9], %s4542_s10, %s4542_s10, %s4559_s5  }
 0x150   : > { %s543_s15 = sshll.u32 %s3622_s13, 4  ;;  %s565_s18 = sshll.u32 %s3623_s7, 4  ;;  %s544_s15 = int_to_ptr.vmem [resolvable:$true] %s543_s15  ;;  %s566_s18 = int_to_ptr.vmem [resolvable:$true] %s565_s18 }
 0x151   : > { %s4560_s6 = sld [smem:[#allocation54_spill]] }
 0x157   : > { %s3250_s17 = scalar_lea.hbm %s4560_s6, 16 }
 0x158   : > { %p3251_p1 = scmp.ne.s32.totalorder %s4560_s6, %s3250_s17  ;;  %p3257_p12 = scmp.lt.u32.totalorder %s3250_s17, %s4560_s6 }
 0x15a   : > { %p3253_p8 = pnand %p3251_p1, %p4557_p6 }
 0x15c   : > { %p3254_p7 = pneg %p3253_p8 }
 0x15e   : > { %p3259_p2 = pnand %p3257_p12, %p3254_p7 }
 0x160   : > { %3262 = shalt.err (!%p3259_p2)
}
 0x161   : > { %s3263_s9 = scalar_lea.vmem %s544_s15, 16  ;;  %s3270_s10 = scalar_lea.vmem %s544_s15, 32 }
 0x162   : > { %p3264_p4 = scmp.ne.s32.totalorder %s544_s15, %s3263_s9  ;;  %p3271_p0 = scmp.lt.s32.totalorder %s544_s15, %s544_s15 }
 0x163   : > { %p3272_p5 = scmp.lt.s32.totalorder %s3270_s10, %s3263_s9 }
 0x164   : > { %p3266_p10 = pnand %p3264_p4, %p4557_p6 }
 0x165   : > { %p3273_p9 = por %p3272_p5, %p3271_p0 }
 0x166   : > { %p3267_p3 = pneg %p3266_p10 }
 0x168   : > { %p3274_p13 = pnand %p3273_p9, %p3267_p3 }
 0x16a   : > { %3277 = shalt.err (!%p3274_p13)
}
 0x16b   : > { %2802 = dma.hbm_to_vmem [thread:$0]  (!%p4558_p11), %s4560_s6, 16, %s544_s15, [#allocation12]  }
 0x16c   : > { %s4561_s25 = sld [smem:[#allocation56_spill]] }
 0x172   : > { %s3278_s13 = scalar_lea.hbm %s4561_s25, 16 }
 0x173   : > { %p3279_p1 = scmp.ne.s32.totalorder %s4561_s25, %s3278_s13  ;;  %p3285_p13 = scmp.lt.u32.totalorder %s3278_s13, %s4561_s25 }
 0x175   : > { %p3281_p8 = pnand %p3279_p1, %p4557_p6 }
 0x177   : > { %p3282_p7 = pneg %p3281_p8 }
 0x179   : > { %p3287_p12 = pnand %p3285_p13, %p3282_p7 }
 0x17b   : > { %3290 = shalt.err (!%p3287_p12)
}
 0x17c   : > { %s3291_s16 = scalar_lea.vmem %s566_s18, 16  ;;  %s3298_s15 = scalar_lea.vmem %s566_s18, 32 }
 0x17d   : > { %p3292_p2 = scmp.ne.s32.totalorder %s566_s18, %s3291_s16  ;;  %p3299_p3 = scmp.lt.s32.totalorder %s566_s18, %s566_s18 }
 0x17e   : > { %p3300_p0 = scmp.lt.s32.totalorder %s3298_s15, %s3291_s16 }
 0x17f   : > { %p3294_p4 = pnand %p3292_p2, %p4557_p6 }
 0x180   : > { %p3301_p5 = por %p3300_p0, %p3299_p3 }
 0x181   : > { %p3295_p10 = pneg %p3294_p4 }
 0x183   : > { %p3302_p9 = pnand %p3301_p5, %p3295_p10 }
 0x185   : > { %3305 = shalt.err (!%p3302_p9)
}
 0x186   : > { %2808 = dma.hbm_to_vmem [thread:$0]  (!%p4558_p11), %s4561_s25, 16, %s566_s18, [#allocation15]  }
 0x187   : > { %s3624_s29 = smov [#allocation19]   ;;  %s3625_s21 = smov [#allocation22]  }
 0x188   : > { %s589_s22 = sshll.u32 %s3624_s29, 4  ;;  %s613_s5 = sshll.u32 %s3625_s21, 4  ;;  %s590_s22 = int_to_ptr.vmem [resolvable:$true] %s589_s22  ;;  %s614_s5 = int_to_ptr.vmem [resolvable:$true] %s613_s5 }
 0x189   : > { %s4562_s1 = sld [smem:[#allocation58_spill]] }
 0x18f   : > { %s3306_s12 = scalar_lea.hbm %s4562_s1, 16 }
 0x190   : > { %p3307_p1 = scmp.ne.s32.totalorder %s4562_s1, %s3306_s12  ;;  %p3313_p13 = scmp.lt.u32.totalorder %s3306_s12, %s4562_s1 }
 0x192   : > { %p3309_p8 = pnand %p3307_p1, %p4557_p6 }
 0x194   : > { %p3310_p7 = pneg %p3309_p8 }
 0x196   : > { %p3315_p12 = pnand %p3313_p13, %p3310_p7 }
 0x198   : > { %3318 = shalt.err (!%p3315_p12)
}
 0x199   : > { %s3319_s18 = scalar_lea.vmem %s590_s22, 16  ;;  %s3326_s10 = scalar_lea.vmem %s590_s22, 32 }
 0x19a   : > { %p3320_p2 = scmp.ne.s32.totalorder %s590_s22, %s3319_s18  ;;  %p3327_p3 = scmp.lt.s32.totalorder %s590_s22, %s590_s22 }
 0x19b   : > { %p3328_p0 = scmp.lt.s32.totalorder %s3326_s10, %s3319_s18 }
 0x19c   : > { %p3322_p4 = pnand %p3320_p2, %p4557_p6 }
 0x19d   : > { %p3329_p5 = por %p3328_p0, %p3327_p3 }
 0x19e   : > { %p3323_p10 = pneg %p3322_p4 }
 0x1a0   : > { %p3330_p9 = pnand %p3329_p5, %p3323_p10 }
 0x1a2   : > { %3333 = shalt.err (!%p3330_p9)
}
 0x1a3   : > { %2814 = dma.hbm_to_vmem [thread:$0]  (!%p4558_p11), %s4562_s1, 16, %s590_s22, [#allocation18]  }
 0x1a4   : > { %s4563_s12 = sld [smem:[#allocation60_spill]] }
 0x1aa   : > { %s3334_s17 = scalar_lea.hbm %s4563_s12, 16 }
 0x1ab   : > { %p3335_p1 = scmp.ne.s32.totalorder %s4563_s12, %s3334_s17  ;;  %p3341_p13 = scmp.lt.u32.totalorder %s3334_s17, %s4563_s12 }
 0x1ad   : > { %p3337_p8 = pnand %p3335_p1, %p4557_p6 }
 0x1af   : > { %p3338_p7 = pneg %p3337_p8 }
 0x1b1   : > { %p3343_p12 = pnand %p3341_p13, %p3338_p7 }
 0x1b3   : > { %3346 = shalt.err (!%p3343_p12)
}
 0x1b4   : > { %s3347_s10 = scalar_lea.vmem %s614_s5, 16  ;;  %s3354_s22 = scalar_lea.vmem %s614_s5, 32 }
 0x1b5   : > { %p3348_p2 = scmp.ne.s32.totalorder %s614_s5, %s3347_s10  ;;  %p3355_p3 = scmp.lt.s32.totalorder %s614_s5, %s614_s5 }
 0x1b6   : > { %p3356_p0 = scmp.lt.s32.totalorder %s3354_s22, %s3347_s10 }
 0x1b7   : > { %p3350_p4 = pnand %p3348_p2, %p4557_p6 }
 0x1b8   : > { %p3357_p5 = por %p3356_p0, %p3355_p3 }
 0x1b9   : > { %p3351_p10 = pneg %p3350_p4 }
 0x1bb   : > { %p3358_p9 = pnand %p3357_p5, %p3351_p10 }
 0x1bd   : > { %3361 = shalt.err (!%p3358_p9)
}
 0x1be   : > { %2820 = dma.hbm_to_vmem [thread:$0]  (!%p4558_p11), %s4563_s12, 16, %s614_s5, [#allocation21]  }
 0x1bf   : > { %s3626_s13 = smov [#allocation25]   ;;  %s3627_s17 = smov [#allocation28]  }
 0x1c0   : > { %s637_s7 = sshll.u32 %s3626_s13, 4  ;;  %s659_s16 = sshll.u32 %s3627_s17, 4  ;;  %s638_s7 = int_to_ptr.vmem [resolvable:$true] %s637_s7  ;;  %s660_s16 = int_to_ptr.vmem [resolvable:$true] %s659_s16 }
 0x1c1   : > { %s4564_s18 = sld [smem:[#allocation62_spill]] }
 0x1c7   : > { %s3362_s1 = scalar_lea.hbm %s4564_s18, 16 }
 0x1c8   : > { %p3363_p1 = scmp.ne.s32.totalorder %s4564_s18, %s3362_s1  ;;  %p3369_p13 = scmp.lt.u32.totalorder %s3362_s1, %s4564_s18 }
 0x1ca   : > { %p3365_p8 = pnand %p3363_p1, %p4557_p6 }
 0x1cc   : > { %p3366_p7 = pneg %p3365_p8 }
 0x1ce   : > { %p3371_p12 = pnand %p3369_p13, %p3366_p7 }
 0x1d0   : > { %3374 = shalt.err (!%p3371_p12)
}
 0x1d1   : > { %s3375_s5 = scalar_lea.vmem %s638_s7, 16  ;;  %s3382_s21 = scalar_lea.vmem %s638_s7, 32 }
 0x1d2   : > { %p3376_p2 = scmp.ne.s32.totalorder %s638_s7, %s3375_s5  ;;  %p3383_p3 = scmp.lt.s32.totalorder %s638_s7, %s638_s7 }
 0x1d3   : > { %p3384_p0 = scmp.lt.s32.totalorder %s3382_s21, %s3375_s5 }
 0x1d4   : > { %p3378_p4 = pnand %p3376_p2, %p4557_p6 }
 0x1d5   : > { %p3385_p5 = por %p3384_p0, %p3383_p3 }
 0x1d6   : > { %p3379_p10 = pneg %p3378_p4 }
 0x1d8   : > { %p3386_p9 = pnand %p3385_p5, %p3379_p10 }
 0x1da   : > { %3389 = shalt.err (!%p3386_p9)
}
 0x1db   : > { %2826 = dma.hbm_to_vmem [thread:$0]  (!%p4558_p11), %s4564_s18, 16, %s638_s7, [#allocation24]  }
 0x1dc   : > { %s4565_s15 = sld [smem:[#allocation64_spill]] }
 0x1e2   : > { %s3390_s9 = scalar_lea.hbm %s4565_s15, 16 }
 0x1e3   : > { %p3391_p1 = scmp.ne.s32.totalorder %s4565_s15, %s3390_s9  ;;  %p3397_p13 = scmp.lt.u32.totalorder %s3390_s9, %s4565_s15 }
 0x1e5   : > { %p3393_p8 = pnand %p3391_p1, %p4557_p6 }
 0x1e7   : > { %p3394_p7 = pneg %p3393_p8 }
 0x1e9   : > { %p3399_p12 = pnand %p3397_p13, %p3394_p7 }
 0x1eb   : > { %3402 = shalt.err (!%p3399_p12)
}
 0x1ec   : > { %s3403_s21 = scalar_lea.vmem %s660_s16, 16  ;;  %s3410_s7 = scalar_lea.vmem %s660_s16, 32 }
 0x1ed   : > { %p3404_p2 = scmp.ne.s32.totalorder %s660_s16, %s3403_s21  ;;  %p3411_p3 = scmp.lt.s32.totalorder %s660_s16, %s660_s16 }
 0x1ee   : > { %p3412_p0 = scmp.lt.s32.totalorder %s3410_s7, %s3403_s21 }
 0x1ef   : > { %p3406_p4 = pnand %p3404_p2, %p4557_p6 }
 0x1f0   : > { %p3413_p5 = por %p3412_p0, %p3411_p3 }
 0x1f1   : > { %p3407_p10 = pneg %p3406_p4 }
 0x1f3   : > { %p3414_p9 = pnand %p3413_p5, %p3407_p10 }
 0x1f5   : > { %3417 = shalt.err (!%p3414_p9)
}
 0x1f6   : > { %2832 = dma.hbm_to_vmem [thread:$0]  (!%p4558_p11), %s4565_s15, 16, %s660_s16, [#allocation27]  }
 0x1f7   : > { %s3628_s4 = smov [#allocation31]   ;;  %s4566_s22 = sld [smem:[#allocation66_spill]] }
 0x1f8   : > { %s681_s1 = sshll.u32 %s3628_s4, 4  ;;  %s682_s1 = int_to_ptr.vmem [resolvable:$true] %s681_s1 }
 0x1fd   : > { %s3418_s29 = scalar_lea.hbm %s4566_s22, 16 }
 0x1fe   : > { %p3419_p1 = scmp.ne.s32.totalorder %s4566_s22, %s3418_s29  ;;  %p3425_p13 = scmp.lt.u32.totalorder %s3418_s29, %s4566_s22 }
 0x200   : > { %p3421_p8 = pnand %p3419_p1, %p4557_p6 }
 0x202   : > { %p3422_p7 = pneg %p3421_p8 }
 0x204   : > { %p3427_p12 = pnand %p3425_p13, %p3422_p7 }
 0x206   : > { %3430 = shalt.err (!%p3427_p12)
}
 0x207   : > { %s3431_s16 = scalar_lea.vmem %s682_s1, 16  ;;  %s3438_s13 = scalar_lea.vmem %s682_s1, 32 }
 0x208   : > { %p3432_p2 = scmp.ne.s32.totalorder %s682_s1, %s3431_s16  ;;  %p3439_p3 = scmp.lt.s32.totalorder %s682_s1, %s682_s1 }
 0x209   : > { %p3440_p0 = scmp.lt.s32.totalorder %s3438_s13, %s3431_s16 }
 0x20a   : > { %p3434_p4 = pnand %p3432_p2, %p4557_p6 }
 0x20b   : > { %p3441_p5 = por %p3440_p0, %p3439_p3 }
 0x20c   : > { %p3435_p10 = pneg %p3434_p4 }
 0x20e   : > { %p3442_p9 = pnand %p3441_p5, %p3435_p10 }
 0x210   : > { %3445 = shalt.err (!%p3442_p9)
}
 0x211   : > { %2838 = dma.hbm_to_vmem [thread:$0]  (!%p4558_p11), %s4566_s22, 16, %s682_s1, [#allocation30]  }
 0x212   : > { %s4567_s9 = sld [smem:[#allocation48_spill]]  ;;  %s696_s29 = scalar_lea.vmem [#allocation2], %s4001_s26 }
 0x213   : > { %s703_s5 = sshll.u32 %s696_s29, 4  ;;  %s4568_s3 = sand.u32 1, %s3604_s20   ;;  %s704_s5 = int_to_ptr.vmem [resolvable:$true] %s703_s5 }
 0x214   : > { %s693_s21 = scalar_lea.sflag [#allocation3], %s4568_s3  ;;  %p4569_p1 = scmp.ne.s32.totalorder %s4555_s23, 0 }
 0x218   : > { %s4204_s10 = scalar_lea.hbm %s4567_s9, %s4004_s19  ;;  %s3451_s13 = scalar_lea.hbm %s4567_s9, 256 }
 0x219   : > { %s3446_s7 = scalar_lea.hbm %s4204_s10, 128  ;;  %p3452_p11 = scmp.lt.u32.totalorder %s4204_s10, %s4567_s9 }
 0x21a   : > { %p3447_p6 = scmp.ne.s32.totalorder %s4204_s10, %s3446_s7  ;;  %p3453_p13 = scmp.lt.u32.totalorder %s3451_s13, %s3446_s7 }
 0x21b   : > { %p3455_p2 = scmp.lt.u32.totalorder %s3446_s7, %s4204_s10 }
 0x21c   : > { %p3449_p8 = pnand %p3447_p6, %p4569_p1  ;;  %p3454_p12 = por %p3453_p13, %p3452_p11 }
 0x21e   : > { %p3450_p7 = pneg %p3449_p8  ;;  %p3456_p4 = por %p3455_p2, %p3454_p12 }
 0x220   : > { %p3457_p10 = pnand %p3456_p4, %p3450_p7 }
 0x222   : > { %3460 = shalt.err (!%p3457_p10)
}
 0x223   : > { %s3461_s4 = scalar_lea.vmem %s704_s5, 128  ;;  %s3629_s24 = smov [#allocation2]  }
 0x224   : > { %p3462_p3 = scmp.ne.s32.totalorder %s704_s5, %s3461_s4  ;;  %s3466_s29 = sshll.u32 %s3629_s24, 4  ;;  %s3467_s29 = int_to_ptr.vmem [resolvable:$false] %s3466_s29 }
 0x225   : > { %s3468_s3 = scalar_lea.vmem %s3467_s29, 256  ;;  %p3469_p9 = scmp.lt.s32.totalorder %s704_s5, %s3467_s29 }
 0x226   : > { %p3464_p0 = pnand %p3462_p3, %p4569_p1  ;;  %p3470_p6 = scmp.lt.s32.totalorder %s3468_s3, %s3461_s4 }
 0x228   : > { %p3465_p5 = pneg %p3464_p0  ;;  %p3471_p8 = por %p3470_p6, %p3469_p9 }
 0x22a   : > { %p3472_p11 = pnand %p3471_p8, %p3465_p5 }
 0x22c   : > { %3475 = shalt.err (!%p3472_p11)
}
 0x22d   : > { %p4570_p13 = scmp.ne.s32.totalorder %s4553_s28, 0  ;;  %s4571_s16 = sld [smem:[#allocation50_spill]] }
 0x22e   : > { %s732_s6 = scalar_lea.vmem [#allocation7], %s4001_s26 }
 0x22f   : > { %2842 = dma.hbm_to_vmem [thread:$0]  (!%p4570_p13), %s4204_s10, 128, %s704_s5, %s693_s21  }
 0x230   : > { %s739_s17 = sshll.u32 %s732_s6, 4  ;;  %s740_s17 = int_to_ptr.vmem [resolvable:$true] %s739_s17 }
 0x233   : > { %s4230_s13 = scalar_lea.hbm %s4571_s16, %s4004_s19  ;;  %s3481_s10 = scalar_lea.hbm %s4571_s16, 256 }
 0x234   : > { %s3476_s4 = scalar_lea.hbm %s4230_s13, 128  ;;  %p3482_p4 = scmp.lt.u32.totalorder %s4230_s13, %s4571_s16 }
 0x235   : > { %p3477_p7 = scmp.ne.s32.totalorder %s4230_s13, %s3476_s4  ;;  %p3483_p10 = scmp.lt.u32.totalorder %s3481_s10, %s3476_s4 }
 0x236   : > { %p3485_p0 = scmp.lt.u32.totalorder %s3476_s4, %s4230_s13 }
 0x237   : > { %p3479_p12 = pnand %p3477_p7, %p4569_p1  ;;  %p3484_p3 = por %p3483_p10, %p3482_p4 }
 0x239   : > { %p3480_p2 = pneg %p3479_p12  ;;  %p3486_p5 = por %p3485_p0, %p3484_p3 }
 0x23b   : > { %p3487_p9 = pnand %p3486_p5, %p3480_p2 }
 0x23d   : > { %3490 = shalt.err (!%p3487_p9)
}
 0x23e   : > { %s3491_s26 = scalar_lea.vmem %s740_s17, 128  ;;  %s3630_s19 = smov [#allocation7]  }
 0x23f   : > { %p3492_p6 = scmp.ne.s32.totalorder %s740_s17, %s3491_s26  ;;  %s3496_s3 = sshll.u32 %s3630_s19, 4  ;;  %s3497_s3 = int_to_ptr.vmem [resolvable:$false] %s3496_s3 }
 0x240   : > { %s3498_s7 = scalar_lea.vmem %s3497_s3, 256  ;;  %p3499_p7 = scmp.lt.s32.totalorder %s740_s17, %s3497_s3 }
 0x241   : > { %p3494_p8 = pnand %p3492_p6, %p4569_p1  ;;  %p3500_p12 = scmp.lt.s32.totalorder %s3498_s7, %s3491_s26 }
 0x243   : > { %p3495_p11 = pneg %p3494_p8  ;;  %p3501_p13 = por %p3500_p12, %p3499_p7 }
 0x245   : > { %p3502_p4 = pnand %p3501_p13, %p3495_p11 }
 0x247   : > { %3505 = shalt.err (!%p3502_p4)
}
 0x248   : > { %p4572_p10 = scmp.ne.s32.totalorder %s4553_s28, 0  ;;  %s4573_s1 = sld [smem:[#allocation45_spill]] }
 0x24a   : > { %2848 = dma.hbm_to_vmem [thread:$0]  (!%p4572_p10), %s4230_s13, 128, %s740_s17, %s4022_s11  }
 0x24e   : > { %p4574_p2 = scmp.ne.s32.totalorder %s4573_s1, 0 }
 0x24f   : > { %s4254_s23 = sand.u32 (!%p4574_p2), 1, %s3600_s30   ;;  %p4575_p1 = scmp.ne.s32.totalorder (!%p4574_p2), %s4550_s8, 0 }
 0x250   : > { %748 = sbr.rel (%p4574_p2) target bundleno = 3145 (0xc49), region = 96  ;;  %s4257_s6 = sshll.u32 (!%p4574_p2), %s4254_s23, 3 }
 0x251   : > { %s751_s4 = scalar_lea.sflag (!%p4574_p2), [#allocation3], %s4254_s23  ;;  %s754_s24 = scalar_lea.vmem (!%p4574_p2), [#allocation2], %s4257_s6 }
 0x257   : > { %3551 = dma.done.wait (%p4575_p1), %s751_s4, 128  }
 0x258   : > { %3553 = vsyncadd (%p4575_p1), %s751_s4, 4294967168  ;;  %s759_s11 = sand.u32 1, %s3762_s2   ;;  %s763_s13 = scalar_lea.vmem [#allocation5], %s4257_s6 }
 0x259   : > { %s760_s28 = scalar_lea.sflag [#allocation6], %s759_s11 }
 0x25a   : > { %3555 = dma.done.wait (%p4575_p1), %s760_s28, 256  }
 0x25b   : > { %3557 = vsyncadd (%p4575_p1), %s760_s28, 4294967040  ;;  %s772_s17 = scalar_lea.vmem [#allocation7], %s4257_s6  ;;  %p4576_p13 = scmp.eq.s32.totalorder %s3762_s2, 0 }
 0x25d   : > { %3559 = dma.done.wait (%p4576_p13), [#allocation9], 1024   ;;  %p4577_p3 = pmov %p4576_p13 }
 0x25f   : > { %3561 = vsyncadd (%p4577_p3), [#allocation9], 4294966272  ;;  %p4578_p0 = pmov %p4577_p3 }
 0x261   : > { %3563 = dma.done.wait (%p4578_p0), [#allocation12], 528   ;;  %p4579_p5 = pmov %p4578_p0 }
 0x262   : > { %p4580_p9 = pmov %p4578_p0 }
 0x263   : > { %3565 = vsyncadd (%p4579_p5), [#allocation12], 4294966768 }
 0x264   : > { %3567 = dma.done.wait (%p4580_p9), [#allocation15], 32   ;;  %p4581_p6 = pmov %p4578_p0 }
 0x265   : > { %p4582_p8 = pmov %p4578_p0 }
 0x266   : > { %3569 = vsyncadd (%p4581_p6), [#allocation15], 4294967264 }
 0x267   : > { %3571 = dma.done.wait (%p4582_p8), [#allocation18], 528   ;;  %p4583_p11 = pmov %p4578_p0 }
 0x268   : > { %p4584_p7 = pmov %p4578_p0 }
 0x269   : > { %3573 = vsyncadd (%p4583_p11), [#allocation18], 4294966768 }
 0x26a   : > { %3575 = dma.done.wait (%p4584_p7), [#allocation21], 528   ;;  %p4585_p12 = pmov %p4578_p0 }
 0x26b   : > { %p4586_p4 = pmov %p4578_p0 }
 0x26c   : > { %3577 = vsyncadd (%p4585_p12), [#allocation21], 4294966768 }
 0x26d   : > { %3579 = dma.done.wait (%p4586_p4), [#allocation24], 1040   ;;  %p4587_p10 = pmov %p4578_p0 }
 0x26e   : > { %p4588_p2 = pmov %p4578_p0 }
 0x26f   : > { %3581 = vsyncadd (%p4587_p10), [#allocation24], 4294966256 }
 0x270   : > { %3583 = dma.done.wait (%p4588_p2), [#allocation27], 32   ;;  %p4589_p1 = pmov %p4578_p0 }
 0x271   : > { %p4590_p13 = pmov %p4578_p0 }
 0x272   : > { %3585 = vsyncadd (%p4589_p1), [#allocation27], 4294967264 }
 0x273   : > { %3587 = dma.done.wait (%p4590_p13), [#allocation30], 32   ;;  %p4591_p3 = pmov %p4578_p0 }
 0x274   : > { %v3631_v0 = vmov 0.0|0.0   ;;  %vm3632_vm0 = vmmov 0   ;;  %v3633_v1 = vmov 0.0   ;;  %v904_v2 = vld [vmem:[#allocation8] sm:$0xff]  ;;  %v905_v3 = vld [vmem:[#allocation8 + $0x8] sm:$0xff]  ;;  %v906_v4 = vld [vmem:[#allocation8 + $0x10] sm:$0xff] }
 0x275   : > { %3589 = vsyncadd (%p4591_p3), [#allocation30], 4294967264  ;;  %2676 = vmatprep.subr.bf16.mxu1 %v3631_v0  ;;  %2570 = vmatprep.mubr.msk.f32.mxu1 %vm3632_vm0, %v3633_v1  ;;  %v2677_v5 = vpack.c.bf16 %v905_v3, %v904_v2  ;;  %v907_v6 = vld [vmem:[#allocation8 + $0x18] sm:$0xff]  ;;  %v989_v8 = vld [vmem:[#allocation10] sm:$0xff]  ;;  %vm915_vm1 = vcmask 261120   ;;  %vm1157_vm2 = vcmask 64512  }
 0x276   : > { %2688 = vmatprep.subr.bf16.mxu0 %v3631_v0  ;;  %2592 = vmatprep.mubr.msk.f32.mxu0 %vm3632_vm0, %v3633_v1  ;;  %v2680_v7 = vpack.c.bf16 %v907_v6, %v906_v4  ;;  %v990_v9 = vld [vmem:[#allocation10 + $0x8] sm:$0xff]  ;;  %v901_v10 = vld [vmem:[%s754_s24] sm:$0xff]  ;;  %v1073_v16 = vld [vmem:[#allocation11] sm:$0xff]  ;;  %s3634_s8 = smov 112   ;;  %s3635_s29 = smov 120   ;;  %vm1827_vm3 = vcmask 130048  }
 0x277   : > { %2678 = vmatpush3.bf16.msra.mxu1 %v2677_v5  ;;  %v2683_v11 = vpack.c.bf16 %v990_v9, %v989_v8  ;;  %v991_v12 = vld [vmem:[#allocation10 + $0x10] sm:$0xff]  ;;  %v992_v13 = vld [vmem:[#allocation10 + $0x18] sm:$0xff]  ;;  %v902_v15 = vld [vmem:[%s763_s13] sm:$0xff]  ;;  %s3636_s10 = smov 104   ;;  %s3637_s5 = smov 8   ;;  %vm1829_vm4 = vcmask 195584  }
 0x278   : > { %2679 = vmatprep.subr.bf16.mxu1 %v3631_v0  ;;  %v2686_v14 = vpack.c.bf16 %v992_v13, %v991_v12  ;;  %v1074_v17 = vld [vmem:[#allocation11 + $0x8] sm:$0xff]  ;;  %v1075_v18 = vld [vmem:[#allocation11 + $0x10] sm:$0xff]  ;;  %v1076_v20 = vld [vmem:[#allocation11 + $0x18] sm:$0xff]  ;;  %s3638_s21 = smov 16   ;;  %s3639_s26 = smov 24   ;;  %vm2050_vm5 = vcmask 523264  }
 0x279   : > { %v2689_v19 = vpack.c.bf16 %v1074_v17, %v1073_v16  ;;  %v2692_v21 = vpack.c.bf16 %v1076_v20, %v1075_v18  ;;  %v4327_v22 = vld [vmem:[%s772_s17] sm:$0xff]  ;;  %v2482_v25 = vld [vmem:[#allocation14] ss:$0 sm:$0xff]  ;;  %v2480_v29 = vld [vmem:[#allocation13] ss:$0 sm:$0xff]  ;;  %s2509_s19 = sshll.u32 %s3762_s2, 7 }
 0x27a   : > { %v2484_v31 = vld [vmem:[#allocation16] ss:$0 sm:$0xff]  ;;  %s900_s3 = scalar_lea.vmem [#allocation32], %s4257_s6  ;;  %s4592_s24 = sld [smem:[#allocation67_spill]] }
 0x27b   : > { %2681 = vmatpush3.bf16.msra.mxu1 %v2680_v7  ;;  %2690 = vmatpush3.bf16.msra.mxu0 %v2689_v19  ;;  %s2169_s7 = sshll.u32 %s900_s3, 4  ;;  %s2156_s28 = scalar_lea.sflag [#allocation4], %s4254_s23  ;;  %s4416_s7 = int_to_ptr.vmem [resolvable:$true] %s2169_s7 }
 0x27c   : > { %2682 = vmatprep.subr.bf16.mxu1 %v3631_v0  ;;  %2691 = vmatprep.subr.bf16.mxu0 %v3631_v0  ;;  %s3506_s13 = scalar_lea.vmem %s4416_s7, 128  ;;  %p4593_p5 = scmp.ne.s32.totalorder %s4551_s27, 0 }
 0x27d   : > { %p3507_p0 = scmp.ne.s32.totalorder %s4416_s7, %s3506_s13  ;;  %s3640_s2 = smov [#allocation32]  }
 0x27e   : > { %2571 = vmatmul.mubr.msk.f32.vlgmr.msra.gmra.mrb[0].mxu1 %vm915_vm1, %v901_v10  ;;  %s3510_s6 = sshll.u32 %s3640_s2, 4  ;;  %s3511_s6 = int_to_ptr.vmem [resolvable:$false] %s3510_s6 }
 0x27f   : > { %2684 = vmatpush3.bf16.msra.mxu1 %v2683_v11  ;;  %2581 = vmatprep.mubr.msk.f32.mxu1 %vm3632_vm0, %v3633_v1  ;;  %p3508_p9 = pnand %p3507_p0, %p4593_p5  ;;  %s3512_s17 = scalar_lea.vmem %s3511_s6, 256 }
 0x280   : > { %2685 = vmatprep.subr.bf16.mxu1 %v3631_v0  ;;  %2693 = vmatpush3.bf16.msra.mxu0 %v2692_v21  ;;  %s4414_s11 = scalar_lea.hbm %s4592_s24, %s2509_s19  ;;  %p3513_p8 = scmp.lt.s32.totalorder %s4416_s7, %s3511_s6 }
 0x281   : > { %2605 = vmatprep.subr.mxu0 %v3633_v1  ;;  %p3509_p6 = pneg %p3508_p9  ;;  %p3514_p11 = scmp.lt.s32.totalorder %s3512_s17, %s3506_s13 }
 0x283   : > { %2687 = vmatpush3.bf16.msra.mxu1 %v2686_v14  ;;  %2593 = vmatmul.mubr.msk.f32.vlgmr.msra.gmra.mrb[0].mxu0 %vm915_vm1, %v4327_v22  ;;  %p3515_p7 = por %p3514_p11, %p3513_p8 }
 0x284   : > { %2595 = vmatprep.subr.mxu1 %v3633_v1  ;;  %2607 = vmatprep.mubr.msk.f32.mxu0 %vm3632_vm0, %v3633_v1 }
 0x285   : > { %p3516_p12 = pnand %p3515_p7, %p3509_p6 }
 0x286   : > { %2582 = vmatmul.mubr.msk.f32.vlgmr.msra.gmra.mrb[2].mxu1 %vm915_vm1, %v902_v15 }
 0x287   : > { %2597 = vmatprep.mubr.msk.f32.mxu1 %vm3632_vm0, %v3633_v1 }
 0x351   : > { %v985_v23 = vpop.f32.mrb[0].mxu1 }
 0x352   : > { %v2572_v24 = vpop.f32.mrb[1].mxu1  ;;  %v986_v30 = vadd.f32 %v2480_v29, %v985_v23  ;;  %v1831_v29 = vld [vmem:[#allocation17] sm:$0xff] }
 0x356   : > { %v1153_v32 = vpop.f32.mrb[0].mxu0 }
 0x357   : > { %v4345_v33 = vadd.f32 %v2484_v31, %v1153_v32  ;;  %v2594_v34 = vpop.f32.mrb[1].mxu0  ;;  %v1833_v32 = vld [vmem:[#allocation17 + $0x10] sm:$0xff] }
 0x359   : > { %v1069_v26 = vpop.f32.mrb[2].mxu1 }
 0x35a   : > { %v1070_v27 = vadd.f32 %v2482_v25, %v1069_v26  ;;  %v2583_v28 = vpop.f32.mrb[3].mxu1 }
 0x35c   : > { %1486 = vrot.lane.b32.xlu1 %v1070_v27, %s3634_s8  ;;  %1320 = vrot.lane.b32.xlu0 %v1070_v27, %s3635_s29 }
 0x35d   : > { %2596 = vmatpush3.xpose.msk.msra.mxu1 %vm1157_vm2, %v1070_v27 }
 0x35e   : > { %2600 = vmatprep.subr.mxu1 %v3633_v1 }
 0x360   : > { %2598 = vmatmul.mubr.msk.f32.vlgmr.msra.gmra.mrb[4].mxu1 %vm1157_vm2, %v986_v30  ;;  %1484 = vrot.lane.b32.xlu1 %v986_v30, %s3634_s8 }
 0x361   : > { %1318 = vrot.lane.b32.xlu0 %v986_v30, %s3635_s29  ;;  %2602 = vmatprep.mubr.msk.f32.mxu1 %vm3632_vm0, %v3633_v1 }
 0x362   : > { %2601 = vmatpush3.msra.mxu1 %v4345_v33 }
 0x363   : > { %2610 = vmatprep.subr.mxu1 %v3633_v1 }
 0x364   : > { %1649 = vrot.lane.b32.xlu1 %v986_v30, %s3636_s10  ;;  %v1832_v30 = vld [vmem:[#allocation17 + $0x8] sm:$0xff] }
 0x365   : > { %1651 = vrot.lane.b32.xlu0 %v1070_v27, %s3636_s10  ;;  %v2695_v31 = vpack.c.bf16 %v1832_v30, %v1831_v29 }
 0x3ce   : > { %v1321_v35 = vpop.permute.xlu0 %1320  ;;  %v1487_v36 = vpop.permute.xlu1 %1486 }
 0x3cf   : > { %2606 = vmatpush3.xpose.msk.msra.mxu0 %vm1157_vm2, %v1321_v35 }
 0x3d0   : > { %2615 = vmatprep.subr.mxu0 %v3633_v1 }
 0x3d2   : > { %v1485_v38 = vpop.permute.xlu1 %1484 }
 0x3d3   : > { %v1319_v37 = vpop.permute.xlu0 %1318 }
 0x3d4   : > { %2608 = vmatmul.mubr.msk.f32.vlgmr.msra.gmra.mrb[2].mxu0 %vm1157_vm2, %v1319_v37 }
 0x3d5   : > { %2616 = vmatpush3.xpose.msk.msra.mxu0 %vm1157_vm2, %v1487_v36  ;;  %2617 = vmatprep.mubr.msk.f32.mxu0 %vm3632_vm0, %v3633_v1 }
 0x3d6   : > { %2625 = vmatprep.subr.mxu0 %v3633_v1  ;;  %v1650_v40 = vpop.permute.xlu1 %1649 }
 0x3d7   : > { %v1652_v39 = vpop.permute.xlu0 %1651 }
 0x3d8   : > { %2618 = vmatmul.mubr.msk.f32.vlgmr.msra.gmra.mrb[4].mxu0 %vm1157_vm2, %v1485_v38 }
 0x3d9   : > { %2626 = vmatpush3.xpose.msk.msra.mxu0 %vm1157_vm2, %v1652_v39  ;;  %2627 = vmatprep.mubr.msk.f32.mxu0 %vm3632_vm0, %v3633_v1 }
 0x3da   : > { %2694 = vmatprep.subr.bf16.mxu0 %v3631_v0 }
 0x3dc   : > { %2628 = vmatmul.mubr.msk.f32.vlgmr.msra.gmra.mrb[6].mxu0 %vm1157_vm2, %v1650_v40 }
 0x3dd   : > { %2643 = vmatprep.mubr.msk.f32.mxu0 %vm3632_vm0, %v3633_v1  ;;  %2696 = vmatpush3.bf16.msra.mxu0 %v2695_v31  ;;  %v2504_v31 = vld [vmem:[#allocation25] ss:$0 sm:$0xff] }
 0x3de   : > { %2697 = vmatprep.subr.bf16.mxu0 %v3631_v0 }
 0x433   : > { %v1230_v41 = vpop.f32.mrb[4].mxu1 }
 0x434   : > { %v2599_v42 = vpop.f32.mrb[5].mxu1  ;;  %v1234_v43 = vsel %vm1157_vm2, %v1230_v41, -inf }
 0x435   : > { %1235 = vmax.xlane.f32.xlu0 %v1234_v43 }
 0x4a7   : > { %v1392_v44 = vpop.f32.mrb[2].mxu0 }
 0x4a8   : > { %v2609_v45 = vpop.f32.mrb[3].mxu0  ;;  %v1396_v46 = vsel %vm1157_vm2, %v1392_v44, -inf }
 0x4a9   : > { %1397 = vmax.xlane.f32.xlu1 %v1396_v46 }
 0x4ab   : > { %v1558_v47 = vpop.f32.mrb[4].mxu0 }
 0x4ac   : > { %v2619_v48 = vpop.f32.mrb[5].mxu0  ;;  %v1562_v49 = vsel %vm1157_vm2, %v1558_v47, -inf }
 0x4ad   : > { %1563 = vmax.xlane.f32.xlu0 %v1562_v49 }
 0x4af   : > { %v1723_v50 = vpop.f32.mrb[6].mxu0 }
 0x4b0   : > { %v2629_v51 = vpop.f32.mrb[7].mxu0  ;;  %v1727_v52 = vsel %vm1157_vm2, %v1723_v50, -inf }
 0x4b1   : > { %1728 = vmax.xlane.f32.xlu0 %v1727_v52 }
 0x4ba   : > { %1408 = vrot.lane.b32.xlu1 %v4345_v33, %s3635_s29 }
 0x4c2   : > { %v1236_v53 = vpop.xlane.xlu0 %1235 }
 0x4c3   : > { %v1237_v54 = vsub.f32 %v1230_v41, %v1236_v53 }
 0x4c5   : > { %v1238_v55 = vmul.f32 1.442695, %v1237_v54 }
 0x4c7   : > { %2946 = vpow2.f32 %v1238_v55 }
 0x4d1   : > { %v2947_v56 = vpop.eup %2946 }
 0x4d2   : > { %v1240_v57 = vsel %vm1157_vm2, %v2947_v56, 0.0 }
 0x4de   : > { %1241 = vadd.xlane.f32.xlu1 %v1240_v57 }
 0x536   : > { %v1398_v58 = vpop.xlane.xlu1 %1397 }
 0x537   : > { %v1399_v59 = vsub.f32 %v1392_v44, %v1398_v58  ;;  %v1946_v58 = vld [vmem:[#allocation20] sm:$0xff] }
 0x539   : > { %v1400_v60 = vmul.f32 1.442695, %v1399_v59  ;;  %v1947_v59 = vld [vmem:[#allocation20 + $0x8] sm:$0xff] }
 0x53a   : > { %v1564_v61 = vpop.xlane.xlu0 %1563  ;;  %v1409_v11 = vpop.permute.xlu1 %1408 }
 0x53b   : > { %2948 = vpow2.f32 %v1400_v60  ;;  %v1565_v62 = vsub.f32 %v1558_v47, %v1564_v61  ;;  %v2498_v47 = vld [vmem:[#allocation19] ss:$0 sm:$0xff]  ;;  %v2701_v60 = vpack.c.bf16 %v1947_v59, %v1946_v58 }
 0x53c   : > { %v1949_v61 = vld [vmem:[#allocation20 + $0x18] sm:$0xff] }
 0x53d   : > { %v1566_v63 = vmul.f32 1.442695, %v1565_v62 }
 0x53e   : > { %v1729_v2 = vpop.xlane.xlu0 %1728 }
 0x53f   : > { %2950 = vpow2.f32 %v1566_v63  ;;  %v1730_v3 = vsub.f32 %v1723_v50, %v1729_v2 }
 0x541   : > { %v1731_v4 = vmul.f32 1.442695, %v1730_v3 }
 0x543   : > { %2952 = vpow2.f32 %v1731_v4  ;;  %v2500_v4 = vld [vmem:[#allocation26] ss:$0 sm:$0xff] }
 0x545   : > { %v2949_v5 = vpop.eup %2948 }
 0x546   : > { %v1402_v6 = vsel %vm1157_vm2, %v2949_v5, 0.0 }
 0x547   : > { %1403 = vadd.xlane.f32.xlu0 %v1402_v6  ;;  %v2501_v6 = vld [vmem:[#allocation28] ss:$0 sm:$0xff] }
 0x549   : > { %v2951_v7 = vpop.eup %2950 }
 0x54a   : > { %v1568_v8 = vsel %vm1157_vm2, %v2951_v7, 0.0 }
 0x54b   : > { %1569 = vadd.xlane.f32.xlu1 %v1568_v8 }
 0x54d   : > { %v2953_v9 = vpop.eup %2952 }
 0x54e   : > { %v1733_v10 = vsel %vm1157_vm2, %v2953_v9, 0.0 }
 0x54f   : > { %1734 = vadd.xlane.f32.xlu0 %v1733_v10  ;;  %v2036_v10 = vld [vmem:[#allocation23 + $0x8] sm:$0xff] }
 0x55c   : > { %1738 = vrot.lane.b32.xlu1 %v4345_v33, %s3636_s10 }
 0x565   : > { %1573 = vrot.lane.b32.xlu0 %v4345_v33, %s3634_s8  ;;  %v1834_v33 = vld [vmem:[#allocation17 + $0x18] sm:$0xff] }
 0x566   : > { %v2698_v34 = vpack.c.bf16 %v1834_v33, %v1833_v32 }
 0x568   : > { %2699 = vmatpush3.bf16.msra.mxu0 %v2698_v34 }
 0x569   : > { %2706 = vmatprep.subr.bf16.mxu0 %v3631_v0 }
 0x56b   : > { %v1242_v12 = vpop.xlane.xlu1 %1241 }
 0x56c   : > { %2954 = vrcp.f32 %v1242_v12  ;;  %v2037_v12 = vld [vmem:[#allocation23 + $0x10] sm:$0xff] }
 0x576   : > { %v2955_v13 = vpop.eup %2954 }
 0x577   : > { %v1244_v14 = vmul.f32 %v2955_v13, %v2947_v56  ;;  %v2038_v13 = vld [vmem:[#allocation23 + $0x18] sm:$0xff] }
 0x579   : > { %2603 = vmatmul.mubr.msk.f32.vlgmr.msra.gmra.mrb[6].mxu1 %vm1157_vm2, %v1244_v14  ;;  %v2710_v14 = vpack.c.bf16 %v2038_v13, %v2037_v12 }
 0x57a   : > { %2611 = vmatpush3.msra.mxu1 %v1409_v11  ;;  %2612 = vmatprep.mubr.msk.f32.mxu1 %vm3632_vm0, %v3633_v1 }
 0x57b   : > { %2620 = vmatprep.subr.mxu1 %v3633_v1 }
 0x5d4   : > { %v1404_v15 = vpop.xlane.xlu0 %1403 }
 0x5d5   : > { %2956 = vrcp.f32 %v1404_v15  ;;  %v2039_v15 = vld [vmem:[#allocation23 + $0x20] sm:$0xff] }
 0x5d8   : > { %v1570_v16 = vpop.xlane.xlu1 %1569 }
 0x5d9   : > { %2958 = vrcp.f32 %v1570_v16  ;;  %v2040_v16 = vld [vmem:[#allocation23 + $0x28] sm:$0xff] }
 0x5dc   : > { %v1735_v17 = vpop.xlane.xlu0 %1734  ;;  %v1739_v24 = vpop.permute.xlu1 %1738 }
 0x5dd   : > { %2960 = vrcp.f32 %v1735_v17  ;;  %v2713_v17 = vpack.c.bf16 %v2040_v16, %v2039_v15 }
 0x5df   : > { %v2957_v18 = vpop.eup %2956 }
 0x5e0   : > { %v1406_v19 = vmul.f32 %v2957_v18, %v2949_v5  ;;  %v1574_v20 = vpop.permute.xlu0 %1573  ;;  %v2041_v18 = vld [vmem:[#allocation23 + $0x30] sm:$0xff] }
 0x5e2   : > { %2613 = vmatmul.mubr.msk.f32.vlgmr.msra.gmra.mrb[8].mxu1 %vm1157_vm2, %v1406_v19  ;;  %v2042_v19 = vld [vmem:[#allocation23 + $0x38] sm:$0xff] }
 0x5e3   : > { %v2959_v21 = vpop.eup %2958  ;;  %2621 = vmatpush3.msra.mxu1 %v1574_v20  ;;  %2622 = vmatprep.mubr.msk.f32.mxu1 %vm3632_vm0, %v3633_v1  ;;  %v2716_v20 = vpack.c.bf16 %v2042_v19, %v2041_v18 }
 0x5e4   : > { %v1572_v23 = vmul.f32 %v2959_v21, %v2951_v7  ;;  %2630 = vmatprep.subr.mxu1 %v3633_v1  ;;  %v2502_v21 = vld [vmem:[#allocation22] ss:$0 sm:$0xff] }
 0x5e6   : > { %2623 = vmatmul.mubr.msk.f32.vlgmr.msra.gmra.mrb[10].mxu1 %vm1157_vm2, %v1572_v23 }
 0x5e7   : > { %v2961_v25 = vpop.eup %2960  ;;  %2631 = vmatpush3.msra.mxu1 %v1739_v24  ;;  %2632 = vmatprep.mubr.msk.f32.mxu1 %vm3632_vm0, %v3633_v1 }
 0x5e8   : > { %v1737_v26 = vmul.f32 %v2961_v25, %v2953_v9  ;;  %2700 = vmatprep.subr.bf16.mxu1 %v3631_v0  ;;  %v2035_v9 = vld [vmem:[#allocation23] sm:$0xff] }
 0x5e9   : > { %v2707_v11 = vpack.c.bf16 %v2036_v10, %v2035_v9 }
 0x5ea   : > { %2633 = vmatmul.mubr.msk.f32.vlgmr.msra.gmra.mrb[12].mxu1 %vm1157_vm2, %v1737_v26 }
 0x5eb   : > { %2654 = vmatprep.mubr.msk.f32.mxu1 %vm3632_vm0, %v3633_v1  ;;  %2702 = vmatpush3.bf16.msra.mxu1 %v2701_v60 }
 0x5ec   : > { %2703 = vmatprep.subr.bf16.mxu1 %v3631_v0 }
 0x64c   : > { %v1314_v27 = vpop.f32.mrb[6].mxu1 }
 0x64d   : > { %v2604_v28 = vpop.f32.mrb[7].mxu1 }
 0x6b5   : > { %v1480_v35 = vpop.f32.mrb[8].mxu1 }
 0x6b6   : > { %1815 = vrot.lane.b32.xlu1 %v1480_v35, %s3637_s5  ;;  %v2614_v36 = vpop.f32.mrb[9].mxu1 }
 0x6b9   : > { %v1645_v37 = vpop.f32.mrb[10].mxu1 }
 0x6ba   : > { %1819 = vrot.lane.b32.xlu0 %v1645_v37, %s3638_s21  ;;  %v2624_v38 = vpop.f32.mrb[11].mxu1 }
 0x6bd   : > { %v1810_v39 = vpop.f32.mrb[12].mxu1 }
 0x6be   : > { %1823 = vrot.lane.b32.xlu1 %v1810_v39, %s3639_s26  ;;  %v2634_v40 = vpop.f32.mrb[13].mxu1 }
 0x728   : > { %v1816_v41 = vpop.permute.xlu1 %1815 }
 0x729   : > { %v1826_v43 = vsel %vm1157_vm2, %v1314_v27, %v1816_v41 }
 0x72c   : > { %v1820_v42 = vpop.permute.xlu0 %1819 }
 0x72d   : > { %v1828_v44 = vsel %vm1827_vm3, %v1826_v43, %v1820_v42 }
 0x730   : > { %v1824_v45 = vpop.permute.xlu1 %1823 }
 0x731   : > { %v1830_v46 = vsel %vm1829_vm4, %v1828_v44, %v1824_v45  ;;  %v2506_v45 = vld [vmem:[#allocation29] ss:$0 sm:$0xff] }
 0x732   : > { %2644 = vmatmul.mubr.msk.f32.vlgmr.msra.gmra.mrb[8].mxu0 %vm915_vm1, %v1830_v46 }
 0x733   : > { %2673 = vmatprep.mubr.msk.f32.mxu0 %vm3632_vm0, %v3633_v1  ;;  %v1948_v1 = vld [vmem:[#allocation20 + $0x10] sm:$0xff]  ;;  %2708 = vmatpush3.bf16.msra.mxu0 %v2707_v11 }
 0x734   : > { %v2704_v62 = vpack.c.bf16 %v1949_v61, %v1948_v1  ;;  %2709 = vmatprep.subr.bf16.mxu0 %v3631_v0 }
 0x736   : > { %2705 = vmatpush3.bf16.msra.mxu1 %v2704_v62 }
 0x737   : > { %2711 = vmatpush3.bf16.msra.mxu0 %v2710_v14 }
 0x738   : > { %2712 = vmatprep.subr.bf16.mxu0 %v3631_v0 }
 0x73b   : > { %2714 = vmatpush3.bf16.msra.mxu0 %v2713_v17 }
 0x73c   : > { %2715 = vmatprep.subr.bf16.mxu0 %v3631_v0 }
 0x73f   : > { %2717 = vmatpush3.bf16.msra.mxu0 %v2716_v20 }
 0x805   : > { %v1911_v48 = vpop.f32.mrb[8].mxu0 }
 0x806   : > { %v1912_v49 = vadd.f32 %v2498_v47, %v1911_v48  ;;  %v2645_v50 = vpop.f32.mrb[9].mxu0  ;;  %v2507_v47 = vld [vmem:[#allocation31] ss:$0 sm:$0xff] }
 0x808   : > { %v1915_v51 = vadd.f32 %v1912_v49, %v4327_v22 }
 0x80a   : > { %v1918_v52 = vsel %vm915_vm1, %v1915_v51, 0.0 }
 0x80b   : > { %1919 = vadd.xlane.f32.xlu0 %v1918_v52 }
 0x898   : > { %v1920_v53 = vpop.xlane.xlu0 %1919 }
 0x899   : > { %v1922_v54 = vmul.f32 0.03125, %v1920_v53 }
 0x89b   : > { %v1923_v55 = vsub.f32 %v1915_v51, %v1922_v54 }
 0x89d   : > { %v1924_v56 = vmul.f32 %v1923_v55, %v1923_v55 }
 0x89f   : > { %v1925_v57 = vsel %vm915_vm1, %v1924_v56, 0.0 }
 0x8a0   : > { %1926 = vadd.xlane.f32.xlu1 %v1925_v57 }
 0x92d   : > { %v1927_v22 = vpop.xlane.xlu1 %1926 }
 0x92e   : > { %v1928_v63 = vmul.f32 0.03125, %v1927_v22 }
 0x930   : > { %v1929_v2 = vadd.f32 1e-05, %v1928_v63 }
 0x932   : > { %2962 = vrsqrt.f32 %v1929_v2 }
 0x93c   : > { %v2963_v3 = vpop.eup %2962 }
 0x93d   : > { %v1931_v5 = vmul.f32 %v2963_v3, %v1923_v55 }
 0x93f   : > { %v1938_v7 = vmul.f32 %v2500_v4, %v1931_v5 }
 0x941   : > { %v1945_v8 = vadd.f32 %v2501_v6, %v1938_v7 }
 0x943   : > { %2655 = vmatmul.mubr.msk.f32.vlgmr.msra.gmra.mrb[14].mxu1 %vm915_vm1, %v1945_v8 }
 0xa16   : > { %v2026_v23 = vpop.f32.mrb[14].mxu1 }
 0xa17   : > { %v2027_v24 = vadd.f32 %v2502_v21, %v2026_v23  ;;  %v2656_v25 = vpop.f32.mrb[15].mxu1 }
 0xa19   : > { %v2031_v26 = vmul.f32 0.70710677, %v2027_v24  ;;  %v2030_v28 = vmul.f32 0.5, %v2027_v24 }
 0xa1b   : > { %2964 = verf.f32 %v2031_v26 }
 0xa25   : > { %v2965_v27 = vpop.eup %2964 }
 0xa26   : > { %v2033_v29 = vadd.f32 1.0, %v2965_v27 }
 0xa28   : > { %v2034_v30 = vmul.f32 %v2033_v29, %v2030_v28 }
 0xa2a   : > { %2674 = vmatmul.mubr.msk.f32.vlgmr.msra.gmra.mrb[10].mxu0 %vm2050_vm5, %v2034_v30 }
 0xafd   : > { %v2120_v32 = vpop.f32.mrb[10].mxu0 }
 0xafe   : > { %v2121_v33 = vadd.f32 %v2504_v31, %v2120_v32  ;;  %v2675_v0 = vpop.f32.mrb[11].mxu0 }
 0xb00   : > { %v2124_v34 = vadd.f32 %v2121_v33, %v1945_v8 }
 0xb02   : > { %v2127_v35 = vsel %vm915_vm1, %v2124_v34, 0.0 }
 0xb03   : > { %2128 = vadd.xlane.f32.xlu0 %v2127_v35 }
 0xb90   : > { %v2129_v36 = vpop.xlane.xlu0 %2128 }
 0xb91   : > { %v2130_v37 = vmul.f32 0.03125, %v2129_v36 }
 0xb93   : > { %v2131_v38 = vsub.f32 %v2124_v34, %v2130_v37 }
 0xb95   : > { %v2132_v39 = vmul.f32 %v2131_v38, %v2131_v38 }
 0xb97   : > { %v2133_v40 = vsel %vm915_vm1, %v2132_v39, 0.0 }
 0xb98   : > { %2134 = vadd.xlane.f32.xlu0 %v2133_v40 }
 0xc25   : > { %v2135_v41 = vpop.xlane.xlu0 %2134 }
 0xc26   : > { %v2136_v42 = vmul.f32 0.03125, %v2135_v41 }
 0xc28   : > { %v2137_v43 = vadd.f32 1e-05, %v2136_v42 }
 0xc2a   : > { %2966 = vrsqrt.f32 %v2137_v43 }
 0xc34   : > { %v2967_v44 = vpop.eup %2966 }
 0xc35   : > { %v2139_v46 = vmul.f32 %v2967_v44, %v2131_v38 }
 0xc37   : > { %v2146_v48 = vmul.f32 %v2506_v45, %v2139_v46 }
 0xc39   : > { %v2153_v49 = vadd.f32 %v2507_v47, %v2146_v48 }
 0xc3b   : > { %2154 = vst.msk [vmem:[%s900_s3] sm:$0xff] %vm915_vm1, %v2153_v49 }
 0xc3c   : > { %3519 = shalt.err (!%p3516_p12)
}
 0xc3d   : > { %s3520_s23 = scalar_lea.hbm %s4414_s11, 128  ;;  %s3524_s10 = scalar_lea.hbm %s4592_s24, 256 }
 0xc3e   : > { %p3521_p4 = scmp.ne.s32.totalorder %s4414_s11, %s3520_s23  ;;  %p3525_p1 = scmp.lt.u32.totalorder %s4414_s11, %s4592_s24 }
 0xc3f   : > { %p3526_p13 = scmp.lt.u32.totalorder %s3524_s10, %s3520_s23  ;;  %p3528_p0 = scmp.lt.u32.totalorder %s3520_s23, %s4414_s11 }
 0xc40   : > { %p3522_p10 = pnand %p3521_p4, %p4593_p5 }
 0xc41   : > { %p3527_p3 = por %p3526_p13, %p3525_p1 }
 0xc42   : > { %p3523_p2 = pneg %p3522_p10 }
 0xc43   : > { %p3529_p9 = por %p3528_p0, %p3527_p3 }
 0xc45   : > { %p3530_p6 = pnand %p3529_p9, %p3523_p2 }
 0xc47   : > { %3533 = shalt.err (!%p3530_p6)
}
 0xc48   : > { %2788 = dma.vmem_to_hbm [thread:$0]  (%p4593_p5), %s4416_s7, 128, %s4414_s11, %s2156_s28  }
 0xc49 PF: > { %s4594_s26 = sld [smem:[#allocation44_spill]]  ;;  %s2181_s19 = sand.u32 1, %s3596_s0  }
 0xc4a   : > { %p4595_p8 = scmp.ne.s32.totalorder %s4552_s14, 0  ;;  %s2182_s3 = scalar_lea.sflag [#allocation4], %s2181_s19 }
 0xc4f   : > { %p4596_p11 = scmp.ge.s32.totalorder %s4594_s26, 2 }
 0xc51   : > { %p2850_p7 = pnand %p4596_p11, %p4595_p8 }
 0xc53   : > { %3591 = dma.done.wait (!%p2850_p7), %s2182_s3, 128  }
 0xc54   : > { %3593 = vsyncadd (!%p2850_p7), %s2182_s3, 4294967168  ;;  %s4597_s21 = sld [smem:[#allocation46_spill]]  ;;  %s4598_s1 = sld [smem:[#allocation47_spill]] }
 0xc55   : > { %s4599_s0 = smov %s3600_s30  ;;  %s4600_s30 = smov %s3604_s20 }
 0xc5a   : > { %p43_p12 = scmp.ge.s32.totalorder %s4597_s21, 4   ;;  %s4601_s20 = smov %s4598_s1 }
 0xc5c   :  { %45 = sbr.rel (!%p43_p12) target bundleno = 36 (0x24), region = 229 }
 0xc63   :  { %2187 = vsyncpa [#allocation3], 1 }
 0xc64   :  { %2189 = vsyncpa [#allocation3 + $0x1], 1 }
 0xc65   :  { %2190 = vsyncpa [#allocation6], 1 }
 0xc66   :  { %2192 = vsyncpa [#allocation6 + $0x1], 1 }
 0xc67   :  { %2193 = vsyncpa [#allocation9], 1 }
 0xc68   :  { %2194 = vsyncpa [#allocation12], 1 }
 0xc69   :  { %2195 = vsyncpa [#allocation15], 1 }
 0xc6a   :  { %2196 = vsyncpa [#allocation18], 1 }
 0xc6b   :  { %2197 = vsyncpa [#allocation21], 1 }
 0xc6c   :  { %2198 = vsyncpa [#allocation24], 1 }
 0xc6d   :  { %2199 = vsyncpa [#allocation27], 1 }
 0xc6e   :  { %2200 = vsyncpa [#allocation30], 1 }
 0xc6f   :  { %2201 = vsyncpa [#allocation4], 1 }
 0xc70   :  { %2203 = vsyncpa [#allocation4 + $0x1], 1 }

// kernel: tpu_custom_call.1
= control target key start
LH: loop header
LB: loop body
LE: loop exit
PB: predicated region body
PF: predicated region fallthrough
CT: control target
= control target key end

     0   :  { %s4462_s0 = inlined_call_operand.hbm [shape: f32[2,8,32], index: 0, kind: input, shape index: {}]   ;;  %s4463_s1 = inlined_call_operand.hbm [shape: f32[2,8,32], index: 1, kind: input, shape index: {}]   ;;  %s4464_s2 = inlined_call_operand.hbm [shape: f32[2,8,32], index: 2, kind: input, shape index: {}]   ;;  %s4465_s3 = inlined_call_operand.hbm [shape: f32[32,32], index: 3, kind: input, shape index: {}]   ;;  %s4466_s4 = inlined_call_operand.hbm [shape: f32[32,32], index: 4, kind: input, shape index: {}]   ;;  %s4467_s5 = inlined_call_operand.hbm [shape: f32[32,32], index: 5, kind: input, shape index: {}]   ;;  %s4468_s6 = inlined_call_operand.hbm [shape: f32[1,32], index: 6, kind: input, shape index: {}]   ;;  %s4469_s7 = inlined_call_operand.hbm [shape: f32[1,32], index: 7, kind: input, shape index: {}]   ;;  %s4470_s8 = inlined_call_operand.hbm [shape: f32[1,32], index: 8, kind: input, shape index: {}]   ;;  %s4471_s9 = inlined_call_operand.hbm [shape: f32[32,32], index: 9, kind: input, shape index: {}]   ;;  %s4472_s10 = inlined_call_operand.hbm [shape: f32[1,32], index: 10, kind: input, shape index: {}]   ;;  %s4473_s11 = inlined_call_operand.hbm [shape: f32[32,64], index: 11, kind: input, shape index: {}]   ;;  %s4474_s12 = inlined_call_operand.hbm [shape: f32[1,64], index: 12, kind: input, shape index: {}]   ;;  %s4475_s13 = inlined_call_operand.hbm [shape: f32[64,32], index: 13, kind: input, shape index: {}]   ;;  %s4476_s14 = inlined_call_operand.hbm [shape: f32[1,32], index: 14, kind: input, shape index: {}]   ;;  %s4477_s15 = inlined_call_operand.hbm [shape: f32[1,32], index: 15, kind: input, shape index: {}]   ;;  %s4478_s16 = inlined_call_operand.hbm [shape: f32[1,32], index: 16, kind: input, shape index: {}]   ;;  %s4479_s17 = inlined_call_operand.hbm [shape: f32[1,32], index: 17, kind: input, shape index: {}]   ;;  %s4480_s18 = inlined_call_operand.hbm [shape: f32[1,32], index: 18, kind: input, shape index: {}]   ;;  %s4481_s19 = inlined_call_operand.hbm [shape: f32[2,8,32], index: 19, kind: output, shape index: {}]  }
   0x1   :  { %4516 = sst [smem:[#allocation49_spill]] %s4462_s0 }
   0x2   :  { %4517 = sst [smem:[#allocation50_spill]] %s4463_s1 }
   0x3   :  { %4518 = sst [smem:[#allocation51_spill]] %s4464_s2 }
   0x4   :  { %4519 = sst [smem:[#allocation52_spill]] %s4465_s3 }
   0x5   :  { %4520 = sst [smem:[#allocation53_spill]] %s4466_s4 }
   0x6   :  { %4521 = sst [smem:[#allocation54_spill]] %s4467_s5 }
   0x7   :  { %4522 = sst [smem:[#allocation55_spill]] %s4468_s6 }
   0x8   :  { %4523 = sst [smem:[#allocation56_spill]] %s4469_s7 }
   0x9   :  { %4524 = sst [smem:[#allocation57_spill]] %s4470_s8 }
   0xa   :  { %4525 = sst [smem:[#allocation58_spill]] %s4471_s9 }
   0xb   :  { %4526 = sst [smem:[#allocation59_spill]] %s4472_s10 }
   0xc   :  { %4527 = sst [smem:[#allocation60_spill]] %s4473_s11 }
   0xd   :  { %4528 = sst [smem:[#allocation61_spill]] %s4474_s12 }
   0xe   :  { %4529 = sst [smem:[#allocation62_spill]] %s4475_s13 }
   0xf   :  { %4530 = sst [smem:[#allocation63_spill]] %s4476_s14 }
  0x10   :  { %4531 = sst [smem:[#allocation64_spill]] %s4477_s15 }
  0x11   :  { %4532 = sst [smem:[#allocation65_spill]] %s4478_s16 }
  0x12   :  { %4533 = sst [smem:[#allocation66_spill]] %s4479_s17 }
  0x13   :  { %4534 = sst [smem:[#allocation67_spill]] %s4480_s18 }
  0x14   :  { %4535 = sst [smem:[#allocation68_spill]] %s4481_s19 }
  0x15   :  { %24 = vsyncpa [#allocation4], 0 }
  0x16   :  { %26 = vsyncpa [#allocation4 + $0x1], 0 }
  0x17   :  { %27 = vsyncpa [#allocation7], 0 }
  0x18   :  { %29 = vsyncpa [#allocation7 + $0x1], 0 }
  0x19   :  { %30 = vsyncpa [#allocation10], 0 }
  0x1a   :  { %31 = vsyncpa [#allocation13], 0 }
  0x1b   :  { %32 = vsyncpa [#allocation16], 0 }
  0x1c   :  { %33 = vsyncpa [#allocation19], 0 }
  0x1d   :  { %34 = vsyncpa [#allocation22], 0 }
  0x1e   :  { %35 = vsyncpa [#allocation25], 0 }
  0x1f   :  { %36 = vsyncpa [#allocation28], 0 }
  0x20   :  { %37 = vsyncpa [#allocation31], 0 }
  0x21   :  { %38 = vsyncpa [#allocation5], 0 }
  0x22   :  { %40 = vsyncpa [#allocation5 + $0x1], 0  ;;  %s3744_s0 = smov 0   ;;  %s3746_s30 = smov 0  }
  0x23   :  { %s3748_s20 = smov 0   ;;  %s3750_s21 = smov 0  }
  0x24 LB: > { %4536 = sst [smem:[#allocation45_spill]] %s3611_s21  ;;  %s3613_s1 = smov [#allocation9]   ;;  %s3611_s21 = sphi %s3750_s21, %s4600_s21   ;;  %s3607_s20 = sphi %s3748_s20, %s4604_s20   ;;  %s3603_s30 = sphi %s3746_s30, %s4603_s30   ;;  %s3599_s0 = sphi %s3744_s0, %s4602_s0  }
  0x25   : > { %s503_s22 = sshll.u32 %s3613_s1, 4  ;;  %s3765_s2 = sadd.s32 4294967295, %s3611_s21   ;;  %s3770_s22 = int_to_ptr.vmem [resolvable:$true] %s503_s22 }
  0x26   : > { %p2438_p0 = scmp.ge.s32.totalorder %s3611_s21, 1  ;;  %p4496_p1 = scmp.eq.s32.totalorder %s3765_s2, 0 }
  0x27   : > { %p491_p2 = scmp.lt.s32.totalorder %s3611_s21, 3  ;;  %s3614_s24 = smov [#allocation12]  }
  0x28   : > { %s529_s25 = sshll.u32 %s3614_s24, 4  ;;  %s3615_s26 = smov [#allocation15]   ;;  %s3785_s25 = int_to_ptr.vmem [resolvable:$true] %s529_s25 }
  0x29   : > { %p3772_p3 = pnand %p2438_p0, %p491_p2  ;;  %s554_s27 = sshll.u32 %s3615_s26, 4  ;;  %s3787_s27 = int_to_ptr.vmem [resolvable:$true] %s554_s27 }
  0x2a   : > { %s4540_s1 = sld [smem:[#allocation52_spill]] }
  0x2b   : > { %s4537_s23 = scalar_select %p3772_p3, 1, 0 }
  0x2c   : > { %p2793_p5 = pneg %p3772_p3 }
  0x2d   : > { %4538 = sst [smem:[#allocation46_spill]] %s4537_s23 }
  0x2e   : > { %p3781_p6 = pnand %p2793_p5, %p4496_p1 }
  0x30   : > { %s4539_s3 = scalar_select %p3781_p6, 1, 0 }
  0x31   : > { %s2971_s19 = scalar_lea.hbm %s4540_s1, 512  ;;  %p3797_p8 = pneg %p3781_p6 }
  0x32   : > { %p2972_p7 = scmp.ne.s32.totalorder %s4540_s1, %s2971_s19  ;;  %p2978_p11 = scmp.lt.u32.totalorder %s2971_s19, %s4540_s1 }
  0x33   : > { %s4541_s24 = scalar_select %p3797_p8, 1, 0 }
  0x34   : > { %p2974_p9 = pnand %p3797_p8, %p2972_p7 }
  0x36   : > { %p2975_p10 = pneg %p2974_p9 }
  0x38   : > { %p2980_p12 = pnand %p2978_p11, %p2975_p10 }
  0x3a   : > { %2983 = shalt.err (!%p2980_p12)
}
  0x3b   : > { %s2984_s18 = scalar_lea.vmem %s3770_s22, 512  ;;  %p2992_p5 = scmp.lt.s32.totalorder %s3770_s22, %s3770_s22 }
  0x3c   : > { %p2985_p13 = scmp.ne.s32.totalorder %s3770_s22, %s2984_s18  ;;  %p2993_p4 = scmp.lt.s32.totalorder %s2984_s18, %s2984_s18 }
  0x3e   : > { %p2987_p0 = pnand %p2985_p13, %p3797_p8  ;;  %p2994_p7 = por %p2993_p4, %p2992_p5 }
  0x40   : > { %p2988_p2 = pneg %p2987_p0 }
  0x42   : > { %p2995_p9 = pnand %p2994_p7, %p2988_p2 }
  0x44   : > { %2998 = shalt.err (!%p2995_p9)
}
  0x45   : > { %s4494_s23 = smov 128   ;;  %s4499_s16 = smov 8  }
  0x46   : > { %2796 = dma.hbm_to_vmem [thread:$0]  (!%p3781_p6), %s4540_s1, 512, %s3770_s22, [#allocation10], %s4494_s23, %s4494_s23, %s4499_s16  }
  0x47   : > { %s4542_s5 = sld [smem:[#allocation54_spill]] }
  0x4d   : > { %s2999_s18 = scalar_lea.hbm %s4542_s5, 512 }
  0x4e   : > { %p3000_p4 = scmp.ne.s32.totalorder %s4542_s5, %s2999_s18  ;;  %p3006_p12 = scmp.lt.u32.totalorder %s2999_s18, %s4542_s5 }
  0x50   : > { %p3002_p10 = pnand %p3000_p4, %p3797_p8 }
  0x52   : > { %p3003_p11 = pneg %p3002_p10 }
  0x54   : > { %p3008_p13 = pnand %p3006_p12, %p3003_p11 }
  0x56   : > { %3011 = shalt.err (!%p3008_p13)
}
  0x57   : > { %s3012_s22 = scalar_lea.vmem %s3785_s25, 512  ;;  %p3020_p7 = scmp.lt.s32.totalorder %s3785_s25, %s3785_s25 }
  0x58   : > { %p3013_p0 = scmp.ne.s32.totalorder %s3785_s25, %s3012_s22  ;;  %p3021_p9 = scmp.lt.s32.totalorder %s3012_s22, %s3012_s22 }
  0x5a   : > { %p3015_p2 = pnand %p3013_p0, %p3797_p8  ;;  %p3022_p4 = por %p3021_p9, %p3020_p7 }
  0x5c   : > { %p3016_p5 = pneg %p3015_p2 }
  0x5e   : > { %p3023_p10 = pnand %p3022_p4, %p3016_p5 }
  0x60   : > { %3026 = shalt.err (!%p3023_p10)
}
  0x61   : > { %2802 = dma.hbm_to_vmem [thread:$0]  (!%p3781_p6), %s4542_s5, 512, %s3785_s25, [#allocation13], %s4494_s23, %s4494_s23, %s4499_s16  }
  0x62   : > { %s4543_s7 = sld [smem:[#allocation56_spill]] }
  0x68   : > { %s3027_s19 = scalar_lea.hbm %s4543_s7, 16 }
  0x69   : > { %p3028_p11 = scmp.ne.s32.totalorder %s4543_s7, %s3027_s19  ;;  %p3034_p0 = scmp.lt.u32.totalorder %s3027_s19, %s4543_s7 }
  0x6b   : > { %p3030_p12 = pnand %p3028_p11, %p3797_p8 }
  0x6d   : > { %p3031_p13 = pneg %p3030_p12 }
  0x6f   : > { %p3036_p2 = pnand %p3034_p0, %p3031_p13 }
  0x71   : > { %3039 = shalt.err (!%p3036_p2)
}
  0x72   : > { %s3040_s25 = scalar_lea.vmem %s3787_s27, 16  ;;  %s3047_s22 = scalar_lea.vmem %s3787_s27, 32 }
  0x73   : > { %p3041_p5 = scmp.ne.s32.totalorder %s3787_s27, %s3040_s25  ;;  %p3048_p4 = scmp.lt.s32.totalorder %s3787_s27, %s3787_s27 }
  0x74   : > { %p3049_p10 = scmp.lt.s32.totalorder %s3047_s22, %s3040_s25 }
  0x75   : > { %p3043_p7 = pnand %p3041_p5, %p3797_p8 }
  0x76   : > { %p3050_p11 = por %p3049_p10, %p3048_p4 }
  0x77   : > { %p3044_p9 = pneg %p3043_p7 }
  0x79   : > { %p3051_p12 = pnand %p3050_p11, %p3044_p9 }
  0x7b   : > { %3054 = shalt.err (!%p3051_p12)
}
  0x7c   : > { %2808 = dma.hbm_to_vmem [thread:$0]  (!%p3781_p6), %s4543_s7, 16, %s3787_s27, [#allocation16]  }
  0x7d   : > { %s3618_s12 = smov [#allocation18]   ;;  %s3619_s19 = smov [#allocation21]  }
  0x7e   : > { %s575_s14 = sshll.u32 %s3618_s12, 4  ;;  %s599_s28 = sshll.u32 %s3619_s19, 4  ;;  %s576_s14 = int_to_ptr.vmem [resolvable:$true] %s575_s14  ;;  %s600_s28 = int_to_ptr.vmem [resolvable:$true] %s599_s28 }
  0x7f   : > { %s4544_s9 = sld [smem:[#allocation58_spill]] }
  0x85   : > { %s3055_s18 = scalar_lea.hbm %s4544_s9, 512 }
  0x86   : > { %p3056_p13 = scmp.ne.s32.totalorder %s4544_s9, %s3055_s18  ;;  %p3062_p5 = scmp.lt.u32.totalorder %s3055_s18, %s4544_s9 }
  0x88   : > { %p3058_p0 = pnand %p3056_p13, %p3797_p8 }
  0x8a   : > { %p3059_p2 = pneg %p3058_p0 }
  0x8c   : > { %p3064_p7 = pnand %p3062_p5, %p3059_p2 }
  0x8e   : > { %3067 = shalt.err (!%p3064_p7)
}
  0x8f   : > { %s3068_s27 = scalar_lea.vmem %s576_s14, 512  ;;  %p3076_p11 = scmp.lt.s32.totalorder %s576_s14, %s576_s14 }
  0x90   : > { %p3069_p9 = scmp.ne.s32.totalorder %s576_s14, %s3068_s27  ;;  %p3077_p12 = scmp.lt.s32.totalorder %s3068_s27, %s3068_s27 }
  0x92   : > { %p3071_p4 = pnand %p3069_p9, %p3797_p8  ;;  %p3078_p1 = por %p3077_p12, %p3076_p11 }
  0x94   : > { %p3072_p10 = pneg %p3071_p4 }
  0x96   : > { %p3079_p3 = pnand %p3078_p1, %p3072_p10 }
  0x98   : > { %3082 = shalt.err (!%p3079_p3)
}
  0x99   : > { %s4545_s10 = smov 128   ;;  %s4546_s11 = sld [smem:[#allocation60_spill]] }
  0x9a   : > { %2814 = dma.hbm_to_vmem [thread:$0]  (!%p3781_p6), %s4544_s9, 512, %s576_s14, [#allocation19], %s4545_s10, %s4545_s10, %s4499_s16  }
  0x9f   : > { %s3083_s26 = scalar_lea.hbm %s4546_s11, 512 }
  0xa0   : > { %p3084_p1 = scmp.ne.s32.totalorder %s4546_s11, %s3083_s26  ;;  %p3090_p0 = scmp.lt.u32.totalorder %s3083_s26, %s4546_s11 }
  0xa2   : > { %p3086_p3 = pnand %p3084_p1, %p3797_p8 }
  0xa4   : > { %p3087_p13 = pneg %p3086_p3 }
  0xa6   : > { %p3092_p2 = pnand %p3090_p0, %p3087_p13 }
  0xa8   : > { %3095 = shalt.err (!%p3092_p2)
}
  0xa9   : > { %s3096_s27 = scalar_lea.vmem %s600_s28, 512  ;;  %p3104_p4 = scmp.lt.s32.totalorder %s600_s28, %s600_s28 }
  0xaa   : > { %p3097_p5 = scmp.ne.s32.totalorder %s600_s28, %s3096_s27  ;;  %p3105_p10 = scmp.lt.s32.totalorder %s3096_s27, %s3096_s27 }
  0xac   : > { %p3099_p7 = pnand %p3097_p5, %p3797_p8  ;;  %p3106_p11 = por %p3105_p10, %p3104_p4 }
  0xae   : > { %p3100_p9 = pneg %p3099_p7 }
  0xb0   : > { %p3107_p12 = pnand %p3106_p11, %p3100_p9 }
  0xb2   : > { %3110 = shalt.err (!%p3107_p12)
}
  0xb3   : > { %2820 = dma.hbm_to_vmem [thread:$0]  (!%p3781_p6), %s4546_s11, 512, %s600_s28, [#allocation22], %s4545_s10, %s4545_s10, %s4499_s16  }
  0xb4   : > { %s3620_s12 = smov [#allocation24]   ;;  %s3621_s29 = smov [#allocation27]  }
  0xb5   : > { %s623_s19 = sshll.u32 %s3620_s12, 4  ;;  %s648_s26 = sshll.u32 %s3621_s29, 4  ;;  %s624_s19 = int_to_ptr.vmem [resolvable:$true] %s623_s19  ;;  %s649_s26 = int_to_ptr.vmem [resolvable:$true] %s648_s26 }
  0xb6   : > { %s4547_s13 = sld [smem:[#allocation62_spill]] }
  0xbc   : > { %s3111_s22 = scalar_lea.hbm %s4547_s13, 1024 }
  0xbd   : > { %p3112_p1 = scmp.ne.s32.totalorder %s4547_s13, %s3111_s22  ;;  %p3118_p0 = scmp.lt.u32.totalorder %s3111_s22, %s4547_s13 }
  0xbf   : > { %p3114_p3 = pnand %p3112_p1, %p3797_p8 }
  0xc1   : > { %p3115_p13 = pneg %p3114_p3 }
  0xc3   : > { %p3120_p2 = pnand %p3118_p0, %p3115_p13 }
  0xc5   : > { %3123 = shalt.err (!%p3120_p2)
}
  0xc6   : > { %s3124_s28 = scalar_lea.vmem %s624_s19, 1024  ;;  %p3132_p4 = scmp.lt.s32.totalorder %s624_s19, %s624_s19 }
  0xc7   : > { %p3125_p5 = scmp.ne.s32.totalorder %s624_s19, %s3124_s28  ;;  %p3133_p10 = scmp.lt.s32.totalorder %s3124_s28, %s3124_s28 }
  0xc9   : > { %p3127_p7 = pnand %p3125_p5, %p3797_p8  ;;  %p3134_p11 = por %p3133_p10, %p3132_p4 }
  0xcb   : > { %p3128_p9 = pneg %p3127_p7 }
  0xcd   : > { %p3135_p12 = pnand %p3134_p11, %p3128_p9 }
  0xcf   : > { %3138 = shalt.err (!%p3135_p12)
}
  0xd0   : > { %2826 = dma.hbm_to_vmem [thread:$0]  (!%p3781_p6), %s4547_s13, 1024, %s624_s19, [#allocation25], %s4545_s10, %s4545_s10, %s4499_s16  }
  0xd1   : > { %s4548_s15 = sld [smem:[#allocation64_spill]] }
  0xd7   : > { %s3139_s18 = scalar_lea.hbm %s4548_s15, 16 }
  0xd8   : > { %p3140_p1 = scmp.ne.s32.totalorder %s4548_s15, %s3139_s18  ;;  %p3146_p0 = scmp.lt.u32.totalorder %s3139_s18, %s4548_s15 }
  0xda   : > { %p3142_p3 = pnand %p3140_p1, %p3797_p8 }
  0xdc   : > { %p3143_p13 = pneg %p3142_p3 }
  0xde   : > { %p3148_p2 = pnand %p3146_p0, %p3143_p13 }
  0xe0   : > { %3151 = shalt.err (!%p3148_p2)
}
  0xe1   : > { %s3152_s14 = scalar_lea.vmem %s649_s26, 16  ;;  %s3159_s19 = scalar_lea.vmem %s649_s26, 32 }
  0xe2   : > { %p3153_p5 = scmp.ne.s32.totalorder %s649_s26, %s3152_s14  ;;  %p3160_p4 = scmp.lt.s32.totalorder %s649_s26, %s649_s26 }
  0xe3   : > { %p3161_p10 = scmp.lt.s32.totalorder %s3159_s19, %s3152_s14 }
  0xe4   : > { %p3155_p7 = pnand %p3153_p5, %p3797_p8 }
  0xe5   : > { %p3162_p11 = por %p3161_p10, %p3160_p4 }
  0xe6   : > { %p3156_p9 = pneg %p3155_p7 }
  0xe8   : > { %p3163_p12 = pnand %p3162_p11, %p3156_p9 }
  0xea   : > { %3166 = shalt.err (!%p3163_p12)
}
  0xeb   : > { %2832 = dma.hbm_to_vmem [thread:$0]  (!%p3781_p6), %s4548_s15, 16, %s649_s26, [#allocation28]  }
  0xec   : > { %s3622_s23 = smov [#allocation30]   ;;  %s4549_s17 = sld [smem:[#allocation66_spill]] }
  0xed   : > { %s670_s12 = sshll.u32 %s3622_s23, 4  ;;  %s671_s12 = int_to_ptr.vmem [resolvable:$true] %s670_s12 }
  0xf2   : > { %s3167_s25 = scalar_lea.hbm %s4549_s17, 16 }
  0xf3   : > { %p3168_p1 = scmp.ne.s32.totalorder %s4549_s17, %s3167_s25  ;;  %p3174_p0 = scmp.lt.u32.totalorder %s3167_s25, %s4549_s17 }
  0xf5   : > { %p3170_p3 = pnand %p3168_p1, %p3797_p8 }
  0xf7   : > { %p3171_p13 = pneg %p3170_p3 }
  0xf9   : > { %p3176_p2 = pnand %p3174_p0, %p3171_p13 }
  0xfb   : > { %3179 = shalt.err (!%p3176_p2)
}
  0xfc   : > { %s3180_s26 = scalar_lea.vmem %s671_s12, 16  ;;  %s3187_s19 = scalar_lea.vmem %s671_s12, 32 }
  0xfd   : > { %p3181_p5 = scmp.ne.s32.totalorder %s671_s12, %s3180_s26  ;;  %p3188_p4 = scmp.lt.s32.totalorder %s671_s12, %s671_s12 }
  0xfe   : > { %p3189_p10 = scmp.lt.s32.totalorder %s3187_s19, %s3180_s26 }
  0xff   : > { %p3183_p7 = pnand %p3181_p5, %p3797_p8 }
 0x100   : > { %p3190_p11 = por %p3189_p10, %p3188_p4 }
 0x101   : > { %p3184_p9 = pneg %p3183_p7 }
 0x103   : > { %p3191_p12 = pnand %p3190_p11, %p3184_p9 }
 0x105   : > { %3194 = shalt.err (!%p3191_p12)
}
 0x106   : > { %2838 = dma.hbm_to_vmem [thread:$0]  (!%p3781_p6), %s4549_s17, 16, %s671_s12, [#allocation31]  }
 0x107   : > { %s2437_s23 = sadd.s32 4294967294, %s3611_s21   ;;  %s3972_s29 = sadd.s32 1, %s3611_s21  }
 0x108   : > { %4550 = sst [smem:[#allocation47_spill]] %s3972_s29  ;;  %s50_s18 = ssub.s32 %s3611_s21, %s3972_s29 }
 0x109   : > { %s53_s25 = sadd.s32 1, %s3607_s20  ;;  %p51_p1 = scmp.eq.s32.totalorder %s50_s18, 0 }
 0x10a   : > { %p60_p3 = scmp.ne.s32.totalorder %s3607_s20, %s3603_s30  ;;  %p61_p13 = scmp.eq.s32.totalorder %s3611_s21, 0 }
 0x10b   : > { %p66_p0 = scmp.ne.s32.totalorder %s3603_s30, %s3599_s0  ;;  %p4552_p5 = scmp.eq.s32.totalorder %s3765_s2, 0 }
 0x10c   : > { %s3983_s22 = scalar_select %p51_p1, %s3607_s20, %s53_s25  }
 0x10d   : > { %p62_p2 = por %p61_p13, %p60_p3  ;;  %p3987_p7 = por %p4552_p5, %p66_p0 }
 0x10e   : > { %4551 = sst [smem:[#allocation48_spill]] %s3983_s22  ;;  %p478_p9 = scmp.eq.s32.totalorder %s3765_s2, 1 }
 0x10f   : > { %s4553_s8 = scalar_select %p3987_p7, 1, 0 }
 0x110   : > { %p484_p4 = scmp.eq.s32.totalorder %s2437_s23, 1  ;;  %p2872_p10 = scmp.lt.s32.totalorder %s3611_s21, 2 }
 0x111   : > { %s4500_s12 = sand.u32 1, %s3607_s20   ;;  %p3994_p11 = por %p478_p9, %p60_p3 }
 0x112   : > { %p3998_p12 = por %p484_p4, %p66_p0  ;;  %s4004_s26 = sshll.u32 %s4500_s12, 3 }
 0x113   : > { %s4554_s27 = scalar_select %p3994_p11, 1, 0 }
 0x114   : > { %s4555_s14 = scalar_select %p3998_p12, 1, 0 }
 0x115   : > { %s4007_s19 = sshll.u32 %s3611_s21, 7  ;;  %p4009_p1 = pnand %p2872_p10, %p62_p2 }
 0x116   : > { %s710_s1 = sand.u32 1, %s3611_s21   ;;  %s4557_s25 = sld [smem:[#allocation50_spill]] }
 0x117   : > { %s4556_s28 = scalar_select %p4009_p1, 1, 0 }
 0x118   : > { %s714_s12 = scalar_lea.vmem [#allocation6], %s4004_s26  ;;  %s3623_s7 = smov [#allocation11]  }
 0x119   : > { %s721_s5 = sshll.u32 %s714_s12, 4  ;;  %s4023_s9 = sshll.u32 %s3623_s7, 4  ;;  %s4021_s5 = int_to_ptr.vmem [resolvable:$true] %s721_s5  ;;  %s517_s9 = int_to_ptr.vmem [resolvable:$true] %s4023_s9 }
 0x11a   : > { %s4025_s11 = scalar_lea.sflag [#allocation7], %s710_s1  ;;  %p4031_p13 = pneg %p4009_p1 }
 0x11c   : > { %s4018_s16 = scalar_lea.hbm %s4557_s25, %s4007_s19  ;;  %s3200_s15 = scalar_lea.hbm %s4557_s25, 256 }
 0x11d   : > { %s3195_s13 = scalar_lea.hbm %s4018_s16, 128  ;;  %p3201_p5 = scmp.lt.u32.totalorder %s4018_s16, %s4557_s25 }
 0x11e   : > { %p3196_p3 = scmp.ne.s32.totalorder %s4018_s16, %s3195_s13  ;;  %p3202_p9 = scmp.lt.u32.totalorder %s3200_s15, %s3195_s13 }
 0x11f   : > { %s4558_s23 = scalar_select %p4031_p13, 1, 0 }
 0x120   : > { %p3198_p0 = pnand %p4031_p13, %p3196_p3  ;;  %p3203_p4 = por %p3202_p9, %p3201_p5 }
 0x121   : > { %p3204_p10 = scmp.lt.u32.totalorder %s3195_s13, %s4018_s16 }
 0x122   : > { %p3199_p2 = pneg %p3198_p0 }
 0x123   : > { %p3205_p12 = por %p3204_p10, %p3203_p4 }
 0x125   : > { %p3206_p11 = pnand %p3205_p12, %p3199_p2 }
 0x127   : > { %3209 = shalt.err (!%p3206_p11)
}
 0x128   : > { %s3210_s1 = scalar_lea.vmem %s4021_s5, 128  ;;  %s3624_s18 = smov [#allocation6]  }
 0x129   : > { %p3211_p3 = scmp.ne.s32.totalorder %s4021_s5, %s3210_s1  ;;  %s3215_s12 = sshll.u32 %s3624_s18, 4  ;;  %s3216_s12 = int_to_ptr.vmem [resolvable:$false] %s3215_s12 }
 0x12a   : > { %s3217_s17 = scalar_lea.vmem %s3216_s12, 256  ;;  %p3218_p6 = scmp.lt.s32.totalorder %s4021_s5, %s3216_s12 }
 0x12b   : > { %p3213_p0 = pnand %p3211_p3, %p4031_p13  ;;  %p3219_p8 = scmp.lt.s32.totalorder %s3217_s17, %s3210_s1 }
 0x12d   : > { %p3214_p7 = pneg %p3213_p0  ;;  %p3220_p5 = por %p3219_p8, %p3218_p6 }
 0x12f   : > { %p3221_p9 = pnand %p3220_p5, %p3214_p7 }
 0x131   : > { %3224 = shalt.err (!%p3221_p9)
}
 0x132   : > { %2848 = dma.hbm_to_vmem [thread:$0]  (!%p4009_p1), %s4018_s16, 128, %s4021_s5, %s4025_s11  }
 0x133   : > { %s4559_s4 = sld [smem:[#allocation53_spill]]  ;;  %p4560_p6 = scmp.ne.s32.totalorder %s4541_s24, 0 }
 0x139   : > { %s3225_s7 = scalar_lea.hbm %s4559_s4, 512 }
 0x13a   : > { %p3226_p11 = scmp.ne.s32.totalorder %s4559_s4, %s3225_s7  ;;  %p3232_p12 = scmp.lt.u32.totalorder %s3225_s7, %s4559_s4 }
 0x13c   : > { %p3228_p8 = pnand %p3226_p11, %p4560_p6 }
 0x13e   : > { %p3229_p7 = pneg %p3228_p8 }
 0x140   : > { %p3234_p2 = pnand %p3232_p12, %p3229_p7 }
 0x142   : > { %3237 = shalt.err (!%p3234_p2)
}
 0x143   : > { %s3238_s17 = scalar_lea.vmem %s517_s9, 512  ;;  %p3246_p0 = scmp.lt.s32.totalorder %s517_s9, %s517_s9 }
 0x144   : > { %p3239_p4 = scmp.ne.s32.totalorder %s517_s9, %s3238_s17  ;;  %p3247_p5 = scmp.lt.s32.totalorder %s3238_s17, %s3238_s17 }
 0x146   : > { %p3241_p10 = pnand %p3239_p4, %p4560_p6  ;;  %p3248_p9 = por %p3247_p5, %p3246_p0 }
 0x148   : > { %p3242_p3 = pneg %p3241_p10 }
 0x14a   : > { %p3249_p1 = pnand %p3248_p9, %p3242_p3 }
 0x14c   : > { %3252 = shalt.err (!%p3249_p1)
}
 0x14d   : > { %p4561_p11 = scmp.ne.s32.totalorder %s4539_s3, 0  ;;  %s4562_s5 = smov 8  }
 0x14e   : > { %s3625_s13 = smov [#allocation14]   ;;  %s3626_s7 = smov [#allocation17]  }
 0x14f   : > { %2799 = dma.hbm_to_vmem [thread:$0]  (!%p4561_p11), %s4559_s4, 512, %s517_s9, [#allocation10], %s4545_s10, %s4545_s10, %s4562_s5  }
 0x150   : > { %s543_s15 = sshll.u32 %s3625_s13, 4  ;;  %s565_s18 = sshll.u32 %s3626_s7, 4  ;;  %s544_s15 = int_to_ptr.vmem [resolvable:$true] %s543_s15  ;;  %s566_s18 = int_to_ptr.vmem [resolvable:$true] %s565_s18 }
 0x151   : > { %s4563_s6 = sld [smem:[#allocation55_spill]] }
 0x157   : > { %s3253_s17 = scalar_lea.hbm %s4563_s6, 16 }
 0x158   : > { %p3254_p1 = scmp.ne.s32.totalorder %s4563_s6, %s3253_s17  ;;  %p3260_p12 = scmp.lt.u32.totalorder %s3253_s17, %s4563_s6 }
 0x15a   : > { %p3256_p8 = pnand %p3254_p1, %p4560_p6 }
 0x15c   : > { %p3257_p7 = pneg %p3256_p8 }
 0x15e   : > { %p3262_p2 = pnand %p3260_p12, %p3257_p7 }
 0x160   : > { %3265 = shalt.err (!%p3262_p2)
}
 0x161   : > { %s3266_s9 = scalar_lea.vmem %s544_s15, 16  ;;  %s3273_s10 = scalar_lea.vmem %s544_s15, 32 }
 0x162   : > { %p3267_p4 = scmp.ne.s32.totalorder %s544_s15, %s3266_s9  ;;  %p3274_p0 = scmp.lt.s32.totalorder %s544_s15, %s544_s15 }
 0x163   : > { %p3275_p5 = scmp.lt.s32.totalorder %s3273_s10, %s3266_s9 }
 0x164   : > { %p3269_p10 = pnand %p3267_p4, %p4560_p6 }
 0x165   : > { %p3276_p9 = por %p3275_p5, %p3274_p0 }
 0x166   : > { %p3270_p3 = pneg %p3269_p10 }
 0x168   : > { %p3277_p13 = pnand %p3276_p9, %p3270_p3 }
 0x16a   : > { %3280 = shalt.err (!%p3277_p13)
}
 0x16b   : > { %2805 = dma.hbm_to_vmem [thread:$0]  (!%p4561_p11), %s4563_s6, 16, %s544_s15, [#allocation13]  }
 0x16c   : > { %s4564_s25 = sld [smem:[#allocation57_spill]] }
 0x172   : > { %s3281_s13 = scalar_lea.hbm %s4564_s25, 16 }
 0x173   : > { %p3282_p1 = scmp.ne.s32.totalorder %s4564_s25, %s3281_s13  ;;  %p3288_p13 = scmp.lt.u32.totalorder %s3281_s13, %s4564_s25 }
 0x175   : > { %p3284_p8 = pnand %p3282_p1, %p4560_p6 }
 0x177   : > { %p3285_p7 = pneg %p3284_p8 }
 0x179   : > { %p3290_p12 = pnand %p3288_p13, %p3285_p7 }
 0x17b   : > { %3293 = shalt.err (!%p3290_p12)
}
 0x17c   : > { %s3294_s16 = scalar_lea.vmem %s566_s18, 16  ;;  %s3301_s15 = scalar_lea.vmem %s566_s18, 32 }
 0x17d   : > { %p3295_p2 = scmp.ne.s32.totalorder %s566_s18, %s3294_s16  ;;  %p3302_p3 = scmp.lt.s32.totalorder %s566_s18, %s566_s18 }
 0x17e   : > { %p3303_p0 = scmp.lt.s32.totalorder %s3301_s15, %s3294_s16 }
 0x17f   : > { %p3297_p4 = pnand %p3295_p2, %p4560_p6 }
 0x180   : > { %p3304_p5 = por %p3303_p0, %p3302_p3 }
 0x181   : > { %p3298_p10 = pneg %p3297_p4 }
 0x183   : > { %p3305_p9 = pnand %p3304_p5, %p3298_p10 }
 0x185   : > { %3308 = shalt.err (!%p3305_p9)
}
 0x186   : > { %2811 = dma.hbm_to_vmem [thread:$0]  (!%p4561_p11), %s4564_s25, 16, %s566_s18, [#allocation16]  }
 0x187   : > { %s3627_s29 = smov [#allocation20]   ;;  %s3628_s21 = smov [#allocation23]  }
 0x188   : > { %s589_s22 = sshll.u32 %s3627_s29, 4  ;;  %s613_s5 = sshll.u32 %s3628_s21, 4  ;;  %s590_s22 = int_to_ptr.vmem [resolvable:$true] %s589_s22  ;;  %s614_s5 = int_to_ptr.vmem [resolvable:$true] %s613_s5 }
 0x189   : > { %s4565_s1 = sld [smem:[#allocation59_spill]] }
 0x18f   : > { %s3309_s12 = scalar_lea.hbm %s4565_s1, 16 }
 0x190   : > { %p3310_p1 = scmp.ne.s32.totalorder %s4565_s1, %s3309_s12  ;;  %p3316_p13 = scmp.lt.u32.totalorder %s3309_s12, %s4565_s1 }
 0x192   : > { %p3312_p8 = pnand %p3310_p1, %p4560_p6 }
 0x194   : > { %p3313_p7 = pneg %p3312_p8 }
 0x196   : > { %p3318_p12 = pnand %p3316_p13, %p3313_p7 }
 0x198   : > { %3321 = shalt.err (!%p3318_p12)
}
 0x199   : > { %s3322_s18 = scalar_lea.vmem %s590_s22, 16  ;;  %s3329_s10 = scalar_lea.vmem %s590_s22, 32 }
 0x19a   : > { %p3323_p2 = scmp.ne.s32.totalorder %s590_s22, %s3322_s18  ;;  %p3330_p3 = scmp.lt.s32.totalorder %s590_s22, %s590_s22 }
 0x19b   : > { %p3331_p0 = scmp.lt.s32.totalorder %s3329_s10, %s3322_s18 }
 0x19c   : > { %p3325_p4 = pnand %p3323_p2, %p4560_p6 }
 0x19d   : > { %p3332_p5 = por %p3331_p0, %p3330_p3 }
 0x19e   : > { %p3326_p10 = pneg %p3325_p4 }
 0x1a0   : > { %p3333_p9 = pnand %p3332_p5, %p3326_p10 }
 0x1a2   : > { %3336 = shalt.err (!%p3333_p9)
}
 0x1a3   : > { %2817 = dma.hbm_to_vmem [thread:$0]  (!%p4561_p11), %s4565_s1, 16, %s590_s22, [#allocation19]  }
 0x1a4   : > { %s4566_s12 = sld [smem:[#allocation61_spill]] }
 0x1aa   : > { %s3337_s17 = scalar_lea.hbm %s4566_s12, 16 }
 0x1ab   : > { %p3338_p1 = scmp.ne.s32.totalorder %s4566_s12, %s3337_s17  ;;  %p3344_p13 = scmp.lt.u32.totalorder %s3337_s17, %s4566_s12 }
 0x1ad   : > { %p3340_p8 = pnand %p3338_p1, %p4560_p6 }
 0x1af   : > { %p3341_p7 = pneg %p3340_p8 }
 0x1b1   : > { %p3346_p12 = pnand %p3344_p13, %p3341_p7 }
 0x1b3   : > { %3349 = shalt.err (!%p3346_p12)
}
 0x1b4   : > { %s3350_s10 = scalar_lea.vmem %s614_s5, 16  ;;  %s3357_s22 = scalar_lea.vmem %s614_s5, 32 }
 0x1b5   : > { %p3351_p2 = scmp.ne.s32.totalorder %s614_s5, %s3350_s10  ;;  %p3358_p3 = scmp.lt.s32.totalorder %s614_s5, %s614_s5 }
 0x1b6   : > { %p3359_p0 = scmp.lt.s32.totalorder %s3357_s22, %s3350_s10 }
 0x1b7   : > { %p3353_p4 = pnand %p3351_p2, %p4560_p6 }
 0x1b8   : > { %p3360_p5 = por %p3359_p0, %p3358_p3 }
 0x1b9   : > { %p3354_p10 = pneg %p3353_p4 }
 0x1bb   : > { %p3361_p9 = pnand %p3360_p5, %p3354_p10 }
 0x1bd   : > { %3364 = shalt.err (!%p3361_p9)
}
 0x1be   : > { %2823 = dma.hbm_to_vmem [thread:$0]  (!%p4561_p11), %s4566_s12, 16, %s614_s5, [#allocation22]  }
 0x1bf   : > { %s3629_s13 = smov [#allocation26]   ;;  %s3630_s17 = smov [#allocation29]  }
 0x1c0   : > { %s637_s7 = sshll.u32 %s3629_s13, 4  ;;  %s659_s16 = sshll.u32 %s3630_s17, 4  ;;  %s638_s7 = int_to_ptr.vmem [resolvable:$true] %s637_s7  ;;  %s660_s16 = int_to_ptr.vmem [resolvable:$true] %s659_s16 }
 0x1c1   : > { %s4567_s18 = sld [smem:[#allocation63_spill]] }
 0x1c7   : > { %s3365_s1 = scalar_lea.hbm %s4567_s18, 16 }
 0x1c8   : > { %p3366_p1 = scmp.ne.s32.totalorder %s4567_s18, %s3365_s1  ;;  %p3372_p13 = scmp.lt.u32.totalorder %s3365_s1, %s4567_s18 }
 0x1ca   : > { %p3368_p8 = pnand %p3366_p1, %p4560_p6 }
 0x1cc   : > { %p3369_p7 = pneg %p3368_p8 }
 0x1ce   : > { %p3374_p12 = pnand %p3372_p13, %p3369_p7 }
 0x1d0   : > { %3377 = shalt.err (!%p3374_p12)
}
 0x1d1   : > { %s3378_s5 = scalar_lea.vmem %s638_s7, 16  ;;  %s3385_s21 = scalar_lea.vmem %s638_s7, 32 }
 0x1d2   : > { %p3379_p2 = scmp.ne.s32.totalorder %s638_s7, %s3378_s5  ;;  %p3386_p3 = scmp.lt.s32.totalorder %s638_s7, %s638_s7 }
 0x1d3   : > { %p3387_p0 = scmp.lt.s32.totalorder %s3385_s21, %s3378_s5 }
 0x1d4   : > { %p3381_p4 = pnand %p3379_p2, %p4560_p6 }
 0x1d5   : > { %p3388_p5 = por %p3387_p0, %p3386_p3 }
 0x1d6   : > { %p3382_p10 = pneg %p3381_p4 }
 0x1d8   : > { %p3389_p9 = pnand %p3388_p5, %p3382_p10 }
 0x1da   : > { %3392 = shalt.err (!%p3389_p9)
}
 0x1db   : > { %2829 = dma.hbm_to_vmem [thread:$0]  (!%p4561_p11), %s4567_s18, 16, %s638_s7, [#allocation25]  }
 0x1dc   : > { %s4568_s15 = sld [smem:[#allocation65_spill]] }
 0x1e2   : > { %s3393_s9 = scalar_lea.hbm %s4568_s15, 16 }
 0x1e3   : > { %p3394_p1 = scmp.ne.s32.totalorder %s4568_s15, %s3393_s9  ;;  %p3400_p13 = scmp.lt.u32.totalorder %s3393_s9, %s4568_s15 }
 0x1e5   : > { %p3396_p8 = pnand %p3394_p1, %p4560_p6 }
 0x1e7   : > { %p3397_p7 = pneg %p3396_p8 }
 0x1e9   : > { %p3402_p12 = pnand %p3400_p13, %p3397_p7 }
 0x1eb   : > { %3405 = shalt.err (!%p3402_p12)
}
 0x1ec   : > { %s3406_s21 = scalar_lea.vmem %s660_s16, 16  ;;  %s3413_s7 = scalar_lea.vmem %s660_s16, 32 }
 0x1ed   : > { %p3407_p2 = scmp.ne.s32.totalorder %s660_s16, %s3406_s21  ;;  %p3414_p3 = scmp.lt.s32.totalorder %s660_s16, %s660_s16 }
 0x1ee   : > { %p3415_p0 = scmp.lt.s32.totalorder %s3413_s7, %s3406_s21 }
 0x1ef   : > { %p3409_p4 = pnand %p3407_p2, %p4560_p6 }
 0x1f0   : > { %p3416_p5 = por %p3415_p0, %p3414_p3 }
 0x1f1   : > { %p3410_p10 = pneg %p3409_p4 }
 0x1f3   : > { %p3417_p9 = pnand %p3416_p5, %p3410_p10 }
 0x1f5   : > { %3420 = shalt.err (!%p3417_p9)
}
 0x1f6   : > { %2835 = dma.hbm_to_vmem [thread:$0]  (!%p4561_p11), %s4568_s15, 16, %s660_s16, [#allocation28]  }
 0x1f7   : > { %s3631_s4 = smov [#allocation32]   ;;  %s4569_s22 = sld [smem:[#allocation67_spill]] }
 0x1f8   : > { %s681_s1 = sshll.u32 %s3631_s4, 4  ;;  %s682_s1 = int_to_ptr.vmem [resolvable:$true] %s681_s1 }
 0x1fd   : > { %s3421_s29 = scalar_lea.hbm %s4569_s22, 16 }
 0x1fe   : > { %p3422_p1 = scmp.ne.s32.totalorder %s4569_s22, %s3421_s29  ;;  %p3428_p13 = scmp.lt.u32.totalorder %s3421_s29, %s4569_s22 }
 0x200   : > { %p3424_p8 = pnand %p3422_p1, %p4560_p6 }
 0x202   : > { %p3425_p7 = pneg %p3424_p8 }
 0x204   : > { %p3430_p12 = pnand %p3428_p13, %p3425_p7 }
 0x206   : > { %3433 = shalt.err (!%p3430_p12)
}
 0x207   : > { %s3434_s16 = scalar_lea.vmem %s682_s1, 16  ;;  %s3441_s13 = scalar_lea.vmem %s682_s1, 32 }
 0x208   : > { %p3435_p2 = scmp.ne.s32.totalorder %s682_s1, %s3434_s16  ;;  %p3442_p3 = scmp.lt.s32.totalorder %s682_s1, %s682_s1 }
 0x209   : > { %p3443_p0 = scmp.lt.s32.totalorder %s3441_s13, %s3434_s16 }
 0x20a   : > { %p3437_p4 = pnand %p3435_p2, %p4560_p6 }
 0x20b   : > { %p3444_p5 = por %p3443_p0, %p3442_p3 }
 0x20c   : > { %p3438_p10 = pneg %p3437_p4 }
 0x20e   : > { %p3445_p9 = pnand %p3444_p5, %p3438_p10 }
 0x210   : > { %3448 = shalt.err (!%p3445_p9)
}
 0x211   : > { %2841 = dma.hbm_to_vmem [thread:$0]  (!%p4561_p11), %s4569_s22, 16, %s682_s1, [#allocation31]  }
 0x212   : > { %s4570_s9 = sld [smem:[#allocation49_spill]]  ;;  %s696_s29 = scalar_lea.vmem [#allocation3], %s4004_s26 }
 0x213   : > { %s703_s5 = sshll.u32 %s696_s29, 4  ;;  %s4571_s3 = sand.u32 1, %s3607_s20   ;;  %s704_s5 = int_to_ptr.vmem [resolvable:$true] %s703_s5 }
 0x214   : > { %s693_s21 = scalar_lea.sflag [#allocation4], %s4571_s3  ;;  %p4572_p1 = scmp.ne.s32.totalorder %s4558_s23, 0 }
 0x218   : > { %s4207_s10 = scalar_lea.hbm %s4570_s9, %s4007_s19  ;;  %s3454_s13 = scalar_lea.hbm %s4570_s9, 256 }
 0x219   : > { %s3449_s7 = scalar_lea.hbm %s4207_s10, 128  ;;  %p3455_p11 = scmp.lt.u32.totalorder %s4207_s10, %s4570_s9 }
 0x21a   : > { %p3450_p6 = scmp.ne.s32.totalorder %s4207_s10, %s3449_s7  ;;  %p3456_p13 = scmp.lt.u32.totalorder %s3454_s13, %s3449_s7 }
 0x21b   : > { %p3458_p2 = scmp.lt.u32.totalorder %s3449_s7, %s4207_s10 }
 0x21c   : > { %p3452_p8 = pnand %p3450_p6, %p4572_p1  ;;  %p3457_p12 = por %p3456_p13, %p3455_p11 }
 0x21e   : > { %p3453_p7 = pneg %p3452_p8  ;;  %p3459_p4 = por %p3458_p2, %p3457_p12 }
 0x220   : > { %p3460_p10 = pnand %p3459_p4, %p3453_p7 }
 0x222   : > { %3463 = shalt.err (!%p3460_p10)
}
 0x223   : > { %s3464_s4 = scalar_lea.vmem %s704_s5, 128  ;;  %s3632_s24 = smov [#allocation3]  }
 0x224   : > { %p3465_p3 = scmp.ne.s32.totalorder %s704_s5, %s3464_s4  ;;  %s3469_s29 = sshll.u32 %s3632_s24, 4  ;;  %s3470_s29 = int_to_ptr.vmem [resolvable:$false] %s3469_s29 }
 0x225   : > { %s3471_s3 = scalar_lea.vmem %s3470_s29, 256  ;;  %p3472_p9 = scmp.lt.s32.totalorder %s704_s5, %s3470_s29 }
 0x226   : > { %p3467_p0 = pnand %p3465_p3, %p4572_p1  ;;  %p3473_p6 = scmp.lt.s32.totalorder %s3471_s3, %s3464_s4 }
 0x228   : > { %p3468_p5 = pneg %p3467_p0  ;;  %p3474_p8 = por %p3473_p6, %p3472_p9 }
 0x22a   : > { %p3475_p11 = pnand %p3474_p8, %p3468_p5 }
 0x22c   : > { %3478 = shalt.err (!%p3475_p11)
}
 0x22d   : > { %p4573_p13 = scmp.ne.s32.totalorder %s4556_s28, 0  ;;  %s4574_s16 = sld [smem:[#allocation51_spill]] }
 0x22e   : > { %s732_s6 = scalar_lea.vmem [#allocation8], %s4004_s26 }
 0x22f   : > { %2845 = dma.hbm_to_vmem [thread:$0]  (!%p4573_p13), %s4207_s10, 128, %s704_s5, %s693_s21  }
 0x230   : > { %s739_s17 = sshll.u32 %s732_s6, 4  ;;  %s740_s17 = int_to_ptr.vmem [resolvable:$true] %s739_s17 }
 0x233   : > { %s4233_s13 = scalar_lea.hbm %s4574_s16, %s4007_s19  ;;  %s3484_s10 = scalar_lea.hbm %s4574_s16, 256 }
 0x234   : > { %s3479_s4 = scalar_lea.hbm %s4233_s13, 128  ;;  %p3485_p4 = scmp.lt.u32.totalorder %s4233_s13, %s4574_s16 }
 0x235   : > { %p3480_p7 = scmp.ne.s32.totalorder %s4233_s13, %s3479_s4  ;;  %p3486_p10 = scmp.lt.u32.totalorder %s3484_s10, %s3479_s4 }
 0x236   : > { %p3488_p0 = scmp.lt.u32.totalorder %s3479_s4, %s4233_s13 }
 0x237   : > { %p3482_p12 = pnand %p3480_p7, %p4572_p1  ;;  %p3487_p3 = por %p3486_p10, %p3485_p4 }
 0x239   : > { %p3483_p2 = pneg %p3482_p12  ;;  %p3489_p5 = por %p3488_p0, %p3487_p3 }
 0x23b   : > { %p3490_p9 = pnand %p3489_p5, %p3483_p2 }
 0x23d   : > { %3493 = shalt.err (!%p3490_p9)
}
 0x23e   : > { %s3494_s26 = scalar_lea.vmem %s740_s17, 128  ;;  %s3633_s19 = smov [#allocation8]  }
 0x23f   : > { %p3495_p6 = scmp.ne.s32.totalorder %s740_s17, %s3494_s26  ;;  %s3499_s3 = sshll.u32 %s3633_s19, 4  ;;  %s3500_s3 = int_to_ptr.vmem [resolvable:$false] %s3499_s3 }
 0x240   : > { %s3501_s7 = scalar_lea.vmem %s3500_s3, 256  ;;  %p3502_p7 = scmp.lt.s32.totalorder %s740_s17, %s3500_s3 }
 0x241   : > { %p3497_p8 = pnand %p3495_p6, %p4572_p1  ;;  %p3503_p12 = scmp.lt.s32.totalorder %s3501_s7, %s3494_s26 }
 0x243   : > { %p3498_p11 = pneg %p3497_p8  ;;  %p3504_p13 = por %p3503_p12, %p3502_p7 }
 0x245   : > { %p3505_p4 = pnand %p3504_p13, %p3498_p11 }
 0x247   : > { %3508 = shalt.err (!%p3505_p4)
}
 0x248   : > { %p4575_p10 = scmp.ne.s32.totalorder %s4556_s28, 0  ;;  %s4576_s1 = sld [smem:[#allocation46_spill]] }
 0x24a   : > { %2851 = dma.hbm_to_vmem [thread:$0]  (!%p4575_p10), %s4233_s13, 128, %s740_s17, %s4025_s11  }
 0x24e   : > { %p4577_p2 = scmp.ne.s32.totalorder %s4576_s1, 0 }
 0x24f   : > { %s4257_s23 = sand.u32 (!%p4577_p2), 1, %s3603_s30   ;;  %p4578_p1 = scmp.ne.s32.totalorder (!%p4577_p2), %s4553_s8, 0 }
 0x250   : > { %748 = sbr.rel (%p4577_p2) target bundleno = 3152 (0xc50), region = 96  ;;  %s4260_s6 = sshll.u32 (!%p4577_p2), %s4257_s23, 3 }
 0x251   : > { %s751_s4 = scalar_lea.sflag (!%p4577_p2), [#allocation4], %s4257_s23  ;;  %s754_s24 = scalar_lea.vmem (!%p4577_p2), [#allocation3], %s4260_s6 }
 0x257   : > { %3554 = dma.done.wait (%p4578_p1), %s751_s4, 128  }
 0x258   : > { %3556 = vsyncadd (%p4578_p1), %s751_s4, 4294967168  ;;  %s759_s11 = sand.u32 1, %s3765_s2   ;;  %s763_s13 = scalar_lea.vmem [#allocation6], %s4260_s6 }
 0x259   : > { %s760_s28 = scalar_lea.sflag [#allocation7], %s759_s11 }
 0x25a   : > { %3558 = dma.done.wait (%p4578_p1), %s760_s28, 256  }
 0x25b   : > { %3560 = vsyncadd (%p4578_p1), %s760_s28, 4294967040  ;;  %s772_s17 = scalar_lea.vmem [#allocation8], %s4260_s6  ;;  %p4579_p13 = scmp.eq.s32.totalorder %s3765_s2, 0 }
 0x25d   : > { %3562 = dma.done.wait (%p4579_p13), [#allocation10], 1024   ;;  %p4580_p3 = pmov %p4579_p13 }
 0x25f   : > { %3564 = vsyncadd (%p4580_p3), [#allocation10], 4294966272  ;;  %p4581_p0 = pmov %p4580_p3 }
 0x261   : > { %3566 = dma.done.wait (%p4581_p0), [#allocation13], 528   ;;  %p4582_p5 = pmov %p4581_p0 }
 0x262   : > { %p4583_p9 = pmov %p4581_p0 }
 0x263   : > { %3568 = vsyncadd (%p4582_p5), [#allocation13], 4294966768 }
 0x264   : > { %3570 = dma.done.wait (%p4583_p9), [#allocation16], 32   ;;  %p4584_p6 = pmov %p4581_p0 }
 0x265   : > { %p4585_p8 = pmov %p4581_p0 }
 0x266   : > { %3572 = vsyncadd (%p4584_p6), [#allocation16], 4294967264 }
 0x267   : > { %3574 = dma.done.wait (%p4585_p8), [#allocation19], 528   ;;  %p4586_p11 = pmov %p4581_p0 }
 0x268   : > { %p4587_p7 = pmov %p4581_p0 }
 0x269   : > { %3576 = vsyncadd (%p4586_p11), [#allocation19], 4294966768 }
 0x26a   : > { %3578 = dma.done.wait (%p4587_p7), [#allocation22], 528   ;;  %p4588_p12 = pmov %p4581_p0 }
 0x26b   : > { %p4589_p4 = pmov %p4581_p0 }
 0x26c   : > { %3580 = vsyncadd (%p4588_p12), [#allocation22], 4294966768 }
 0x26d   : > { %3582 = dma.done.wait (%p4589_p4), [#allocation25], 1040   ;;  %p4590_p10 = pmov %p4581_p0 }
 0x26e   : > { %p4591_p2 = pmov %p4581_p0 }
 0x26f   : > { %3584 = vsyncadd (%p4590_p10), [#allocation25], 4294966256 }
 0x270   : > { %3586 = dma.done.wait (%p4591_p2), [#allocation28], 32   ;;  %p4592_p1 = pmov %p4581_p0 }
 0x271   : > { %p4593_p13 = pmov %p4581_p0 }
 0x272   : > { %3588 = vsyncadd (%p4592_p1), [#allocation28], 4294967264 }
 0x273   : > { %3590 = dma.done.wait (%p4593_p13), [#allocation31], 32   ;;  %p4594_p3 = pmov %p4581_p0 }
 0x274   : > { %v3634_v0 = vmov 0.0|0.0   ;;  %vm3635_vm0 = vmmov 0   ;;  %v3636_v1 = vmov 0.0   ;;  %v904_v2 = vld [vmem:[#allocation9] sm:$0xff]  ;;  %v905_v3 = vld [vmem:[#allocation9 + $0x8] sm:$0xff]  ;;  %v906_v4 = vld [vmem:[#allocation9 + $0x10] sm:$0xff] }
 0x275   : > { %3592 = vsyncadd (%p4594_p3), [#allocation31], 4294967264  ;;  %2679 = vmatprep.subr.bf16.mxu1 %v3634_v0  ;;  %2573 = vmatprep.mubr.msk.f32.mxu1 %vm3635_vm0, %v3636_v1  ;;  %v2680_v5 = vpack.c.bf16 %v905_v3, %v904_v2  ;;  %v907_v6 = vld [vmem:[#allocation9 + $0x18] sm:$0xff]  ;;  %v989_v8 = vld [vmem:[#allocation11] sm:$0xff]  ;;  %vm915_vm1 = vcmask 261120   ;;  %vm1157_vm2 = vcmask 64512  }
 0x276   : > { %2691 = vmatprep.subr.bf16.mxu0 %v3634_v0  ;;  %2595 = vmatprep.mubr.msk.f32.mxu0 %vm3635_vm0, %v3636_v1  ;;  %v2683_v7 = vpack.c.bf16 %v907_v6, %v906_v4  ;;  %v990_v9 = vld [vmem:[#allocation11 + $0x8] sm:$0xff]  ;;  %v901_v10 = vld [vmem:[%s754_s24] sm:$0xff]  ;;  %v1073_v16 = vld [vmem:[#allocation12] sm:$0xff]  ;;  %s3637_s8 = smov 112   ;;  %s3638_s29 = smov 120   ;;  %vm1489_vm3 = vcmask 130112  }
 0x277   : > { %2681 = vmatpush3.bf16.msra.mxu1 %v2680_v5  ;;  %v2686_v11 = vpack.c.bf16 %v990_v9, %v989_v8  ;;  %v991_v12 = vld [vmem:[#allocation11 + $0x10] sm:$0xff]  ;;  %v992_v13 = vld [vmem:[#allocation11 + $0x18] sm:$0xff]  ;;  %v902_v15 = vld [vmem:[%s763_s13] sm:$0xff]  ;;  %s3639_s10 = smov 104   ;;  %s3640_s5 = smov 8   ;;  %vm1660_vm4 = vcmask 195712  }
 0x278   : > { %2682 = vmatprep.subr.bf16.mxu1 %v3634_v0  ;;  %v2689_v14 = vpack.c.bf16 %v992_v13, %v991_v12  ;;  %v1074_v17 = vld [vmem:[#allocation12 + $0x8] sm:$0xff]  ;;  %v1075_v18 = vld [vmem:[#allocation12 + $0x10] sm:$0xff]  ;;  %v1076_v20 = vld [vmem:[#allocation12 + $0x18] sm:$0xff]  ;;  %s3641_s21 = smov 16   ;;  %s3642_s26 = smov 24   ;;  %vm1831_vm5 = vcmask 261312  }
 0x279   : > { %v2692_v19 = vpack.c.bf16 %v1074_v17, %v1073_v16  ;;  %v2695_v21 = vpack.c.bf16 %v1076_v20, %v1075_v18  ;;  %v4330_v22 = vld [vmem:[%s772_s17] sm:$0xff]  ;;  %v2485_v25 = vld [vmem:[#allocation15] ss:$0 sm:$0xff]  ;;  %v2483_v29 = vld [vmem:[#allocation14] ss:$0 sm:$0xff]  ;;  %vm2053_vm6 = vcmask 523264  }
 0x27a   : > { %v2487_v31 = vld [vmem:[#allocation17] ss:$0 sm:$0xff]  ;;  %s2512_s19 = sshll.u32 %s3765_s2, 7  ;;  %s900_s3 = scalar_lea.vmem [#allocation33], %s4260_s6 }
 0x27b   : > { %2684 = vmatpush3.bf16.msra.mxu1 %v2683_v7  ;;  %2693 = vmatpush3.bf16.msra.mxu0 %v2692_v19  ;;  %s2172_s7 = sshll.u32 %s900_s3, 4  ;;  %s4595_s24 = sld [smem:[#allocation68_spill]]  ;;  %s4419_s7 = int_to_ptr.vmem [resolvable:$true] %s2172_s7 }
 0x27c   : > { %2685 = vmatprep.subr.bf16.mxu1 %v3634_v0  ;;  %2694 = vmatprep.subr.bf16.mxu0 %v3634_v0  ;;  %s2159_s28 = scalar_lea.sflag [#allocation5], %s4257_s23  ;;  %s3509_s13 = scalar_lea.vmem %s4419_s7, 128 }
 0x27d   : > { %p3510_p0 = scmp.ne.s32.totalorder %s4419_s7, %s3509_s13  ;;  %p4596_p5 = scmp.ne.s32.totalorder %s4554_s27, 0 }
 0x27e   : > { %2574 = vmatmul.mubr.msk.f32.vlgmr.msra.gmra.mrb[0].mxu1 %vm915_vm1, %v901_v10  ;;  %s3643_s2 = smov [#allocation33]  }
 0x27f   : > { %2687 = vmatpush3.bf16.msra.mxu1 %v2686_v11  ;;  %2584 = vmatprep.mubr.msk.f32.mxu1 %vm3635_vm0, %v3636_v1  ;;  %p3511_p9 = pnand %p3510_p0, %p4596_p5  ;;  %s3513_s6 = sshll.u32 %s3643_s2, 4  ;;  %s3514_s6 = int_to_ptr.vmem [resolvable:$false] %s3513_s6 }
 0x280   : > { %2688 = vmatprep.subr.bf16.mxu1 %v3634_v0  ;;  %2696 = vmatpush3.bf16.msra.mxu0 %v2695_v21  ;;  %s3515_s17 = scalar_lea.vmem %s3514_s6, 256  ;;  %p3516_p8 = scmp.lt.s32.totalorder %s4419_s7, %s3514_s6 }
 0x281   : > { %2608 = vmatprep.subr.mxu0 %v3636_v1  ;;  %s4417_s11 = scalar_lea.hbm %s4595_s24, %s2512_s19  ;;  %p3512_p6 = pneg %p3511_p9 }
 0x282   : > { %p3517_p11 = scmp.lt.s32.totalorder %s3515_s17, %s3509_s13 }
 0x283   : > { %2690 = vmatpush3.bf16.msra.mxu1 %v2689_v14  ;;  %2596 = vmatmul.mubr.msk.f32.vlgmr.msra.gmra.mrb[0].mxu0 %vm915_vm1, %v4330_v22 }
 0x284   : > { %2598 = vmatprep.subr.mxu1 %v3636_v1  ;;  %2610 = vmatprep.mubr.msk.f32.mxu0 %vm3635_vm0, %v3636_v1  ;;  %p3518_p7 = por %p3517_p11, %p3516_p8 }
 0x286   : > { %2585 = vmatmul.mubr.msk.f32.vlgmr.msra.gmra.mrb[2].mxu1 %vm915_vm1, %v902_v15  ;;  %p3519_p12 = pnand %p3518_p7, %p3512_p6 }
 0x287   : > { %2600 = vmatprep.mubr.msk.f32.mxu1 %vm3635_vm0, %v3636_v1 }
 0x351   : > { %v985_v23 = vpop.f32.mrb[0].mxu1 }
 0x352   : > { %v2575_v24 = vpop.f32.mrb[1].mxu1  ;;  %v986_v30 = vadd.f32 %v2483_v29, %v985_v23  ;;  %v1834_v29 = vld [vmem:[#allocation18] sm:$0xff] }
 0x356   : > { %v1153_v32 = vpop.f32.mrb[0].mxu0 }
 0x357   : > { %v4348_v33 = vadd.f32 %v2487_v31, %v1153_v32  ;;  %v2597_v34 = vpop.f32.mrb[1].mxu0  ;;  %v1836_v32 = vld [vmem:[#allocation18 + $0x10] sm:$0xff] }
 0x359   : > { %v1069_v26 = vpop.f32.mrb[2].mxu1 }
 0x35a   : > { %v1070_v27 = vadd.f32 %v2485_v25, %v1069_v26  ;;  %v2586_v28 = vpop.f32.mrb[3].mxu1 }
 0x35c   : > { %1493 = vrot.lane.b32.xlu1 %v1070_v27, %s3637_s8  ;;  %1321 = vrot.lane.b32.xlu0 %v1070_v27, %s3638_s29 }
 0x35d   : > { %2599 = vmatpush3.xpose.msk.msra.mxu1 %vm1157_vm2, %v1070_v27 }
 0x35e   : > { %2603 = vmatprep.subr.mxu1 %v3636_v1 }
 0x360   : > { %2601 = vmatmul.mubr.msk.f32.vlgmr.msra.gmra.mrb[4].mxu1 %vm1157_vm2, %v986_v30  ;;  %1491 = vrot.lane.b32.xlu1 %v986_v30, %s3637_s8 }
 0x361   : > { %1319 = vrot.lane.b32.xlu0 %v986_v30, %s3638_s29  ;;  %2605 = vmatprep.mubr.msk.f32.mxu1 %vm3635_vm0, %v3636_v1 }
 0x362   : > { %2604 = vmatpush3.msra.mxu1 %v4348_v33 }
 0x363   : > { %2613 = vmatprep.subr.mxu1 %v3636_v1 }
 0x364   : > { %1662 = vrot.lane.b32.xlu1 %v986_v30, %s3639_s10  ;;  %v1835_v30 = vld [vmem:[#allocation18 + $0x8] sm:$0xff] }
 0x365   : > { %1664 = vrot.lane.b32.xlu0 %v1070_v27, %s3639_s10  ;;  %v2698_v31 = vpack.c.bf16 %v1835_v30, %v1834_v29  ;;  %v2507_v29 = vld [vmem:[#allocation26] ss:$0 sm:$0xff] }
 0x3ce   : > { %v1322_v35 = vpop.permute.xlu0 %1321  ;;  %v1494_v36 = vpop.permute.xlu1 %1493 }
 0x3cf   : > { %2609 = vmatpush3.xpose.msk.msra.mxu0 %vm1157_vm2, %v1322_v35 }
 0x3d0   : > { %2618 = vmatprep.subr.mxu0 %v3636_v1 }
 0x3d2   : > { %v1492_v38 = vpop.permute.xlu1 %1491 }
 0x3d3   : > { %v1320_v37 = vpop.permute.xlu0 %1319 }
 0x3d4   : > { %2611 = vmatmul.mubr.msk.f32.vlgmr.msra.gmra.mrb[2].mxu0 %vm1157_vm2, %v1320_v37 }
 0x3d5   : > { %2619 = vmatpush3.xpose.msk.msra.mxu0 %vm1157_vm2, %v1494_v36  ;;  %2620 = vmatprep.mubr.msk.f32.mxu0 %vm3635_vm0, %v3636_v1 }
 0x3d6   : > { %2628 = vmatprep.subr.mxu0 %v3636_v1  ;;  %v1663_v40 = vpop.permute.xlu1 %1662 }
 0x3d7   : > { %v1665_v39 = vpop.permute.xlu0 %1664 }
 0x3d8   : > { %2621 = vmatmul.mubr.msk.f32.vlgmr.msra.gmra.mrb[4].mxu0 %vm1157_vm2, %v1492_v38 }
 0x3d9   : > { %2629 = vmatpush3.xpose.msk.msra.mxu0 %vm1157_vm2, %v1665_v39  ;;  %2630 = vmatprep.mubr.msk.f32.mxu0 %vm3635_vm0, %v3636_v1 }
 0x3da   : > { %2697 = vmatprep.subr.bf16.mxu0 %v3634_v0 }
 0x3dc   : > { %2631 = vmatmul.mubr.msk.f32.vlgmr.msra.gmra.mrb[6].mxu0 %vm1157_vm2, %v1663_v40 }
 0x3dd   : > { %2646 = vmatprep.mubr.msk.f32.mxu0 %vm3635_vm0, %v3636_v1  ;;  %2699 = vmatpush3.bf16.msra.mxu0 %v2698_v31 }
 0x3de   : > { %2700 = vmatprep.subr.bf16.mxu0 %v3634_v0 }
 0x433   : > { %v1230_v41 = vpop.f32.mrb[4].mxu1 }
 0x434   : > { %v2602_v42 = vpop.f32.mrb[5].mxu1  ;;  %v1234_v43 = vsel %vm1157_vm2, %v1230_v41, -inf }
 0x435   : > { %1235 = vmax.xlane.f32.xlu0 %v1234_v43 }
 0x4a7   : > { %v1393_v44 = vpop.f32.mrb[2].mxu0 }
 0x4a8   : > { %v2612_v45 = vpop.f32.mrb[3].mxu0  ;;  %v1397_v46 = vsel %vm1157_vm2, %v1393_v44, -inf }
 0x4a9   : > { %1398 = vmax.xlane.f32.xlu1 %v1397_v46  ;;  %v2501_v45 = vld [vmem:[#allocation20] ss:$0 sm:$0xff] }
 0x4ab   : > { %v1565_v47 = vpop.f32.mrb[4].mxu0 }
 0x4ac   : > { %v2622_v48 = vpop.f32.mrb[5].mxu0  ;;  %v1569_v49 = vsel %vm1157_vm2, %v1565_v47, -inf }
 0x4ad   : > { %1570 = vmax.xlane.f32.xlu0 %v1569_v49 }
 0x4af   : > { %v1736_v50 = vpop.f32.mrb[6].mxu0 }
 0x4b0   : > { %v2632_v51 = vpop.f32.mrb[7].mxu0  ;;  %v1740_v52 = vsel %vm1157_vm2, %v1736_v50, -inf }
 0x4b1   : > { %1741 = vmax.xlane.f32.xlu0 %v1740_v52 }
 0x4ba   : > { %1409 = vrot.lane.b32.xlu1 %v4348_v33, %s3638_s29 }
 0x4c2   : > { %v1236_v53 = vpop.xlane.xlu0 %1235 }
 0x4c3   : > { %v1237_v54 = vsub.f32 %v1230_v41, %v1236_v53 }
 0x4c5   : > { %v1238_v55 = vmul.f32 1.442695, %v1237_v54 }
 0x4c7   : > { %2949 = vpow2.f32 %v1238_v55 }
 0x4d1   : > { %v2950_v56 = vpop.eup %2949 }
 0x4d2   : > { %v1240_v57 = vsel %vm1157_vm2, %v2950_v56, 0.0 }
 0x4de   : > { %1241 = vadd.xlane.f32.xlu1 %v1240_v57  ;;  %v1950_v57 = vld [vmem:[#allocation21 + $0x8] sm:$0xff] }
 0x536   : > { %v1399_v58 = vpop.xlane.xlu1 %1398 }
 0x537   : > { %v1400_v59 = vsub.f32 %v1393_v44, %v1399_v58 }
 0x539   : > { %v1401_v60 = vmul.f32 1.442695, %v1400_v59  ;;  %v1952_v59 = vld [vmem:[#allocation21 + $0x18] sm:$0xff] }
 0x53a   : > { %v1571_v61 = vpop.xlane.xlu0 %1570  ;;  %v1410_v11 = vpop.permute.xlu1 %1409 }
 0x53b   : > { %2951 = vpow2.f32 %v1401_v60  ;;  %v1572_v62 = vsub.f32 %v1565_v47, %v1571_v61 }
 0x53d   : > { %v1573_v63 = vmul.f32 1.442695, %v1572_v62 }
 0x53e   : > { %v1742_v2 = vpop.xlane.xlu0 %1741 }
 0x53f   : > { %2953 = vpow2.f32 %v1573_v63  ;;  %v1743_v3 = vsub.f32 %v1736_v50, %v1742_v2  ;;  %v2503_v2 = vld [vmem:[#allocation27] ss:$0 sm:$0xff] }
 0x541   : > { %v1744_v4 = vmul.f32 1.442695, %v1743_v3 }
 0x543   : > { %2955 = vpow2.f32 %v1744_v4  ;;  %v2504_v4 = vld [vmem:[#allocation29] ss:$0 sm:$0xff] }
 0x545   : > { %v2952_v5 = vpop.eup %2951 }
 0x546   : > { %v1403_v6 = vsel %vm1157_vm2, %v2952_v5, 0.0 }
 0x547   : > { %1404 = vadd.xlane.f32.xlu0 %v1403_v6 }
 0x549   : > { %v2954_v7 = vpop.eup %2953 }
 0x54a   : > { %v1575_v8 = vsel %vm1157_vm2, %v2954_v7, 0.0 }
 0x54b   : > { %1576 = vadd.xlane.f32.xlu1 %v1575_v8  ;;  %v2039_v8 = vld [vmem:[#allocation24 + $0x8] sm:$0xff] }
 0x54d   : > { %v2956_v9 = vpop.eup %2955 }
 0x54e   : > { %v1746_v10 = vsel %vm1157_vm2, %v2956_v9, 0.0 }
 0x54f   : > { %1747 = vadd.xlane.f32.xlu0 %v1746_v10  ;;  %v2040_v10 = vld [vmem:[#allocation24 + $0x10] sm:$0xff] }
 0x55c   : > { %1751 = vrot.lane.b32.xlu1 %v4348_v33, %s3639_s10 }
 0x565   : > { %1580 = vrot.lane.b32.xlu0 %v4348_v33, %s3637_s8  ;;  %v1837_v33 = vld [vmem:[#allocation18 + $0x18] sm:$0xff] }
 0x566   : > { %v2701_v34 = vpack.c.bf16 %v1837_v33, %v1836_v32 }
 0x568   : > { %2702 = vmatpush3.bf16.msra.mxu0 %v2701_v34 }
 0x569   : > { %2709 = vmatprep.subr.bf16.mxu0 %v3634_v0 }
 0x56b   : > { %v1242_v12 = vpop.xlane.xlu1 %1241 }
 0x56c   : > { %2957 = vrcp.f32 %v1242_v12 }
 0x576   : > { %v2958_v13 = vpop.eup %2957 }
 0x577   : > { %v1244_v14 = vmul.f32 %v2958_v13, %v2950_v56  ;;  %v1949_v56 = vld [vmem:[#allocation21] sm:$0xff] }
 0x578   : > { %v2704_v58 = vpack.c.bf16 %v1950_v57, %v1949_v56  ;;  %v2042_v13 = vld [vmem:[#allocation24 + $0x20] sm:$0xff] }
 0x579   : > { %2606 = vmatmul.mubr.msk.f32.vlgmr.msra.gmra.mrb[6].mxu1 %vm1157_vm2, %v1244_v14  ;;  %v2043_v14 = vld [vmem:[#allocation24 + $0x28] sm:$0xff] }
 0x57a   : > { %2614 = vmatpush3.msra.mxu1 %v1410_v11  ;;  %2615 = vmatprep.mubr.msk.f32.mxu1 %vm3635_vm0, %v3636_v1  ;;  %v2041_v11 = vld [vmem:[#allocation24 + $0x18] sm:$0xff] }
 0x57b   : > { %2623 = vmatprep.subr.mxu1 %v3636_v1  ;;  %v2713_v12 = vpack.c.bf16 %v2041_v11, %v2040_v10 }
 0x5d4   : > { %v1405_v15 = vpop.xlane.xlu0 %1404 }
 0x5d5   : > { %2959 = vrcp.f32 %v1405_v15  ;;  %v2716_v15 = vpack.c.bf16 %v2043_v14, %v2042_v13 }
 0x5d8   : > { %v1577_v16 = vpop.xlane.xlu1 %1576 }
 0x5d9   : > { %2961 = vrcp.f32 %v1577_v16  ;;  %v2044_v16 = vld [vmem:[#allocation24 + $0x30] sm:$0xff] }
 0x5dc   : > { %v1748_v17 = vpop.xlane.xlu0 %1747  ;;  %v1752_v24 = vpop.permute.xlu1 %1751 }
 0x5dd   : > { %2963 = vrcp.f32 %v1748_v17  ;;  %v2045_v17 = vld [vmem:[#allocation24 + $0x38] sm:$0xff] }
 0x5df   : > { %v2960_v18 = vpop.eup %2959 }
 0x5e0   : > { %v1407_v19 = vmul.f32 %v2960_v18, %v2952_v5  ;;  %v1581_v20 = vpop.permute.xlu0 %1580  ;;  %v2719_v18 = vpack.c.bf16 %v2045_v17, %v2044_v16 }
 0x5e2   : > { %2616 = vmatmul.mubr.msk.f32.vlgmr.msra.gmra.mrb[8].mxu1 %vm1157_vm2, %v1407_v19  ;;  %v2505_v19 = vld [vmem:[#allocation23] ss:$0 sm:$0xff] }
 0x5e3   : > { %v2962_v21 = vpop.eup %2961  ;;  %2624 = vmatpush3.msra.mxu1 %v1581_v20  ;;  %2625 = vmatprep.mubr.msk.f32.mxu1 %vm3635_vm0, %v3636_v1 }
 0x5e4   : > { %v1579_v23 = vmul.f32 %v2962_v21, %v2954_v7  ;;  %2633 = vmatprep.subr.mxu1 %v3636_v1  ;;  %v2038_v7 = vld [vmem:[#allocation24] sm:$0xff] }
 0x5e6   : > { %2626 = vmatmul.mubr.msk.f32.vlgmr.msra.gmra.mrb[10].mxu1 %vm1157_vm2, %v1579_v23 }
 0x5e7   : > { %v2964_v25 = vpop.eup %2963  ;;  %2634 = vmatpush3.msra.mxu1 %v1752_v24  ;;  %2635 = vmatprep.mubr.msk.f32.mxu1 %vm3635_vm0, %v3636_v1 }
 0x5e8   : > { %v1750_v26 = vmul.f32 %v2964_v25, %v2956_v9  ;;  %2703 = vmatprep.subr.bf16.mxu1 %v3634_v0  ;;  %v2710_v9 = vpack.c.bf16 %v2039_v8, %v2038_v7 }
 0x5ea   : > { %2636 = vmatmul.mubr.msk.f32.vlgmr.msra.gmra.mrb[12].mxu1 %vm1157_vm2, %v1750_v26 }
 0x5eb   : > { %2657 = vmatprep.mubr.msk.f32.mxu1 %vm3635_vm0, %v3636_v1  ;;  %2705 = vmatpush3.bf16.msra.mxu1 %v2704_v58 }
 0x5ec   : > { %2706 = vmatprep.subr.bf16.mxu1 %v3634_v0 }
 0x64c   : > { %v1314_v27 = vpop.f32.mrb[6].mxu1 }
 0x64d   : > { %1318 = vst.msk [vmem:[#allocation2] sm:$0xff] %vm1157_vm2, %v1314_v27  ;;  %v2607_v28 = vpop.f32.mrb[7].mxu1 }
 0x6b5   : > { %v1481_v35 = vpop.f32.mrb[8].mxu1 }
 0x6b6   : > { %1486 = vrot.lane.b32.xlu1 %v1481_v35, %s3640_s5  ;;  %v2617_v36 = vpop.f32.mrb[9].mxu1 }
 0x6b9   : > { %v1652_v37 = vpop.f32.mrb[10].mxu1 }
 0x6ba   : > { %1657 = vrot.lane.b32.xlu0 %v1652_v37, %s3641_s21  ;;  %v2627_v38 = vpop.f32.mrb[11].mxu1 }
 0x6bd   : > { %v1823_v39 = vpop.f32.mrb[12].mxu1 }
 0x6be   : > { %1828 = vrot.lane.b32.xlu1 %v1823_v39, %s3642_s26  ;;  %v2637_v40 = vpop.f32.mrb[13].mxu1 }
 0x728   : > { %v1487_v41 = vpop.permute.xlu1 %1486 }
 0x729   : > { %1490 = vst.msk [vmem:[#allocation2] sm:$0xff] %vm1489_vm3, %v1487_v41 }
 0x72c   : > { %v1658_v42 = vpop.permute.xlu0 %1657 }
 0x72d   : > { %1661 = vst.msk [vmem:[#allocation2] sm:$0xff] %vm1660_vm4, %v1658_v42 }
 0x730   : > { %v1829_v43 = vpop.permute.xlu1 %1828 }
 0x731   : > { %1832 = vst.msk [vmem:[#allocation2] sm:$0xff] %vm1831_vm5, %v1829_v43  ;;  %v2509_v43 = vld [vmem:[#allocation30] ss:$0 sm:$0xff] }
 0x738   : > { %v1833_v44 = vld [vmem:[#allocation2] sm:$0xff] }
 0x739   : > { %2647 = vmatmul.mubr.msk.f32.vlgmr.msra.gmra.mrb[8].mxu0 %vm915_vm1, %v1833_v44 }
 0x73a   : > { %2676 = vmatprep.mubr.msk.f32.mxu0 %vm3635_vm0, %v3636_v1  ;;  %v1951_v1 = vld [vmem:[#allocation21 + $0x10] sm:$0xff]  ;;  %2711 = vmatpush3.bf16.msra.mxu0 %v2710_v9 }
 0x73b   : > { %v2707_v60 = vpack.c.bf16 %v1952_v59, %v1951_v1  ;;  %2712 = vmatprep.subr.bf16.mxu0 %v3634_v0 }
 0x73d   : > { %2708 = vmatpush3.bf16.msra.mxu1 %v2707_v60 }
 0x73e   : > { %2714 = vmatpush3.bf16.msra.mxu0 %v2713_v12 }
 0x73f   : > { %2715 = vmatprep.subr.bf16.mxu0 %v3634_v0 }
 0x742   : > { %2717 = vmatpush3.bf16.msra.mxu0 %v2716_v15 }
 0x743   : > { %2718 = vmatprep.subr.bf16.mxu0 %v3634_v0 }
 0x746   : > { %2720 = vmatpush3.bf16.msra.mxu0 %v2719_v18 }
 0x80c   : > { %v1914_v46 = vpop.f32.mrb[8].mxu0 }
 0x80d   : > { %v1915_v47 = vadd.f32 %v2501_v45, %v1914_v46  ;;  %v2648_v48 = vpop.f32.mrb[9].mxu0  ;;  %v2510_v45 = vld [vmem:[#allocation32] ss:$0 sm:$0xff] }
 0x80f   : > { %v1918_v49 = vadd.f32 %v1915_v47, %v4330_v22 }
 0x811   : > { %v1921_v50 = vsel %vm915_vm1, %v1918_v49, 0.0 }
 0x812   : > { %1922 = vadd.xlane.f32.xlu0 %v1921_v50 }
 0x89f   : > { %v1923_v51 = vpop.xlane.xlu0 %1922 }
 0x8a0   : > { %v1925_v52 = vmul.f32 0.03125, %v1923_v51 }
 0x8a2   : > { %v1926_v53 = vsub.f32 %v1918_v49, %v1925_v52 }
 0x8a4   : > { %v1927_v54 = vmul.f32 %v1926_v53, %v1926_v53 }
 0x8a6   : > { %v1928_v55 = vsel %vm915_vm1, %v1927_v54, 0.0 }
 0x8a7   : > { %1929 = vadd.xlane.f32.xlu1 %v1928_v55 }
 0x934   : > { %v1930_v22 = vpop.xlane.xlu1 %1929 }
 0x935   : > { %v1931_v61 = vmul.f32 0.03125, %v1930_v22 }
 0x937   : > { %v1932_v62 = vadd.f32 1e-05, %v1931_v61 }
 0x939   : > { %2965 = vrsqrt.f32 %v1932_v62 }
 0x943   : > { %v2966_v63 = vpop.eup %2965 }
 0x944   : > { %v1934_v3 = vmul.f32 %v2966_v63, %v1926_v53 }
 0x946   : > { %v1941_v5 = vmul.f32 %v2503_v2, %v1934_v3 }
 0x948   : > { %v1948_v6 = vadd.f32 %v2504_v4, %v1941_v5 }
 0x94a   : > { %2658 = vmatmul.mubr.msk.f32.vlgmr.msra.gmra.mrb[14].mxu1 %vm915_vm1, %v1948_v6 }
 0xa1d   : > { %v2029_v20 = vpop.f32.mrb[14].mxu1 }
 0xa1e   : > { %v2030_v21 = vadd.f32 %v2505_v19, %v2029_v20  ;;  %v2659_v23 = vpop.f32.mrb[15].mxu1 }
 0xa20   : > { %v2034_v24 = vmul.f32 0.70710677, %v2030_v21  ;;  %v2033_v26 = vmul.f32 0.5, %v2030_v21 }
 0xa22   : > { %2967 = verf.f32 %v2034_v24 }
 0xa2c   : > { %v2968_v25 = vpop.eup %2967 }
 0xa2d   : > { %v2036_v27 = vadd.f32 1.0, %v2968_v25 }
 0xa2f   : > { %v2037_v28 = vmul.f32 %v2036_v27, %v2033_v26 }
 0xa31   : > { %2677 = vmatmul.mubr.msk.f32.vlgmr.msra.gmra.mrb[10].mxu0 %vm2053_vm6, %v2037_v28 }
 0xb04   : > { %v2123_v30 = vpop.f32.mrb[10].mxu0 }
 0xb05   : > { %v2124_v31 = vadd.f32 %v2507_v29, %v2123_v30  ;;  %v2678_v0 = vpop.f32.mrb[11].mxu0 }
 0xb07   : > { %v2127_v32 = vadd.f32 %v2124_v31, %v1948_v6 }
 0xb09   : > { %v2130_v33 = vsel %vm915_vm1, %v2127_v32, 0.0 }
 0xb0a   : > { %2131 = vadd.xlane.f32.xlu0 %v2130_v33 }
 0xb97   : > { %v2132_v34 = vpop.xlane.xlu0 %2131 }
 0xb98   : > { %v2133_v35 = vmul.f32 0.03125, %v2132_v34 }
 0xb9a   : > { %v2134_v36 = vsub.f32 %v2127_v32, %v2133_v35 }
 0xb9c   : > { %v2135_v37 = vmul.f32 %v2134_v36, %v2134_v36 }
 0xb9e   : > { %v2136_v38 = vsel %vm915_vm1, %v2135_v37, 0.0 }
 0xb9f   : > { %2137 = vadd.xlane.f32.xlu0 %v2136_v38 }
 0xc2c   : > { %v2138_v39 = vpop.xlane.xlu0 %2137 }
 0xc2d   : > { %v2139_v40 = vmul.f32 0.03125, %v2138_v39 }
 0xc2f   : > { %v2140_v41 = vadd.f32 1e-05, %v2139_v40 }
 0xc31   : > { %2969 = vrsqrt.f32 %v2140_v41 }
 0xc3b   : > { %v2970_v42 = vpop.eup %2969 }
 0xc3c   : > { %v2142_v44 = vmul.f32 %v2970_v42, %v2134_v36 }
 0xc3e   : > { %v2149_v46 = vmul.f32 %v2509_v43, %v2142_v44 }
 0xc40   : > { %v2156_v47 = vadd.f32 %v2510_v45, %v2149_v46 }
 0xc42   : > { %2157 = vst.msk [vmem:[%s900_s3] sm:$0xff] %vm915_vm1, %v2156_v47 }
 0xc43   : > { %3522 = shalt.err (!%p3519_p12)
}
 0xc44   : > { %s3523_s23 = scalar_lea.hbm %s4417_s11, 128  ;;  %s3527_s10 = scalar_lea.hbm %s4595_s24, 256 }
 0xc45   : > { %p3524_p4 = scmp.ne.s32.totalorder %s4417_s11, %s3523_s23  ;;  %p3528_p1 = scmp.lt.u32.totalorder %s4417_s11, %s4595_s24 }
 0xc46   : > { %p3529_p13 = scmp.lt.u32.totalorder %s3527_s10, %s3523_s23  ;;  %p3531_p0 = scmp.lt.u32.totalorder %s3523_s23, %s4417_s11 }
 0xc47   : > { %p3525_p10 = pnand %p3524_p4, %p4596_p5 }
 0xc48   : > { %p3530_p3 = por %p3529_p13, %p3528_p1 }
 0xc49   : > { %p3526_p2 = pneg %p3525_p10 }
 0xc4a   : > { %p3532_p9 = por %p3531_p0, %p3530_p3 }
 0xc4c   : > { %p3533_p6 = pnand %p3532_p9, %p3526_p2 }
 0xc4e   : > { %3536 = shalt.err (!%p3533_p6)
}
 0xc4f   : > { %2791 = dma.vmem_to_hbm [thread:$0]  (%p4596_p5), %s4419_s7, 128, %s4417_s11, %s2159_s28  }
 0xc50 PF: > { %s4597_s26 = sld [smem:[#allocation45_spill]]  ;;  %s2184_s19 = sand.u32 1, %s3599_s0  }
 0xc51   : > { %p4598_p8 = scmp.ne.s32.totalorder %s4555_s14, 0  ;;  %s2185_s3 = scalar_lea.sflag [#allocation5], %s2184_s19 }
 0xc56   : > { %p4599_p11 = scmp.ge.s32.totalorder %s4597_s26, 2 }
 0xc58   : > { %p2853_p7 = pnand %p4599_p11, %p4598_p8 }
 0xc5a   : > { %3594 = dma.done.wait (!%p2853_p7), %s2185_s3, 128  }
 0xc5b   : > { %3596 = vsyncadd (!%p2853_p7), %s2185_s3, 4294967168  ;;  %s4600_s21 = sld [smem:[#allocation47_spill]]  ;;  %s4601_s1 = sld [smem:[#allocation48_spill]] }
 0xc5c   : > { %s4602_s0 = smov %s3603_s30  ;;  %s4603_s30 = smov %s3607_s20 }
 0xc61   : > { %p43_p12 = scmp.ge.s32.totalorder %s4600_s21, 4   ;;  %s4604_s20 = smov %s4601_s1 }
 0xc63   :  { %45 = sbr.rel (!%p43_p12) target bundleno = 36 (0x24), region = 229 }
 0xc6a   :  { %2190 = vsyncpa [#allocation4], 1 }
 0xc6b   :  { %2192 = vsyncpa [#allocation4 + $0x1], 1 }
 0xc6c   :  { %2193 = vsyncpa [#allocation7], 1 }
 0xc6d   :  { %2195 = vsyncpa [#allocation7 + $0x1], 1 }
 0xc6e   :  { %2196 = vsyncpa [#allocation10], 1 }
 0xc6f   :  { %2197 = vsyncpa [#allocation13], 1 }
 0xc70   :  { %2198 = vsyncpa [#allocation16], 1 }
 0xc71   :  { %2199 = vsyncpa [#allocation19], 1 }
 0xc72   :  { %2200 = vsyncpa [#allocation22], 1 }
 0xc73   :  { %2201 = vsyncpa [#allocation25], 1 }
 0xc74   :  { %2202 = vsyncpa [#allocation28], 1 }
 0xc75   :  { %2203 = vsyncpa [#allocation31], 1 }
 0xc76   :  { %2204 = vsyncpa [#allocation5], 1 }
 0xc77   :  { %2206 = vsyncpa [#allocation5 + $0x1], 1 }

</bundles_post_ra>
